<compile_context>
chip_gen: v7x
topology: tpu7x:2x2x1
jax: 0.10.0
libtpu: 0.0.40
codegen_flags: <defaults>
</compile_context>

<pallas_src>
import functools

import jax
import jax.numpy as jnp
from jax.experimental import pallas as pl
from jax.experimental.pallas import tpu as pltpu

F32 = jnp.float32
BF16 = jnp.bfloat16

# packed-weight segment ids
W_ENC_IH, W_ENC_HH, W_ENC_OUT, W_INIT, W_DEC_X, W_DEC_Z, W_DEC_HH, W_OUT = range(8)
# packed-bias segment ids
B_ENC, B_ENC_OUT, B_INIT, B_DEC, B_OUT = range(5)


def _round_up(x, m):
    return ((x + m - 1) // m) * m


def _gate_perm(H):
    """PyTorch LSTM gate column order [i, f, g, o] -> kernel order [i, f, o, g]
    (three sigmoid gates contiguous, tanh gate last)."""
    return jnp.concatenate([jnp.arange(0, H), jnp.arange(H, 2 * H),
                            jnp.arange(3 * H, 4 * H), jnp.arange(2 * H, 3 * H)])


def _packed_layout(He, Hd, Z, out_pad):
    """(rows, cols, col_offset) per weight segment of the packed bf16 buffer."""
    shapes = [
        (5, 8 * He),        # W_ENC_IH  [fw | bw], each in [i,f,o,g] order
        (2 * He, 8 * He),   # W_ENC_HH  block-diag(fw, bw)
        (2 * He, 2 * Z),    # W_ENC_OUT
        (Z, 2 * Hd),        # W_INIT
        (5, 4 * Hd),        # W_DEC_X
        (Z, 4 * Hd),        # W_DEC_Z
        (Hd, 4 * Hd),       # W_DEC_HH
        (Hd, out_pad),      # W_OUT
    ]
    layout, off = [], 0
    for (r, c) in shapes:
        layout.append((r, c, off))
        off += _round_up(c, 128)                 # 128-lane aligned segments
    rows = _round_up(max(r for r, _, _ in layout), 16)
    return layout, rows, off


def _bias_layout(He, Hd, Z, out_pad):
    """(cols, col_offset) per bias segment of the packed f32 buffer."""
    widths = [8 * He, 2 * Z, 2 * Hd, 4 * Hd, out_pad]   # enc, enc_out, init, dec, out
    layout, off = [], 0
    for c in widths:
        layout.append((c, off))
        off += _round_up(c, 128)
    return layout, off


# ----------------------------------------------------------------------------
# In-kernel cell math
# ----------------------------------------------------------------------------

def _sigmoid(x):
    # one EUP push (tanh) instead of exp + reciprocal
    return 0.5 * jnp.tanh(0.5 * x) + 0.5


def _lstm_cell(gates, c, H):
    """Kernel gate order [i | f | o | g]: one sigmoid over 3H lanes, one tanh
    over H lanes.  Elementwise math stays f32."""
    sig = _sigmoid(gates[:, :3 * H])
    g = jnp.tanh(gates[:, 3 * H:])
    i = sig[:, 0:H]
    f = sig[:, H:2 * H]
    o = sig[:, 2 * H:3 * H]
    c_new = f * c + i * g
    h_new = o * jnp.tanh(c_new)
    return h_new, c_new


# ----------------------------------------------------------------------------
# Pallas kernel (entire forward pass for one batch tile)
# ----------------------------------------------------------------------------

def sketch_rnn_kernel(x_enc_ref, x_dec_ref, eps_ref, w_ref, b_ref,
                      raw_ref, zstat_ref,
                      pre_enc, pre_dec, h_dec, h_cat,
                      *, T, TB, He, Hd, Z, out_pad):
    """Fused SketchRNN forward on one batch tile of TB rows.

    x_enc_ref : (T, TB, 5)   time-major encoder inputs (data[:, 1:T+1])
    x_dec_ref : (T, TB, 5)   time-major decoder inputs (data[:, :T])
    eps_ref   : (TB, Z)      standard-normal draw (reparameterization)
    w_ref     : packed bf16 weights   (see _packed_layout)
    b_ref     : packed f32 biases     (see _bias_layout)
    raw_ref   : (T, TB, out_pad)  GMM-parameter logits (lane-dense, padded)
    zstat_ref : (TB, 2Z)      [z_mean | z_logvar]
    scratch   : pre_enc (T*TB, 8He), pre_dec (T*TB, 4Hd), h_dec (T*TB, Hd),
                h_cat (TB, 2He)  -- all f32 VMEM
    """
    wl, _, _ = _packed_layout(He, Hd, Z, out_pad)
    bl, _ = _bias_layout(He, Hd, Z, out_pad)

    def w(i):                                   # re-loaded at each use site so the
        r, c, off = wl[i]                       # weights never sit in vregs across
        return w_ref[0:r, off:off + c]          # the unrolled recurrences

    def b(i):
        c, off = bl[i]
        return b_ref[:, off:off + c]

    # ---------------- Encoder: fused fw+bw bi-LSTM --------------------------
    # Hoisted input projection for BOTH directions, bias folded in; result
    # parked in VMEM scratch (not carried as SSA across the unrolled loop).
    x_enc = x_enc_ref[...].reshape(T * TB, 5).astype(BF16)
    pre_enc[...] = (jnp.dot(x_enc, w(W_ENC_IH), preferred_element_type=F32)
                    + b(B_ENC))

    h_cat[...] = jnp.zeros((TB, 2 * He), F32)            # [h_fw | h_bw]
    c_fw = jnp.zeros((TB, He), F32)
    c_bw = jnp.zeros((TB, He), F32)

    for t in range(T):  # T is small & static -> fully unrolled
        # one MXU push covers both directions (block-diagonal W_hh)
        hh = jnp.dot(h_cat[...].astype(BF16), w(W_ENC_HH),
                     preferred_element_type=F32)
        g_fw = hh[:, :4 * He] + pre_enc[t * TB:(t + 1) * TB, :4 * He]
        g_bw = hh[:, 4 * He:] + pre_enc[(T - 1 - t) * TB:(T - t) * TB, 4 * He:]
        h_fw, c_fw = _lstm_cell(g_fw, c_fw, He)
        h_bw, c_bw = _lstm_cell(g_bw, c_bw, He)
        # write halves in place: no per-step lane-concat on the critical path
        h_cat[:, :He] = h_fw
        h_cat[:, He:] = h_bw
    # per-step encoder hidden states are never written out (only the final
    # state feeds the encoder head)

    # ---------------- Encoder head: z = mean + exp(0.5*logvar) * eps --------
    zz = (jnp.dot(h_cat[...].astype(BF16), w(W_ENC_OUT),
                  preferred_element_type=F32) + b(B_ENC_OUT))
    zstat_ref[...] = zz                                   # [z_mean | z_logvar]
    z = zz[:, :Z] + jnp.exp(0.5 * zz[:, Z:]) * eps_ref[...]

    # ---------------- Decoder initial state: tanh(init(z)).chunk(2) ---------
    st = jnp.tanh(jnp.dot(z.astype(BF16), w(W_INIT),
                          preferred_element_type=F32) + b(B_INIT))
    h = st[:, :Hd]
    c = st[:, Hd:]

    # ---------------- Decoder LSTM over [x ; z] ------------------------------
    # z contribution + bias are time-invariant: fold them into the hoisted
    # input projection once, before the recurrence.
    # TODO(synk): recurrent dropout (r_dropout) treated as identity (inference).
    x_dec = x_dec_ref[...].reshape(T * TB, 5).astype(BF16)
    pre_x = jnp.dot(x_dec, w(W_DEC_X), preferred_element_type=F32)
    pre_z = (jnp.dot(z.astype(BF16), w(W_DEC_Z), preferred_element_type=F32)
             + b(B_DEC))                                   # (TB, 4Hd)
    pre_dec[...] = (pre_x.reshape(T, TB, 4 * Hd)
                    + pre_z[None, :, :]).reshape(T * TB, 4 * Hd)

    for t in range(T):  # fully unrolled
        gates = (pre_dec[t * TB:(t + 1) * TB, :]
                 + jnp.dot(h.astype(BF16), w(W_DEC_HH),
                           preferred_element_type=F32))
        h, c = _lstm_cell(gates, c, Hd)
        h_dec[t * TB:(t + 1) * TB, :] = h                  # park in VMEM scratch

    # ---------------- ParameterLayer linear (one lane-dense 128-wide store) --
    raw = (jnp.dot(h_dec[...].astype(BF16), w(W_OUT),
                   preferred_element_type=F32) + b(B_OUT))
    raw_ref[...] = raw.reshape(T, TB, out_pad)


# ----------------------------------------------------------------------------
# Parameter initialization (deterministic, synthetic; PyTorch conventions)
# ----------------------------------------------------------------------------

def init_params(key, enc_hidden, dec_hidden, z_size, num_mixture):
    ks = jax.random.split(key, 10)

    def nrm(k, shape, scale):
        return scale * jax.random.normal(k, shape, F32)

    return {
        # encoder bi-LSTM (forward / backward direction), gate order i,f,g,o
        'enc_fw_wih': nrm(ks[0], (5, 4 * enc_hidden), 0.1),
        'enc_fw_whh': nrm(ks[1], (enc_hidden, 4 * enc_hidden), 0.1),
        'enc_fw_b':   jnp.zeros((1, 4 * enc_hidden), F32),
        'enc_bw_wih': nrm(ks[2], (5, 4 * enc_hidden), 0.1),
        'enc_bw_whh': nrm(ks[3], (enc_hidden, 4 * enc_hidden), 0.1),
        'enc_bw_b':   jnp.zeros((1, 4 * enc_hidden), F32),
        # encoder output: Linear(2*enc_hidden, 2*z_size), weight ~ N(0, 0.001)
        'enc_out_w':  nrm(ks[4], (2 * enc_hidden, 2 * z_size), 0.001),
        'enc_out_b':  jnp.zeros((1, 2 * z_size), F32),
        # init: Linear(z_size, 2*dec_hidden), weight ~ N(0, 0.001)
        'init_w':     nrm(ks[5], (z_size, 2 * dec_hidden), 0.001),
        'init_b':     jnp.zeros((1, 2 * dec_hidden), F32),
        # decoder LSTM cell over inputs of size 5 + z_size
        'dec_wih':    nrm(ks[6], (5 + z_size, 4 * dec_hidden), 0.1),
        'dec_whh':    nrm(ks[7], (dec_hidden, 4 * dec_hidden), 0.1),
        'dec_b':      jnp.zeros((1, 4 * dec_hidden), F32),
        # ParameterLayer: Linear(dec_hidden, 6*k + 3)
        'out_w':      nrm(ks[8], (dec_hidden, 6 * num_mixture + 3), 0.1),
        'out_b':      jnp.zeros((1, 6 * num_mixture + 3), F32),
    }


def prepare_params(params):
    """One-time host-side repack:
       * permute gate columns i,f,g,o -> i,f,o,g,
       * fuse fw/bw encoder weights (block-diag W_hh),
       * split decoder W_ih into x / z parts, pad output head to 128 lanes,
       * pack all matmul weights into ONE bf16 buffer and all biases into ONE
         f32 buffer (fewer, larger input DMAs)."""
    He = params['enc_fw_whh'].shape[0]
    Hd = params['dec_whh'].shape[0]
    Z = params['init_w'].shape[0]
    out_dim = params['out_w'].shape[1]
    out_pad = _round_up(out_dim, 128)

    pe = _gate_perm(He)
    pd = _gate_perm(Hd)

    enc_fw_wih = params['enc_fw_wih'][:, pe]
    enc_bw_wih = params['enc_bw_wih'][:, pe]
    enc_fw_whh = params['enc_fw_whh'][:, pe]
    enc_bw_whh = params['enc_bw_whh'][:, pe]
    enc_fw_b = params['enc_fw_b'][:, pe]
    enc_bw_b = params['enc_bw_b'][:, pe]

    zblk = jnp.zeros((He, 4 * He), F32)
    enc_whh_bd = jnp.concatenate([
        jnp.concatenate([enc_fw_whh, zblk], axis=1),
        jnp.concatenate([zblk, enc_bw_whh], axis=1)], axis=0)       # (2He, 8He)
    enc_wih = jnp.concatenate([enc_fw_wih, enc_bw_wih], axis=1)     # (5, 8He)
    enc_b = jnp.concatenate([enc_fw_b, enc_bw_b], axis=1)           # (1, 8He)

    dec_wih = params['dec_wih'][:, pd]
    dec_wx, dec_wz = dec_wih[:5], dec_wih[5:]
    dec_whh = params['dec_whh'][:, pd]
    dec_b = params['dec_b'][:, pd]

    out_w = jnp.zeros((Hd, out_pad), F32).at[:, :out_dim].set(params['out_w'])
    out_b = jnp.zeros((1, out_pad), F32).at[:, :out_dim].set(params['out_b'])

    wl, rows, wcols = _packed_layout(He, Hd, Z, out_pad)
    mats = [enc_wih, enc_whh_bd, params['enc_out_w'], params['init_w'],
            dec_wx, dec_wz, dec_whh, out_w]
    w_packed = jnp.zeros((rows, wcols), F32)
    for (r, c, off), m in zip(wl, mats):
        assert m.shape == (r, c)
        w_packed = w_packed.at[:r, off:off + c].set(m)

    bl, bcols = _bias_layout(He, Hd, Z, out_pad)
    biases = [enc_b, params['enc_out_b'], params['init_b'], dec_b, out_b]
    b_packed = jnp.zeros((1, bcols), F32)
    for (c, off), m in zip(bl, biases):
        assert m.shape == (1, c)
        b_packed = b_packed.at[:, off:off + c].set(m)

    return {'w': w_packed.astype(BF16), 'b': b_packed}


# ----------------------------------------------------------------------------
# SketchRNN forward
# ----------------------------------------------------------------------------

def sketch_rnn_forward(fused, data, eps, *, max_len, z_size, num_mixture,
                       enc_hidden, dec_hidden):
    """Equivalent of SketchRNN.forward(data, lengths=None).

    data: (B, >=max_len+1, 5) f32; eps: (B, z_size) standard-normal draw
    (stands in for torch.randn_like in the reparameterization).
    """
    # TODO(synk): pack_padded_sequence variable-length path (lengths != None)
    # is not implemented; this covers lengths=None.
    B = data.shape[0]
    T = max_len
    He, Hd, Z, k = enc_hidden, dec_hidden, z_size, num_mixture
    out_dim = 6 * k + 3
    out_pad = _round_up(out_dim, 128)

    # batch padding / tiling: one kernel instance per TILE_B batch rows;
    # large batches tile across the grid (and across TCs on v7x).
    if B <= 128:
        TB = Bp = _round_up(B, 8)
    else:
        TB = 128
        Bp = _round_up(B, TB)
    if Bp != B:
        data = jnp.pad(data, ((0, Bp - B), (0, 0), (0, 0)))
        eps = jnp.pad(eps, ((0, Bp - B), (0, 0)))
    n_tiles = Bp // TB

    # time-major 3-D layout so the batch grid can tile the second axis
    enc_in = jnp.transpose(data[:, 1:T + 1, :], (1, 0, 2))      # (T, Bp, 5)
    dec_in = jnp.transpose(data[:, :T, :], (1, 0, 2))           # (T, Bp, 5)

    kernel = functools.partial(sketch_rnn_kernel, T=T, TB=TB, He=He, Hd=Hd,
                               Z=Z, out_pad=out_pad)

    grid_spec = pltpu.PrefetchScalarGridSpec(
        num_scalar_prefetch=0,
        grid=(n_tiles,),
        in_specs=[
            pl.BlockSpec((T, TB, 5), lambda b: (0, b, 0)),          # enc inputs
            pl.BlockSpec((T, TB, 5), lambda b: (0, b, 0)),          # dec inputs
            pl.BlockSpec((TB, Z), lambda b: (b, 0)),                # eps
            pl.BlockSpec(fused['w'].shape, lambda b: (0, 0)),       # packed weights
            pl.BlockSpec(fused['b'].shape, lambda b: (0, 0)),       # packed biases
        ],
        out_specs=[
            pl.BlockSpec((T, TB, out_pad), lambda b: (0, b, 0)),    # raw GMM logits
            pl.BlockSpec((TB, 2 * Z), lambda b: (b, 0)),            # [z_mean|z_logvar]
        ],
        scratch_shapes=[
            pltpu.VMEM((T * TB, 8 * He), F32),   # hoisted encoder pre-activations
            pltpu.VMEM((T * TB, 4 * Hd), F32),   # hoisted decoder pre-activations
            pltpu.VMEM((T * TB, Hd), F32),       # decoder hidden-state slab
            pltpu.VMEM((TB, 2 * He), F32),       # recurrent [h_fw | h_bw]
        ],
    )

    raw3d, zstat = pl.pallas_call(
        kernel,
        out_shape=(jax.ShapeDtypeStruct((T, Bp, out_pad), F32),
                   jax.ShapeDtypeStruct((Bp, 2 * Z), F32)),
        grid_spec=grid_spec,
        compiler_params=pltpu.CompilerParams(
            dimension_semantics=("parallel",)),
    )(enc_in, dec_in, eps, fused['w'], fused['b'])

    raw = raw3d.transpose(1, 0, 2)[:B, :, :out_dim]                 # (B, T, 6k+3)
    z_mean = zstat[:B, :Z]
    z_logvar = zstat[:B, Z:]

    # TODO(synk): ParameterLayer class body not provided; returning the raw GMM
    # parameter splits (pi, mu_x, mu_y, sigma_x, sigma_y, rho, pen logits)
    # without distribution-specific activations.
    pi, mu_x, mu_y, sig_x, sig_y, rho, pen = jnp.split(
        raw, [k, 2 * k, 3 * k, 4 * k, 5 * k, 6 * k], axis=-1)
    return (pi, mu_x, mu_y, sig_x, sig_y, rho, pen), z_mean, z_logvar


# ----------------------------------------------------------------------------
# main
# ----------------------------------------------------------------------------

if __name__ == "__main__":
    # small hps-equivalent config
    ENC_RNN_SIZE = 32
    DEC_RNN_SIZE = 32
    Z_SIZE = 8
    NUM_MIXTURE = 4
    MAX_SEQ_LEN = 8
    BATCH = 2

    key = jax.random.PRNGKey(0)
    k_param, k_data, k_eps = jax.random.split(key, 3)

    params = init_params(k_param, ENC_RNN_SIZE, DEC_RNN_SIZE, Z_SIZE, NUM_MIXTURE)
    fused = prepare_params(params)        # one-time weight repack / bf16 cast

    data = jax.random.normal(k_data, (BATCH, MAX_SEQ_LEN + 1, 5), F32)
    eps = jax.random.normal(k_eps, (BATCH, Z_SIZE), F32)

    fwd = jax.jit(functools.partial(
        sketch_rnn_forward, max_len=MAX_SEQ_LEN, z_size=Z_SIZE,
        num_mixture=NUM_MIXTURE, enc_hidden=ENC_RNN_SIZE, dec_hidden=DEC_RNN_SIZE))
    (gmm_params, z_mean, z_logvar) = fwd(fused, data, eps)
    jax.block_until_ready((gmm_params, z_mean, z_logvar))

    # sanity on shapes / values
    assert z_mean.shape == (BATCH, Z_SIZE)
    assert z_logvar.shape == (BATCH, Z_SIZE)
    assert gmm_params[0].shape == (BATCH, MAX_SEQ_LEN, NUM_MIXTURE)   # pi
    assert gmm_params[-1].shape == (BATCH, MAX_SEQ_LEN, 3)            # pen logits
    assert bool(jnp.all(jnp.isfinite(z_mean)))
    assert bool(jnp.all(jnp.isfinite(gmm_params[0])))

    print("KERNEL_OK")
</pallas_src>

<mosaic_0001>
module attributes {stable_mosaic.version = 11 : i64} {
  func.func @sketch_rnn_kernel(%arg0: i32, %arg1: memref<8x8x5xf32, #tpu.memory_space<vmem>>, %arg2: memref<8x8x5xf32, #tpu.memory_space<vmem>>, %arg3: memref<8x8xf32, #tpu.memory_space<vmem>>, %arg4: memref<64x1280xbf16, #tpu.memory_space<vmem>>, %arg5: memref<1x768xf32, #tpu.memory_space<vmem>>, %arg6: memref<8x8x128xf32, #tpu.memory_space<vmem>>, %arg7: memref<8x16xf32, #tpu.memory_space<vmem>>, %arg8: memref<64x256xf32, #tpu.memory_space<vmem>>, %arg9: memref<64x128xf32, #tpu.memory_space<vmem>>, %arg10: memref<64x32xf32, #tpu.memory_space<vmem>>, %arg11: memref<8x64xf32, #tpu.memory_space<vmem>>) attributes {dimension_semantics = [#tpu.dimension_semantics<parallel>], iteration_bounds = array<i64: 1>, scalar_prefetch = 0 : i64, scratch_operands = 4 : i64, tpu.core_type = #tpu.core_type<tc>, window_params = [{transform_indices = @transform_0, window_bounds = array<i64: 8, 8, 5>}, {transform_indices = @transform_1, window_bounds = array<i64: 8, 8, 5>}, {transform_indices = @transform_2, window_bounds = array<i64: 8, 8>}, {pipeline_mode = #tpu.pipeline_mode<synchronous>, transform_indices = @transform_3, window_bounds = array<i64: 64, 1280>}, {pipeline_mode = #tpu.pipeline_mode<synchronous>, transform_indices = @transform_4, window_bounds = array<i64: 1, 768>}, {transform_indices = @transform_5, window_bounds = array<i64: 8, 8, 128>}, {transform_indices = @transform_6, window_bounds = array<i64: 8, 16>}]} {
    %c0 = arith.constant 0 : index
    %c0_0 = arith.constant 0 : index
    %c0_1 = arith.constant 0 : index
    %0 = vector.load %arg1[%c0, %c0_0, %c0_1] : memref<8x8x5xf32, #tpu.memory_space<vmem>>, vector<8x8x5xf32>
    %1 = vector.shape_cast %0 : vector<8x8x5xf32> to vector<64x5xf32>
    %2 = arith.truncf %1 : vector<64x5xf32> to vector<64x5xbf16>
    %c0_2 = arith.constant 0 : index
    %c0_3 = arith.constant 0 : index
    %3 = vector.load %arg4[%c0_2, %c0_3] : memref<64x1280xbf16, #tpu.memory_space<vmem>>, vector<5x256xbf16>
    %cst = arith.constant dense<0.000000e+00> : vector<64x256xf32>
    %4 = tpu.matmul %2, %3, %cst {dimension_numbers = #tpu.dot_dimension_numbers<[1], [0], [0], [1], [0, 0, 1, 1], [], []>} : vector<64x5xbf16>, vector<5x256xbf16>, vector<64x256xf32> -> vector<64x256xf32>
    %c0_4 = arith.constant 0 : index
    %c0_5 = arith.constant 0 : index
    %5 = vector.load %arg5[%c0_4, %c0_5] : memref<1x768xf32, #tpu.memory_space<vmem>>, vector<1x256xf32>
    %6 = vector.broadcast %5 : vector<1x256xf32> to vector<64x256xf32>
    %7 = arith.addf %4, %6 : vector<64x256xf32>
    %c0_6 = arith.constant 0 : index
    %c0_7 = arith.constant 0 : index
    %8 = vector.load %arg8[%c0_6, %c0_7] : memref<64x256xf32, #tpu.memory_space<vmem>>, vector<64x256xf32>
    tpu.vector_store %arg8[%c0_6, %c0_7], %7 {strides = array<i32>} : memref<64x256xf32, #tpu.memory_space<vmem>>, vector<64x256xf32>,
    %cst_8 = arith.constant 0.000000e+00 : f32
    %9 = vector.broadcast %cst_8 : f32 to vector<8x64xf32>
    %c0_9 = arith.constant 0 : index
    %c0_10 = arith.constant 0 : index
    %10 = vector.load %arg11[%c0_9, %c0_10] : memref<8x64xf32, #tpu.memory_space<vmem>>, vector<8x64xf32>
    tpu.vector_store %arg11[%c0_9, %c0_10], %9 {strides = array<i32>} : memref<8x64xf32, #tpu.memory_space<vmem>>, vector<8x64xf32>,
    %cst_11 = arith.constant 0.000000e+00 : f32
    %11 = vector.broadcast %cst_11 : f32 to vector<8x32xf32>
    %cst_12 = arith.constant 0.000000e+00 : f32
    %12 = vector.broadcast %cst_12 : f32 to vector<8x32xf32>
    %c0_13 = arith.constant 0 : index
    %c0_14 = arith.constant 0 : index
    %13 = vector.load %arg11[%c0_13, %c0_14] : memref<8x64xf32, #tpu.memory_space<vmem>>, vector<8x64xf32>
    %14 = arith.truncf %13 : vector<8x64xf32> to vector<8x64xbf16>
    %c0_15 = arith.constant 0 : index
    %c256 = arith.constant 256 : index
    %15 = vector.load %arg4[%c0_15, %c256] : memref<64x1280xbf16, #tpu.memory_space<vmem>>, vector<64x256xbf16>
    %cst_16 = arith.constant dense<0.000000e+00> : vector<8x256xf32>
    %16 = tpu.matmul %14, %15, %cst_16 {dimension_numbers = #tpu.dot_dimension_numbers<[1], [0], [0], [1], [0, 0, 1, 1], [], []>} : vector<8x64xbf16>, vector<64x256xbf16>, vector<8x256xf32> -> vector<8x256xf32>
    %17 = vector.extract_strided_slice %16 {offsets = [0, 0], sizes = [8, 128], strides = [1, 1]} : vector<8x256xf32> to vector<8x128xf32>
    %c0_17 = arith.constant 0 : index
    %c0_18 = arith.constant 0 : index
    %18 = vector.load %arg8[%c0_17, %c0_18] : memref<64x256xf32, #tpu.memory_space<vmem>>, vector<8x128xf32>
    %19 = arith.addf %17, %18 : vector<8x128xf32>
    %20 = vector.extract_strided_slice %16 {offsets = [0, 128], sizes = [8, 128], strides = [1, 1]} : vector<8x256xf32> to vector<8x128xf32>
    %c56 = arith.constant 56 : index
    %c128 = arith.constant 128 : index
    %21 = vector.load %arg8[%c56, %c128] : memref<64x256xf32, #tpu.memory_space<vmem>>, vector<8x128xf32>
    %22 = arith.addf %20, %21 : vector<8x128xf32>
    %23 = vector.extract_strided_slice %19 {offsets = [0, 0], sizes = [8, 96], strides = [1, 1]} : vector<8x128xf32> to vector<8x96xf32>
    %cst_19 = arith.constant 5.000000e-01 : f32
    %24 = vector.broadcast %cst_19 : f32 to vector<8x96xf32>
    %25 = arith.mulf %24, %23 : vector<8x96xf32>
    %26 = math.tanh %25 : vector<8x96xf32>
    %cst_20 = arith.constant 5.000000e-01 : f32
    %27 = vector.broadcast %cst_20 : f32 to vector<8x96xf32>
    %28 = arith.mulf %27, %26 : vector<8x96xf32>
    %cst_21 = arith.constant 5.000000e-01 : f32
    %29 = vector.broadcast %cst_21 : f32 to vector<8x96xf32>
    %30 = arith.addf %28, %29 : vector<8x96xf32>
    %31 = vector.extract_strided_slice %19 {offsets = [0, 96], sizes = [8, 32], strides = [1, 1]} : vector<8x128xf32> to vector<8x32xf32>
    %32 = math.tanh %31 : vector<8x32xf32>
    %33 = vector.extract_strided_slice %30 {offsets = [0, 0], sizes = [8, 32], strides = [1, 1]} : vector<8x96xf32> to vector<8x32xf32>
    %34 = vector.extract_strided_slice %30 {offsets = [0, 32], sizes = [8, 32], strides = [1, 1]} : vector<8x96xf32> to vector<8x32xf32>
    %35 = vector.extract_strided_slice %30 {offsets = [0, 64], sizes = [8, 32], strides = [1, 1]} : vector<8x96xf32> to vector<8x32xf32>
    %36 = arith.mulf %34, %11 : vector<8x32xf32>
    %37 = arith.mulf %33, %32 : vector<8x32xf32>
    %38 = arith.addf %36, %37 : vector<8x32xf32>
    %39 = math.tanh %38 : vector<8x32xf32>
    %40 = arith.mulf %35, %39 : vector<8x32xf32>
    %41 = vector.extract_strided_slice %22 {offsets = [0, 0], sizes = [8, 96], strides = [1, 1]} : vector<8x128xf32> to vector<8x96xf32>
    %cst_22 = arith.constant 5.000000e-01 : f32
    %42 = vector.broadcast %cst_22 : f32 to vector<8x96xf32>
    %43 = arith.mulf %42, %41 : vector<8x96xf32>
    %44 = math.tanh %43 : vector<8x96xf32>
    %cst_23 = arith.constant 5.000000e-01 : f32
    %45 = vector.broadcast %cst_23 : f32 to vector<8x96xf32>
    %46 = arith.mulf %45, %44 : vector<8x96xf32>
    %cst_24 = arith.constant 5.000000e-01 : f32
    %47 = vector.broadcast %cst_24 : f32 to vector<8x96xf32>
    %48 = arith.addf %46, %47 : vector<8x96xf32>
    %49 = vector.extract_strided_slice %22 {offsets = [0, 96], sizes = [8, 32], strides = [1, 1]} : vector<8x128xf32> to vector<8x32xf32>
    %50 = math.tanh %49 : vector<8x32xf32>
    %51 = vector.extract_strided_slice %48 {offsets = [0, 0], sizes = [8, 32], strides = [1, 1]} : vector<8x96xf32> to vector<8x32xf32>
    %52 = vector.extract_strided_slice %48 {offsets = [0, 32], sizes = [8, 32], strides = [1, 1]} : vector<8x96xf32> to vector<8x32xf32>
    %53 = vector.extract_strided_slice %48 {offsets = [0, 64], sizes = [8, 32], strides = [1, 1]} : vector<8x96xf32> to vector<8x32xf32>
    %54 = arith.mulf %52, %12 : vector<8x32xf32>
    %55 = arith.mulf %51, %50 : vector<8x32xf32>
    %56 = arith.addf %54, %55 : vector<8x32xf32>
    %57 = math.tanh %56 : vector<8x32xf32>
    %58 = arith.mulf %53, %57 : vector<8x32xf32>
    %c0_25 = arith.constant 0 : index
    %c0_26 = arith.constant 0 : index
    %59 = vector.load %arg11[%c0_25, %c0_26] : memref<8x64xf32, #tpu.memory_space<vmem>>, vector<8x32xf32>
    tpu.vector_store %arg11[%c0_25, %c0_26], %40 {strides = array<i32>} : memref<8x64xf32, #tpu.memory_space<vmem>>, vector<8x32xf32>,
    %c0_27 = arith.constant 0 : index
    %c32 = arith.constant 32 : index
    %60 = vector.load %arg11[%c0_27, %c32] : memref<8x64xf32, #tpu.memory_space<vmem>>, vector<8x32xf32>
    tpu.vector_store %arg11[%c0_27, %c32], %58 {strides = array<i32>} : memref<8x64xf32, #tpu.memory_space<vmem>>, vector<8x32xf32>,
    %c0_28 = arith.constant 0 : index
    %c0_29 = arith.constant 0 : index
    %61 = vector.load %arg11[%c0_28, %c0_29] : memref<8x64xf32, #tpu.memory_space<vmem>>, vector<8x64xf32>
    %62 = arith.truncf %61 : vector<8x64xf32> to vector<8x64xbf16>
    %c0_30 = arith.constant 0 : index
    %c256_31 = arith.constant 256 : index
    %63 = vector.load %arg4[%c0_30, %c256_31] : memref<64x1280xbf16, #tpu.memory_space<vmem>>, vector<64x256xbf16>
    %cst_32 = arith.constant dense<0.000000e+00> : vector<8x256xf32>
    %64 = tpu.matmul %62, %63, %cst_32 {dimension_numbers = #tpu.dot_dimension_numbers<[1], [0], [0], [1], [0, 0, 1, 1], [], []>} : vector<8x64xbf16>, vector<64x256xbf16>, vector<8x256xf32> -> vector<8x256xf32>
    %65 = vector.extract_strided_slice %64 {offsets = [0, 0], sizes = [8, 128], strides = [1, 1]} : vector<8x256xf32> to vector<8x128xf32>
    %c8 = arith.constant 8 : index
    %c0_33 = arith.constant 0 : index
    %66 = vector.load %arg8[%c8, %c0_33] : memref<64x256xf32, #tpu.memory_space<vmem>>, vector<8x128xf32>
    %67 = arith.addf %65, %66 : vector<8x128xf32>
    %68 = vector.extract_strided_slice %64 {offsets = [0, 128], sizes = [8, 128], strides = [1, 1]} : vector<8x256xf32> to vector<8x128xf32>
    %c48 = arith.constant 48 : index
    %c128_34 = arith.constant 128 : index
    %69 = vector.load %arg8[%c48, %c128_34] : memref<64x256xf32, #tpu.memory_space<vmem>>, vector<8x128xf32>
    %70 = arith.addf %68, %69 : vector<8x128xf32>
    %71 = vector.extract_strided_slice %67 {offsets = [0, 0], sizes = [8, 96], strides = [1, 1]} : vector<8x128xf32> to vector<8x96xf32>
    %cst_35 = arith.constant 5.000000e-01 : f32
    %72 = vector.broadcast %cst_35 : f32 to vector<8x96xf32>
    %73 = arith.mulf %72, %71 : vector<8x96xf32>
    %74 = math.tanh %73 : vector<8x96xf32>
    %cst_36 = arith.constant 5.000000e-01 : f32
    %75 = vector.broadcast %cst_36 : f32 to vector<8x96xf32>
    %76 = arith.mulf %75, %74 : vector<8x96xf32>
    %cst_37 = arith.constant 5.000000e-01 : f32
    %77 = vector.broadcast %cst_37 : f32 to vector<8x96xf32>
    %78 = arith.addf %76, %77 : vector<8x96xf32>
    %79 = vector.extract_strided_slice %67 {offsets = [0, 96], sizes = [8, 32], strides = [1, 1]} : vector<8x128xf32> to vector<8x32xf32>
    %80 = math.tanh %79 : vector<8x32xf32>
    %81 = vector.extract_strided_slice %78 {offsets = [0, 0], sizes = [8, 32], strides = [1, 1]} : vector<8x96xf32> to vector<8x32xf32>
    %82 = vector.extract_strided_slice %78 {offsets = [0, 32], sizes = [8, 32], strides = [1, 1]} : vector<8x96xf32> to vector<8x32xf32>
    %83 = vector.extract_strided_slice %78 {offsets = [0, 64], sizes = [8, 32], strides = [1, 1]} : vector<8x96xf32> to vector<8x32xf32>
    %84 = arith.mulf %82, %38 : vector<8x32xf32>
    %85 = arith.mulf %81, %80 : vector<8x32xf32>
    %86 = arith.addf %84, %85 : vector<8x32xf32>
    %87 = math.tanh %86 : vector<8x32xf32>
    %88 = arith.mulf %83, %87 : vector<8x32xf32>
    %89 = vector.extract_strided_slice %70 {offsets = [0, 0], sizes = [8, 96], strides = [1, 1]} : vector<8x128xf32> to vector<8x96xf32>
    %cst_38 = arith.constant 5.000000e-01 : f32
    %90 = vector.broadcast %cst_38 : f32 to vector<8x96xf32>
    %91 = arith.mulf %90, %89 : vector<8x96xf32>
    %92 = math.tanh %91 : vector<8x96xf32>
    %cst_39 = arith.constant 5.000000e-01 : f32
    %93 = vector.broadcast %cst_39 : f32 to vector<8x96xf32>
    %94 = arith.mulf %93, %92 : vector<8x96xf32>
    %cst_40 = arith.constant 5.000000e-01 : f32
    %95 = vector.broadcast %cst_40 : f32 to vector<8x96xf32>
    %96 = arith.addf %94, %95 : vector<8x96xf32>
    %97 = vector.extract_strided_slice %70 {offsets = [0, 96], sizes = [8, 32], strides = [1, 1]} : vector<8x128xf32> to vector<8x32xf32>
    %98 = math.tanh %97 : vector<8x32xf32>
    %99 = vector.extract_strided_slice %96 {offsets = [0, 0], sizes = [8, 32], strides = [1, 1]} : vector<8x96xf32> to vector<8x32xf32>
    %100 = vector.extract_strided_slice %96 {offsets = [0, 32], sizes = [8, 32], strides = [1, 1]} : vector<8x96xf32> to vector<8x32xf32>
    %101 = vector.extract_strided_slice %96 {offsets = [0, 64], sizes = [8, 32], strides = [1, 1]} : vector<8x96xf32> to vector<8x32xf32>
    %102 = arith.mulf %100, %56 : vector<8x32xf32>
    %103 = arith.mulf %99, %98 : vector<8x32xf32>
    %104 = arith.addf %102, %103 : vector<8x32xf32>
    %105 = math.tanh %104 : vector<8x32xf32>
    %106 = arith.mulf %101, %105 : vector<8x32xf32>
    %c0_41 = arith.constant 0 : index
    %c0_42 = arith.constant 0 : index
    %107 = vector.load %arg11[%c0_41, %c0_42] : memref<8x64xf32, #tpu.memory_space<vmem>>, vector<8x32xf32>
    tpu.vector_store %arg11[%c0_41, %c0_42], %88 {strides = array<i32>} : memref<8x64xf32, #tpu.memory_space<vmem>>, vector<8x32xf32>,
    %c0_43 = arith.constant 0 : index
    %c32_44 = arith.constant 32 : index
    %108 = vector.load %arg11[%c0_43, %c32_44] : memref<8x64xf32, #tpu.memory_space<vmem>>, vector<8x32xf32>
    tpu.vector_store %arg11[%c0_43, %c32_44], %106 {strides = array<i32>} : memref<8x64xf32, #tpu.memory_space<vmem>>, vector<8x32xf32>,
    %c0_45 = arith.constant 0 : index
    %c0_46 = arith.constant 0 : index
    %109 = vector.load %arg11[%c0_45, %c0_46] : memref<8x64xf32, #tpu.memory_space<vmem>>, vector<8x64xf32>
    %110 = arith.truncf %109 : vector<8x64xf32> to vector<8x64xbf16>
    %c0_47 = arith.constant 0 : index
    %c256_48 = arith.constant 256 : index
    %111 = vector.load %arg4[%c0_47, %c256_48] : memref<64x1280xbf16, #tpu.memory_space<vmem>>, vector<64x256xbf16>
    %cst_49 = arith.constant dense<0.000000e+00> : vector<8x256xf32>
    %112 = tpu.matmul %110, %111, %cst_49 {dimension_numbers = #tpu.dot_dimension_numbers<[1], [0], [0], [1], [0, 0, 1, 1], [], []>} : vector<8x64xbf16>, vector<64x256xbf16>, vector<8x256xf32> -> vector<8x256xf32>
    %113 = vector.extract_strided_slice %112 {offsets = [0, 0], sizes = [8, 128], strides = [1, 1]} : vector<8x256xf32> to vector<8x128xf32>
    %c16 = arith.constant 16 : index
    %c0_50 = arith.constant 0 : index
    %114 = vector.load %arg8[%c16, %c0_50] : memref<64x256xf32, #tpu.memory_space<vmem>>, vector<8x128xf32>
    %115 = arith.addf %113, %114 : vector<8x128xf32>
    %116 = vector.extract_strided_slice %112 {offsets = [0, 128], sizes = [8, 128], strides = [1, 1]} : vector<8x256xf32> to vector<8x128xf32>
    %c40 = arith.constant 40 : index
    %c128_51 = arith.constant 128 : index
    %117 = vector.load %arg8[%c40, %c128_51] : memref<64x256xf32, #tpu.memory_space<vmem>>, vector<8x128xf32>
    %118 = arith.addf %116, %117 : vector<8x128xf32>
    %119 = vector.extract_strided_slice %115 {offsets = [0, 0], sizes = [8, 96], strides = [1, 1]} : vector<8x128xf32> to vector<8x96xf32>
    %cst_52 = arith.constant 5.000000e-01 : f32
    %120 = vector.broadcast %cst_52 : f32 to vector<8x96xf32>
    %121 = arith.mulf %120, %119 : vector<8x96xf32>
    %122 = math.tanh %121 : vector<8x96xf32>
    %cst_53 = arith.constant 5.000000e-01 : f32
    %123 = vector.broadcast %cst_53 : f32 to vector<8x96xf32>
    %124 = arith.mulf %123, %122 : vector<8x96xf32>
    %cst_54 = arith.constant 5.000000e-01 : f32
    %125 = vector.broadcast %cst_54 : f32 to vector<8x96xf32>
    %126 = arith.addf %124, %125 : vector<8x96xf32>
    %127 = vector.extract_strided_slice %115 {offsets = [0, 96], sizes = [8, 32], strides = [1, 1]} : vector<8x128xf32> to vector<8x32xf32>
    %128 = math.tanh %127 : vector<8x32xf32>
    %129 = vector.extract_strided_slice %126 {offsets = [0, 0], sizes = [8, 32], strides = [1, 1]} : vector<8x96xf32> to vector<8x32xf32>
    %130 = vector.extract_strided_slice %126 {offsets = [0, 32], sizes = [8, 32], strides = [1, 1]} : vector<8x96xf32> to vector<8x32xf32>
    %131 = vector.extract_strided_slice %126 {offsets = [0, 64], sizes = [8, 32], strides = [1, 1]} : vector<8x96xf32> to vector<8x32xf32>
    %132 = arith.mulf %130, %86 : vector<8x32xf32>
    %133 = arith.mulf %129, %128 : vector<8x32xf32>
    %134 = arith.addf %132, %133 : vector<8x32xf32>
    %135 = math.tanh %134 : vector<8x32xf32>
    %136 = arith.mulf %131, %135 : vector<8x32xf32>
    %137 = vector.extract_strided_slice %118 {offsets = [0, 0], sizes = [8, 96], strides = [1, 1]} : vector<8x128xf32> to vector<8x96xf32>
    %cst_55 = arith.constant 5.000000e-01 : f32
    %138 = vector.broadcast %cst_55 : f32 to vector<8x96xf32>
    %139 = arith.mulf %138, %137 : vector<8x96xf32>
    %140 = math.tanh %139 : vector<8x96xf32>
    %cst_56 = arith.constant 5.000000e-01 : f32
    %141 = vector.broadcast %cst_56 : f32 to vector<8x96xf32>
    %142 = arith.mulf %141, %140 : vector<8x96xf32>
    %cst_57 = arith.constant 5.000000e-01 : f32
    %143 = vector.broadcast %cst_57 : f32 to vector<8x96xf32>
    %144 = arith.addf %142, %143 : vector<8x96xf32>
    %145 = vector.extract_strided_slice %118 {offsets = [0, 96], sizes = [8, 32], strides = [1, 1]} : vector<8x128xf32> to vector<8x32xf32>
    %146 = math.tanh %145 : vector<8x32xf32>
    %147 = vector.extract_strided_slice %144 {offsets = [0, 0], sizes = [8, 32], strides = [1, 1]} : vector<8x96xf32> to vector<8x32xf32>
    %148 = vector.extract_strided_slice %144 {offsets = [0, 32], sizes = [8, 32], strides = [1, 1]} : vector<8x96xf32> to vector<8x32xf32>
    %149 = vector.extract_strided_slice %144 {offsets = [0, 64], sizes = [8, 32], strides = [1, 1]} : vector<8x96xf32> to vector<8x32xf32>
    %150 = arith.mulf %148, %104 : vector<8x32xf32>
    %151 = arith.mulf %147, %146 : vector<8x32xf32>
    %152 = arith.addf %150, %151 : vector<8x32xf32>
    %153 = math.tanh %152 : vector<8x32xf32>
    %154 = arith.mulf %149, %153 : vector<8x32xf32>
    %c0_58 = arith.constant 0 : index
    %c0_59 = arith.constant 0 : index
    %155 = vector.load %arg11[%c0_58, %c0_59] : memref<8x64xf32, #tpu.memory_space<vmem>>, vector<8x32xf32>
    tpu.vector_store %arg11[%c0_58, %c0_59], %136 {strides = array<i32>} : memref<8x64xf32, #tpu.memory_space<vmem>>, vector<8x32xf32>,
    %c0_60 = arith.constant 0 : index
    %c32_61 = arith.constant 32 : index
    %156 = vector.load %arg11[%c0_60, %c32_61] : memref<8x64xf32, #tpu.memory_space<vmem>>, vector<8x32xf32>
    tpu.vector_store %arg11[%c0_60, %c32_61], %154 {strides = array<i32>} : memref<8x64xf32, #tpu.memory_space<vmem>>, vector<8x32xf32>,
    %c0_62 = arith.constant 0 : index
    %c0_63 = arith.constant 0 : index
    %157 = vector.load %arg11[%c0_62, %c0_63] : memref<8x64xf32, #tpu.memory_space<vmem>>, vector<8x64xf32>
    %158 = arith.truncf %157 : vector<8x64xf32> to vector<8x64xbf16>
    %c0_64 = arith.constant 0 : index
    %c256_65 = arith.constant 256 : index
    %159 = vector.load %arg4[%c0_64, %c256_65] : memref<64x1280xbf16, #tpu.memory_space<vmem>>, vector<64x256xbf16>
    %cst_66 = arith.constant dense<0.000000e+00> : vector<8x256xf32>
    %160 = tpu.matmul %158, %159, %cst_66 {dimension_numbers = #tpu.dot_dimension_numbers<[1], [0], [0], [1], [0, 0, 1, 1], [], []>} : vector<8x64xbf16>, vector<64x256xbf16>, vector<8x256xf32> -> vector<8x256xf32>
    %161 = vector.extract_strided_slice %160 {offsets = [0, 0], sizes = [8, 128], strides = [1, 1]} : vector<8x256xf32> to vector<8x128xf32>
    %c24 = arith.constant 24 : index
    %c0_67 = arith.constant 0 : index
    %162 = vector.load %arg8[%c24, %c0_67] : memref<64x256xf32, #tpu.memory_space<vmem>>, vector<8x128xf32>
    %163 = arith.addf %161, %162 : vector<8x128xf32>
    %164 = vector.extract_strided_slice %160 {offsets = [0, 128], sizes = [8, 128], strides = [1, 1]} : vector<8x256xf32> to vector<8x128xf32>
    %c32_68 = arith.constant 32 : index
    %c128_69 = arith.constant 128 : index
    %165 = vector.load %arg8[%c32_68, %c128_69] : memref<64x256xf32, #tpu.memory_space<vmem>>, vector<8x128xf32>
    %166 = arith.addf %164, %165 : vector<8x128xf32>
    %167 = vector.extract_strided_slice %163 {offsets = [0, 0], sizes = [8, 96], strides = [1, 1]} : vector<8x128xf32> to vector<8x96xf32>
    %cst_70 = arith.constant 5.000000e-01 : f32
    %168 = vector.broadcast %cst_70 : f32 to vector<8x96xf32>
    %169 = arith.mulf %168, %167 : vector<8x96xf32>
    %170 = math.tanh %169 : vector<8x96xf32>
    %cst_71 = arith.constant 5.000000e-01 : f32
    %171 = vector.broadcast %cst_71 : f32 to vector<8x96xf32>
    %172 = arith.mulf %171, %170 : vector<8x96xf32>
    %cst_72 = arith.constant 5.000000e-01 : f32
    %173 = vector.broadcast %cst_72 : f32 to vector<8x96xf32>
    %174 = arith.addf %172, %173 : vector<8x96xf32>
    %175 = vector.extract_strided_slice %163 {offsets = [0, 96], sizes = [8, 32], strides = [1, 1]} : vector<8x128xf32> to vector<8x32xf32>
    %176 = math.tanh %175 : vector<8x32xf32>
    %177 = vector.extract_strided_slice %174 {offsets = [0, 0], sizes = [8, 32], strides = [1, 1]} : vector<8x96xf32> to vector<8x32xf32>
    %178 = vector.extract_strided_slice %174 {offsets = [0, 32], sizes = [8, 32], strides = [1, 1]} : vector<8x96xf32> to vector<8x32xf32>
    %179 = vector.extract_strided_slice %174 {offsets = [0, 64], sizes = [8, 32], strides = [1, 1]} : vector<8x96xf32> to vector<8x32xf32>
    %180 = arith.mulf %178, %134 : vector<8x32xf32>
    %181 = arith.mulf %177, %176 : vector<8x32xf32>
    %182 = arith.addf %180, %181 : vector<8x32xf32>
    %183 = math.tanh %182 : vector<8x32xf32>
    %184 = arith.mulf %179, %183 : vector<8x32xf32>
    %185 = vector.extract_strided_slice %166 {offsets = [0, 0], sizes = [8, 96], strides = [1, 1]} : vector<8x128xf32> to vector<8x96xf32>
    %cst_73 = arith.constant 5.000000e-01 : f32
    %186 = vector.broadcast %cst_73 : f32 to vector<8x96xf32>
    %187 = arith.mulf %186, %185 : vector<8x96xf32>
    %188 = math.tanh %187 : vector<8x96xf32>
    %cst_74 = arith.constant 5.000000e-01 : f32
    %189 = vector.broadcast %cst_74 : f32 to vector<8x96xf32>
    %190 = arith.mulf %189, %188 : vector<8x96xf32>
    %cst_75 = arith.constant 5.000000e-01 : f32
    %191 = vector.broadcast %cst_75 : f32 to vector<8x96xf32>
    %192 = arith.addf %190, %191 : vector<8x96xf32>
    %193 = vector.extract_strided_slice %166 {offsets = [0, 96], sizes = [8, 32], strides = [1, 1]} : vector<8x128xf32> to vector<8x32xf32>
    %194 = math.tanh %193 : vector<8x32xf32>
    %195 = vector.extract_strided_slice %192 {offsets = [0, 0], sizes = [8, 32], strides = [1, 1]} : vector<8x96xf32> to vector<8x32xf32>
    %196 = vector.extract_strided_slice %192 {offsets = [0, 32], sizes = [8, 32], strides = [1, 1]} : vector<8x96xf32> to vector<8x32xf32>
    %197 = vector.extract_strided_slice %192 {offsets = [0, 64], sizes = [8, 32], strides = [1, 1]} : vector<8x96xf32> to vector<8x32xf32>
    %198 = arith.mulf %196, %152 : vector<8x32xf32>
    %199 = arith.mulf %195, %194 : vector<8x32xf32>
    %200 = arith.addf %198, %199 : vector<8x32xf32>
    %201 = math.tanh %200 : vector<8x32xf32>
    %202 = arith.mulf %197, %201 : vector<8x32xf32>
    %c0_76 = arith.constant 0 : index
    %c0_77 = arith.constant 0 : index
    %203 = vector.load %arg11[%c0_76, %c0_77] : memref<8x64xf32, #tpu.memory_space<vmem>>, vector<8x32xf32>
    tpu.vector_store %arg11[%c0_76, %c0_77], %184 {strides = array<i32>} : memref<8x64xf32, #tpu.memory_space<vmem>>, vector<8x32xf32>,
    %c0_78 = arith.constant 0 : index
    %c32_79 = arith.constant 32 : index
    %204 = vector.load %arg11[%c0_78, %c32_79] : memref<8x64xf32, #tpu.memory_space<vmem>>, vector<8x32xf32>
    tpu.vector_store %arg11[%c0_78, %c32_79], %202 {strides = array<i32>} : memref<8x64xf32, #tpu.memory_space<vmem>>, vector<8x32xf32>,
    %c0_80 = arith.constant 0 : index
    %c0_81 = arith.constant 0 : index
    %205 = vector.load %arg11[%c0_80, %c0_81] : memref<8x64xf32, #tpu.memory_space<vmem>>, vector<8x64xf32>
    %206 = arith.truncf %205 : vector<8x64xf32> to vector<8x64xbf16>
    %c0_82 = arith.constant 0 : index
    %c256_83 = arith.constant 256 : index
    %207 = vector.load %arg4[%c0_82, %c256_83] : memref<64x1280xbf16, #tpu.memory_space<vmem>>, vector<64x256xbf16>
    %cst_84 = arith.constant dense<0.000000e+00> : vector<8x256xf32>
    %208 = tpu.matmul %206, %207, %cst_84 {dimension_numbers = #tpu.dot_dimension_numbers<[1], [0], [0], [1], [0, 0, 1, 1], [], []>} : vector<8x64xbf16>, vector<64x256xbf16>, vector<8x256xf32> -> vector<8x256xf32>
    %209 = vector.extract_strided_slice %208 {offsets = [0, 0], sizes = [8, 128], strides = [1, 1]} : vector<8x256xf32> to vector<8x128xf32>
    %c32_85 = arith.constant 32 : index
    %c0_86 = arith.constant 0 : index
    %210 = vector.load %arg8[%c32_85, %c0_86] : memref<64x256xf32, #tpu.memory_space<vmem>>, vector<8x128xf32>
    %211 = arith.addf %209, %210 : vector<8x128xf32>
    %212 = vector.extract_strided_slice %208 {offsets = [0, 128], sizes = [8, 128], strides = [1, 1]} : vector<8x256xf32> to vector<8x128xf32>
    %c24_87 = arith.constant 24 : index
    %c128_88 = arith.constant 128 : index
    %213 = vector.load %arg8[%c24_87, %c128_88] : memref<64x256xf32, #tpu.memory_space<vmem>>, vector<8x128xf32>
    %214 = arith.addf %212, %213 : vector<8x128xf32>
    %215 = vector.extract_strided_slice %211 {offsets = [0, 0], sizes = [8, 96], strides = [1, 1]} : vector<8x128xf32> to vector<8x96xf32>
    %cst_89 = arith.constant 5.000000e-01 : f32
    %216 = vector.broadcast %cst_89 : f32 to vector<8x96xf32>
    %217 = arith.mulf %216, %215 : vector<8x96xf32>
    %218 = math.tanh %217 : vector<8x96xf32>
    %cst_90 = arith.constant 5.000000e-01 : f32
    %219 = vector.broadcast %cst_90 : f32 to vector<8x96xf32>
    %220 = arith.mulf %219, %218 : vector<8x96xf32>
    %cst_91 = arith.constant 5.000000e-01 : f32
    %221 = vector.broadcast %cst_91 : f32 to vector<8x96xf32>
    %222 = arith.addf %220, %221 : vector<8x96xf32>
    %223 = vector.extract_strided_slice %211 {offsets = [0, 96], sizes = [8, 32], strides = [1, 1]} : vector<8x128xf32> to vector<8x32xf32>
    %224 = math.tanh %223 : vector<8x32xf32>
    %225 = vector.extract_strided_slice %222 {offsets = [0, 0], sizes = [8, 32], strides = [1, 1]} : vector<8x96xf32> to vector<8x32xf32>
    %226 = vector.extract_strided_slice %222 {offsets = [0, 32], sizes = [8, 32], strides = [1, 1]} : vector<8x96xf32> to vector<8x32xf32>
    %227 = vector.extract_strided_slice %222 {offsets = [0, 64], sizes = [8, 32], strides = [1, 1]} : vector<8x96xf32> to vector<8x32xf32>
    %228 = arith.mulf %226, %182 : vector<8x32xf32>
    %229 = arith.mulf %225, %224 : vector<8x32xf32>
    %230 = arith.addf %228, %229 : vector<8x32xf32>
    %231 = math.tanh %230 : vector<8x32xf32>
    %232 = arith.mulf %227, %231 : vector<8x32xf32>
    %233 = vector.extract_strided_slice %214 {offsets = [0, 0], sizes = [8, 96], strides = [1, 1]} : vector<8x128xf32> to vector<8x96xf32>
    %cst_92 = arith.constant 5.000000e-01 : f32
    %234 = vector.broadcast %cst_92 : f32 to vector<8x96xf32>
    %235 = arith.mulf %234, %233 : vector<8x96xf32>
    %236 = math.tanh %235 : vector<8x96xf32>
    %cst_93 = arith.constant 5.000000e-01 : f32
    %237 = vector.broadcast %cst_93 : f32 to vector<8x96xf32>
    %238 = arith.mulf %237, %236 : vector<8x96xf32>
    %cst_94 = arith.constant 5.000000e-01 : f32
    %239 = vector.broadcast %cst_94 : f32 to vector<8x96xf32>
    %240 = arith.addf %238, %239 : vector<8x96xf32>
    %241 = vector.extract_strided_slice %214 {offsets = [0, 96], sizes = [8, 32], strides = [1, 1]} : vector<8x128xf32> to vector<8x32xf32>
    %242 = math.tanh %241 : vector<8x32xf32>
    %243 = vector.extract_strided_slice %240 {offsets = [0, 0], sizes = [8, 32], strides = [1, 1]} : vector<8x96xf32> to vector<8x32xf32>
    %244 = vector.extract_strided_slice %240 {offsets = [0, 32], sizes = [8, 32], strides = [1, 1]} : vector<8x96xf32> to vector<8x32xf32>
    %245 = vector.extract_strided_slice %240 {offsets = [0, 64], sizes = [8, 32], strides = [1, 1]} : vector<8x96xf32> to vector<8x32xf32>
    %246 = arith.mulf %244, %200 : vector<8x32xf32>
    %247 = arith.mulf %243, %242 : vector<8x32xf32>
    %248 = arith.addf %246, %247 : vector<8x32xf32>
    %249 = math.tanh %248 : vector<8x32xf32>
    %250 = arith.mulf %245, %249 : vector<8x32xf32>
    %c0_95 = arith.constant 0 : index
    %c0_96 = arith.constant 0 : index
    %251 = vector.load %arg11[%c0_95, %c0_96] : memref<8x64xf32, #tpu.memory_space<vmem>>, vector<8x32xf32>
    tpu.vector_store %arg11[%c0_95, %c0_96], %232 {strides = array<i32>} : memref<8x64xf32, #tpu.memory_space<vmem>>, vector<8x32xf32>,
    %c0_97 = arith.constant 0 : index
    %c32_98 = arith.constant 32 : index
    %252 = vector.load %arg11[%c0_97, %c32_98] : memref<8x64xf32, #tpu.memory_space<vmem>>, vector<8x32xf32>
    tpu.vector_store %arg11[%c0_97, %c32_98], %250 {strides = array<i32>} : memref<8x64xf32, #tpu.memory_space<vmem>>, vector<8x32xf32>,
    %c0_99 = arith.constant 0 : index
    %c0_100 = arith.constant 0 : index
    %253 = vector.load %arg11[%c0_99, %c0_100] : memref<8x64xf32, #tpu.memory_space<vmem>>, vector<8x64xf32>
    %254 = arith.truncf %253 : vector<8x64xf32> to vector<8x64xbf16>
    %c0_101 = arith.constant 0 : index
    %c256_102 = arith.constant 256 : index
    %255 = vector.load %arg4[%c0_101, %c256_102] : memref<64x1280xbf16, #tpu.memory_space<vmem>>, vector<64x256xbf16>
    %cst_103 = arith.constant dense<0.000000e+00> : vector<8x256xf32>
    %256 = tpu.matmul %254, %255, %cst_103 {dimension_numbers = #tpu.dot_dimension_numbers<[1], [0], [0], [1], [0, 0, 1, 1], [], []>} : vector<8x64xbf16>, vector<64x256xbf16>, vector<8x256xf32> -> vector<8x256xf32>
    %257 = vector.extract_strided_slice %256 {offsets = [0, 0], sizes = [8, 128], strides = [1, 1]} : vector<8x256xf32> to vector<8x128xf32>
    %c40_104 = arith.constant 40 : index
    %c0_105 = arith.constant 0 : index
    %258 = vector.load %arg8[%c40_104, %c0_105] : memref<64x256xf32, #tpu.memory_space<vmem>>, vector<8x128xf32>
    %259 = arith.addf %257, %258 : vector<8x128xf32>
    %260 = vector.extract_strided_slice %256 {offsets = [0, 128], sizes = [8, 128], strides = [1, 1]} : vector<8x256xf32> to vector<8x128xf32>
    %c16_106 = arith.constant 16 : index
    %c128_107 = arith.constant 128 : index
    %261 = vector.load %arg8[%c16_106, %c128_107] : memref<64x256xf32, #tpu.memory_space<vmem>>, vector<8x128xf32>
    %262 = arith.addf %260, %261 : vector<8x128xf32>
    %263 = vector.extract_strided_slice %259 {offsets = [0, 0], sizes = [8, 96], strides = [1, 1]} : vector<8x128xf32> to vector<8x96xf32>
    %cst_108 = arith.constant 5.000000e-01 : f32
    %264 = vector.broadcast %cst_108 : f32 to vector<8x96xf32>
    %265 = arith.mulf %264, %263 : vector<8x96xf32>
    %266 = math.tanh %265 : vector<8x96xf32>
    %cst_109 = arith.constant 5.000000e-01 : f32
    %267 = vector.broadcast %cst_109 : f32 to vector<8x96xf32>
    %268 = arith.mulf %267, %266 : vector<8x96xf32>
    %cst_110 = arith.constant 5.000000e-01 : f32
    %269 = vector.broadcast %cst_110 : f32 to vector<8x96xf32>
    %270 = arith.addf %268, %269 : vector<8x96xf32>
    %271 = vector.extract_strided_slice %259 {offsets = [0, 96], sizes = [8, 32], strides = [1, 1]} : vector<8x128xf32> to vector<8x32xf32>
    %272 = math.tanh %271 : vector<8x32xf32>
    %273 = vector.extract_strided_slice %270 {offsets = [0, 0], sizes = [8, 32], strides = [1, 1]} : vector<8x96xf32> to vector<8x32xf32>
    %274 = vector.extract_strided_slice %270 {offsets = [0, 32], sizes = [8, 32], strides = [1, 1]} : vector<8x96xf32> to vector<8x32xf32>
    %275 = vector.extract_strided_slice %270 {offsets = [0, 64], sizes = [8, 32], strides = [1, 1]} : vector<8x96xf32> to vector<8x32xf32>
    %276 = arith.mulf %274, %230 : vector<8x32xf32>
    %277 = arith.mulf %273, %272 : vector<8x32xf32>
    %278 = arith.addf %276, %277 : vector<8x32xf32>
    %279 = math.tanh %278 : vector<8x32xf32>
    %280 = arith.mulf %275, %279 : vector<8x32xf32>
    %281 = vector.extract_strided_slice %262 {offsets = [0, 0], sizes = [8, 96], strides = [1, 1]} : vector<8x128xf32> to vector<8x96xf32>
    %cst_111 = arith.constant 5.000000e-01 : f32
    %282 = vector.broadcast %cst_111 : f32 to vector<8x96xf32>
    %283 = arith.mulf %282, %281 : vector<8x96xf32>
    %284 = math.tanh %283 : vector<8x96xf32>
    %cst_112 = arith.constant 5.000000e-01 : f32
    %285 = vector.broadcast %cst_112 : f32 to vector<8x96xf32>
    %286 = arith.mulf %285, %284 : vector<8x96xf32>
    %cst_113 = arith.constant 5.000000e-01 : f32
    %287 = vector.broadcast %cst_113 : f32 to vector<8x96xf32>
    %288 = arith.addf %286, %287 : vector<8x96xf32>
    %289 = vector.extract_strided_slice %262 {offsets = [0, 96], sizes = [8, 32], strides = [1, 1]} : vector<8x128xf32> to vector<8x32xf32>
    %290 = math.tanh %289 : vector<8x32xf32>
    %291 = vector.extract_strided_slice %288 {offsets = [0, 0], sizes = [8, 32], strides = [1, 1]} : vector<8x96xf32> to vector<8x32xf32>
    %292 = vector.extract_strided_slice %288 {offsets = [0, 32], sizes = [8, 32], strides = [1, 1]} : vector<8x96xf32> to vector<8x32xf32>
    %293 = vector.extract_strided_slice %288 {offsets = [0, 64], sizes = [8, 32], strides = [1, 1]} : vector<8x96xf32> to vector<8x32xf32>
    %294 = arith.mulf %292, %248 : vector<8x32xf32>
    %295 = arith.mulf %291, %290 : vector<8x32xf32>
    %296 = arith.addf %294, %295 : vector<8x32xf32>
    %297 = math.tanh %296 : vector<8x32xf32>
    %298 = arith.mulf %293, %297 : vector<8x32xf32>
    %c0_114 = arith.constant 0 : index
    %c0_115 = arith.constant 0 : index
    %299 = vector.load %arg11[%c0_114, %c0_115] : memref<8x64xf32, #tpu.memory_space<vmem>>, vector<8x32xf32>
    tpu.vector_store %arg11[%c0_114, %c0_115], %280 {strides = array<i32>} : memref<8x64xf32, #tpu.memory_space<vmem>>, vector<8x32xf32>,
    %c0_116 = arith.constant 0 : index
    %c32_117 = arith.constant 32 : index
    %300 = vector.load %arg11[%c0_116, %c32_117] : memref<8x64xf32, #tpu.memory_space<vmem>>, vector<8x32xf32>
    tpu.vector_store %arg11[%c0_116, %c32_117], %298 {strides = array<i32>} : memref<8x64xf32, #tpu.memory_space<vmem>>, vector<8x32xf32>,
    %c0_118 = arith.constant 0 : index
    %c0_119 = arith.constant 0 : index
    %301 = vector.load %arg11[%c0_118, %c0_119] : memref<8x64xf32, #tpu.memory_space<vmem>>, vector<8x64xf32>
    %302 = arith.truncf %301 : vector<8x64xf32> to vector<8x64xbf16>
    %c0_120 = arith.constant 0 : index
    %c256_121 = arith.constant 256 : index
    %303 = vector.load %arg4[%c0_120, %c256_121] : memref<64x1280xbf16, #tpu.memory_space<vmem>>, vector<64x256xbf16>
    %cst_122 = arith.constant dense<0.000000e+00> : vector<8x256xf32>
    %304 = tpu.matmul %302, %303, %cst_122 {dimension_numbers = #tpu.dot_dimension_numbers<[1], [0], [0], [1], [0, 0, 1, 1], [], []>} : vector<8x64xbf16>, vector<64x256xbf16>, vector<8x256xf32> -> vector<8x256xf32>
    %305 = vector.extract_strided_slice %304 {offsets = [0, 0], sizes = [8, 128], strides = [1, 1]} : vector<8x256xf32> to vector<8x128xf32>
    %c48_123 = arith.constant 48 : index
    %c0_124 = arith.constant 0 : index
    %306 = vector.load %arg8[%c48_123, %c0_124] : memref<64x256xf32, #tpu.memory_space<vmem>>, vector<8x128xf32>
    %307 = arith.addf %305, %306 : vector<8x128xf32>
    %308 = vector.extract_strided_slice %304 {offsets = [0, 128], sizes = [8, 128], strides = [1, 1]} : vector<8x256xf32> to vector<8x128xf32>
    %c8_125 = arith.constant 8 : index
    %c128_126 = arith.constant 128 : index
    %309 = vector.load %arg8[%c8_125, %c128_126] : memref<64x256xf32, #tpu.memory_space<vmem>>, vector<8x128xf32>
    %310 = arith.addf %308, %309 : vector<8x128xf32>
    %311 = vector.extract_strided_slice %307 {offsets = [0, 0], sizes = [8, 96], strides = [1, 1]} : vector<8x128xf32> to vector<8x96xf32>
    %cst_127 = arith.constant 5.000000e-01 : f32
    %312 = vector.broadcast %cst_127 : f32 to vector<8x96xf32>
    %313 = arith.mulf %312, %311 : vector<8x96xf32>
    %314 = math.tanh %313 : vector<8x96xf32>
    %cst_128 = arith.constant 5.000000e-01 : f32
    %315 = vector.broadcast %cst_128 : f32 to vector<8x96xf32>
    %316 = arith.mulf %315, %314 : vector<8x96xf32>
    %cst_129 = arith.constant 5.000000e-01 : f32
    %317 = vector.broadcast %cst_129 : f32 to vector<8x96xf32>
    %318 = arith.addf %316, %317 : vector<8x96xf32>
    %319 = vector.extract_strided_slice %307 {offsets = [0, 96], sizes = [8, 32], strides = [1, 1]} : vector<8x128xf32> to vector<8x32xf32>
    %320 = math.tanh %319 : vector<8x32xf32>
    %321 = vector.extract_strided_slice %318 {offsets = [0, 0], sizes = [8, 32], strides = [1, 1]} : vector<8x96xf32> to vector<8x32xf32>
    %322 = vector.extract_strided_slice %318 {offsets = [0, 32], sizes = [8, 32], strides = [1, 1]} : vector<8x96xf32> to vector<8x32xf32>
    %323 = vector.extract_strided_slice %318 {offsets = [0, 64], sizes = [8, 32], strides = [1, 1]} : vector<8x96xf32> to vector<8x32xf32>
    %324 = arith.mulf %322, %278 : vector<8x32xf32>
    %325 = arith.mulf %321, %320 : vector<8x32xf32>
    %326 = arith.addf %324, %325 : vector<8x32xf32>
    %327 = math.tanh %326 : vector<8x32xf32>
    %328 = arith.mulf %323, %327 : vector<8x32xf32>
    %329 = vector.extract_strided_slice %310 {offsets = [0, 0], sizes = [8, 96], strides = [1, 1]} : vector<8x128xf32> to vector<8x96xf32>
    %cst_130 = arith.constant 5.000000e-01 : f32
    %330 = vector.broadcast %cst_130 : f32 to vector<8x96xf32>
    %331 = arith.mulf %330, %329 : vector<8x96xf32>
    %332 = math.tanh %331 : vector<8x96xf32>
    %cst_131 = arith.constant 5.000000e-01 : f32
    %333 = vector.broadcast %cst_131 : f32 to vector<8x96xf32>
    %334 = arith.mulf %333, %332 : vector<8x96xf32>
    %cst_132 = arith.constant 5.000000e-01 : f32
    %335 = vector.broadcast %cst_132 : f32 to vector<8x96xf32>
    %336 = arith.addf %334, %335 : vector<8x96xf32>
    %337 = vector.extract_strided_slice %310 {offsets = [0, 96], sizes = [8, 32], strides = [1, 1]} : vector<8x128xf32> to vector<8x32xf32>
    %338 = math.tanh %337 : vector<8x32xf32>
    %339 = vector.extract_strided_slice %336 {offsets = [0, 0], sizes = [8, 32], strides = [1, 1]} : vector<8x96xf32> to vector<8x32xf32>
    %340 = vector.extract_strided_slice %336 {offsets = [0, 32], sizes = [8, 32], strides = [1, 1]} : vector<8x96xf32> to vector<8x32xf32>
    %341 = vector.extract_strided_slice %336 {offsets = [0, 64], sizes = [8, 32], strides = [1, 1]} : vector<8x96xf32> to vector<8x32xf32>
    %342 = arith.mulf %340, %296 : vector<8x32xf32>
    %343 = arith.mulf %339, %338 : vector<8x32xf32>
    %344 = arith.addf %342, %343 : vector<8x32xf32>
    %345 = math.tanh %344 : vector<8x32xf32>
    %346 = arith.mulf %341, %345 : vector<8x32xf32>
    %c0_133 = arith.constant 0 : index
    %c0_134 = arith.constant 0 : index
    %347 = vector.load %arg11[%c0_133, %c0_134] : memref<8x64xf32, #tpu.memory_space<vmem>>, vector<8x32xf32>
    tpu.vector_store %arg11[%c0_133, %c0_134], %328 {strides = array<i32>} : memref<8x64xf32, #tpu.memory_space<vmem>>, vector<8x32xf32>,
    %c0_135 = arith.constant 0 : index
    %c32_136 = arith.constant 32 : index
    %348 = vector.load %arg11[%c0_135, %c32_136] : memref<8x64xf32, #tpu.memory_space<vmem>>, vector<8x32xf32>
    tpu.vector_store %arg11[%c0_135, %c32_136], %346 {strides = array<i32>} : memref<8x64xf32, #tpu.memory_space<vmem>>, vector<8x32xf32>,
    %c0_137 = arith.constant 0 : index
    %c0_138 = arith.constant 0 : index
    %349 = vector.load %arg11[%c0_137, %c0_138] : memref<8x64xf32, #tpu.memory_space<vmem>>, vector<8x64xf32>
    %350 = arith.truncf %349 : vector<8x64xf32> to vector<8x64xbf16>
    %c0_139 = arith.constant 0 : index
    %c256_140 = arith.constant 256 : index
    %351 = vector.load %arg4[%c0_139, %c256_140] : memref<64x1280xbf16, #tpu.memory_space<vmem>>, vector<64x256xbf16>
    %cst_141 = arith.constant dense<0.000000e+00> : vector<8x256xf32>
    %352 = tpu.matmul %350, %351, %cst_141 {dimension_numbers = #tpu.dot_dimension_numbers<[1], [0], [0], [1], [0, 0, 1, 1], [], []>} : vector<8x64xbf16>, vector<64x256xbf16>, vector<8x256xf32> -> vector<8x256xf32>
    %353 = vector.extract_strided_slice %352 {offsets = [0, 0], sizes = [8, 128], strides = [1, 1]} : vector<8x256xf32> to vector<8x128xf32>
    %c56_142 = arith.constant 56 : index
    %c0_143 = arith.constant 0 : index
    %354 = vector.load %arg8[%c56_142, %c0_143] : memref<64x256xf32, #tpu.memory_space<vmem>>, vector<8x128xf32>
    %355 = arith.addf %353, %354 : vector<8x128xf32>
    %356 = vector.extract_strided_slice %352 {offsets = [0, 128], sizes = [8, 128], strides = [1, 1]} : vector<8x256xf32> to vector<8x128xf32>
    %c0_144 = arith.constant 0 : index
    %c128_145 = arith.constant 128 : index
    %357 = vector.load %arg8[%c0_144, %c128_145] : memref<64x256xf32, #tpu.memory_space<vmem>>, vector<8x128xf32>
    %358 = arith.addf %356, %357 : vector<8x128xf32>
    %359 = vector.extract_strided_slice %355 {offsets = [0, 0], sizes = [8, 96], strides = [1, 1]} : vector<8x128xf32> to vector<8x96xf32>
    %cst_146 = arith.constant 5.000000e-01 : f32
    %360 = vector.broadcast %cst_146 : f32 to vector<8x96xf32>
    %361 = arith.mulf %360, %359 : vector<8x96xf32>
    %362 = math.tanh %361 : vector<8x96xf32>
    %cst_147 = arith.constant 5.000000e-01 : f32
    %363 = vector.broadcast %cst_147 : f32 to vector<8x96xf32>
    %364 = arith.mulf %363, %362 : vector<8x96xf32>
    %cst_148 = arith.constant 5.000000e-01 : f32
    %365 = vector.broadcast %cst_148 : f32 to vector<8x96xf32>
    %366 = arith.addf %364, %365 : vector<8x96xf32>
    %367 = vector.extract_strided_slice %355 {offsets = [0, 96], sizes = [8, 32], strides = [1, 1]} : vector<8x128xf32> to vector<8x32xf32>
    %368 = math.tanh %367 : vector<8x32xf32>
    %369 = vector.extract_strided_slice %366 {offsets = [0, 0], sizes = [8, 32], strides = [1, 1]} : vector<8x96xf32> to vector<8x32xf32>
    %370 = vector.extract_strided_slice %366 {offsets = [0, 32], sizes = [8, 32], strides = [1, 1]} : vector<8x96xf32> to vector<8x32xf32>
    %371 = vector.extract_strided_slice %366 {offsets = [0, 64], sizes = [8, 32], strides = [1, 1]} : vector<8x96xf32> to vector<8x32xf32>
    %372 = arith.mulf %370, %326 : vector<8x32xf32>
    %373 = arith.mulf %369, %368 : vector<8x32xf32>
    %374 = arith.addf %372, %373 : vector<8x32xf32>
    %375 = math.tanh %374 : vector<8x32xf32>
    %376 = arith.mulf %371, %375 : vector<8x32xf32>
    %377 = vector.extract_strided_slice %358 {offsets = [0, 0], sizes = [8, 96], strides = [1, 1]} : vector<8x128xf32> to vector<8x96xf32>
    %cst_149 = arith.constant 5.000000e-01 : f32
    %378 = vector.broadcast %cst_149 : f32 to vector<8x96xf32>
    %379 = arith.mulf %378, %377 : vector<8x96xf32>
    %380 = math.tanh %379 : vector<8x96xf32>
    %cst_150 = arith.constant 5.000000e-01 : f32
    %381 = vector.broadcast %cst_150 : f32 to vector<8x96xf32>
    %382 = arith.mulf %381, %380 : vector<8x96xf32>
    %cst_151 = arith.constant 5.000000e-01 : f32
    %383 = vector.broadcast %cst_151 : f32 to vector<8x96xf32>
    %384 = arith.addf %382, %383 : vector<8x96xf32>
    %385 = vector.extract_strided_slice %358 {offsets = [0, 96], sizes = [8, 32], strides = [1, 1]} : vector<8x128xf32> to vector<8x32xf32>
    %386 = math.tanh %385 : vector<8x32xf32>
    %387 = vector.extract_strided_slice %384 {offsets = [0, 0], sizes = [8, 32], strides = [1, 1]} : vector<8x96xf32> to vector<8x32xf32>
    %388 = vector.extract_strided_slice %384 {offsets = [0, 32], sizes = [8, 32], strides = [1, 1]} : vector<8x96xf32> to vector<8x32xf32>
    %389 = vector.extract_strided_slice %384 {offsets = [0, 64], sizes = [8, 32], strides = [1, 1]} : vector<8x96xf32> to vector<8x32xf32>
    %390 = arith.mulf %388, %344 : vector<8x32xf32>
    %391 = arith.mulf %387, %386 : vector<8x32xf32>
    %392 = arith.addf %390, %391 : vector<8x32xf32>
    %393 = math.tanh %392 : vector<8x32xf32>
    %394 = arith.mulf %389, %393 : vector<8x32xf32>
    %c0_152 = arith.constant 0 : index
    %c0_153 = arith.constant 0 : index
    %395 = vector.load %arg11[%c0_152, %c0_153] : memref<8x64xf32, #tpu.memory_space<vmem>>, vector<8x32xf32>
    tpu.vector_store %arg11[%c0_152, %c0_153], %376 {strides = array<i32>} : memref<8x64xf32, #tpu.memory_space<vmem>>, vector<8x32xf32>,
    %c0_154 = arith.constant 0 : index
    %c32_155 = arith.constant 32 : index
    %396 = vector.load %arg11[%c0_154, %c32_155] : memref<8x64xf32, #tpu.memory_space<vmem>>, vector<8x32xf32>
    tpu.vector_store %arg11[%c0_154, %c32_155], %394 {strides = array<i32>} : memref<8x64xf32, #tpu.memory_space<vmem>>, vector<8x32xf32>,
    %c0_156 = arith.constant 0 : index
    %c0_157 = arith.constant 0 : index
    %397 = vector.load %arg11[%c0_156, %c0_157] : memref<8x64xf32, #tpu.memory_space<vmem>>, vector<8x64xf32>
    %398 = arith.truncf %397 : vector<8x64xf32> to vector<8x64xbf16>
    %c0_158 = arith.constant 0 : index
    %c512 = arith.constant 512 : index
    %399 = vector.load %arg4[%c0_158, %c512] : memref<64x1280xbf16, #tpu.memory_space<vmem>>, vector<64x16xbf16>
    %cst_159 = arith.constant dense<0.000000e+00> : vector<8x16xf32>
    %400 = tpu.matmul %398, %399, %cst_159 {dimension_numbers = #tpu.dot_dimension_numbers<[1], [0], [0], [1], [0, 0, 1, 1], [], []>} : vector<8x64xbf16>, vector<64x16xbf16>, vector<8x16xf32> -> vector<8x16xf32>
    %c0_160 = arith.constant 0 : index
    %c256_161 = arith.constant 256 : index
    %401 = vector.load %arg5[%c0_160, %c256_161] : memref<1x768xf32, #tpu.memory_space<vmem>>, vector<1x16xf32>
    %402 = vector.broadcast %401 : vector<1x16xf32> to vector<8x16xf32>
    %403 = arith.addf %400, %402 : vector<8x16xf32>
    %c0_162 = arith.constant 0 : index
    %c0_163 = arith.constant 0 : index
    %404 = vector.load %arg7[%c0_162, %c0_163] : memref<8x16xf32, #tpu.memory_space<vmem>>, vector<8x16xf32>
    tpu.vector_store %arg7[%c0_162, %c0_163], %403 {strides = array<i32>} : memref<8x16xf32, #tpu.memory_space<vmem>>, vector<8x16xf32>,
    %405 = vector.extract_strided_slice %403 {offsets = [0, 0], sizes = [8, 8], strides = [1, 1]} : vector<8x16xf32> to vector<8x8xf32>
    %406 = vector.extract_strided_slice %403 {offsets = [0, 8], sizes = [8, 8], strides = [1, 1]} : vector<8x16xf32> to vector<8x8xf32>
    %cst_164 = arith.constant 5.000000e-01 : f32
    %407 = vector.broadcast %cst_164 : f32 to vector<8x8xf32>
    %408 = arith.mulf %407, %406 : vector<8x8xf32>
    %409 = math.exp %408 : vector<8x8xf32>
    %c0_165 = arith.constant 0 : index
    %c0_166 = arith.constant 0 : index
    %410 = vector.load %arg3[%c0_165, %c0_166] : memref<8x8xf32, #tpu.memory_space<vmem>>, vector<8x8xf32>
    %411 = arith.mulf %409, %410 : vector<8x8xf32>
    %412 = arith.addf %405, %411 : vector<8x8xf32>
    %413 = arith.truncf %412 : vector<8x8xf32> to vector<8x8xbf16>
    %c0_167 = arith.constant 0 : index
    %c640 = arith.constant 640 : index
    %414 = vector.load %arg4[%c0_167, %c640] : memref<64x1280xbf16, #tpu.memory_space<vmem>>, vector<8x64xbf16>
    %cst_168 = arith.constant dense<0.000000e+00> : vector<8x64xf32>
    %415 = tpu.matmul %413, %414, %cst_168 {dimension_numbers = #tpu.dot_dimension_numbers<[1], [0], [0], [1], [0, 0, 1, 1], [], []>} : vector<8x8xbf16>, vector<8x64xbf16>, vector<8x64xf32> -> vector<8x64xf32>
    %c0_169 = arith.constant 0 : index
    %c384 = arith.constant 384 : index
    %416 = vector.load %arg5[%c0_169, %c384] : memref<1x768xf32, #tpu.memory_space<vmem>>, vector<1x64xf32>
    %417 = vector.broadcast %416 : vector<1x64xf32> to vector<8x64xf32>
    %418 = arith.addf %415, %417 : vector<8x64xf32>
    %419 = math.tanh %418 : vector<8x64xf32>
    %420 = vector.extract_strided_slice %419 {offsets = [0, 0], sizes = [8, 32], strides = [1, 1]} : vector<8x64xf32> to vector<8x32xf32>
    %421 = vector.extract_strided_slice %419 {offsets = [0, 32], sizes = [8, 32], strides = [1, 1]} : vector<8x64xf32> to vector<8x32xf32>
    %c0_170 = arith.constant 0 : index
    %c0_171 = arith.constant 0 : index
    %c0_172 = arith.constant 0 : index
    %422 = vector.load %arg2[%c0_170, %c0_171, %c0_172] : memref<8x8x5xf32, #tpu.memory_space<vmem>>, vector<8x8x5xf32>
    %423 = vector.shape_cast %422 : vector<8x8x5xf32> to vector<64x5xf32>
    %424 = arith.truncf %423 : vector<64x5xf32> to vector<64x5xbf16>
    %c0_173 = arith.constant 0 : index
    %c768 = arith.constant 768 : index
    %425 = vector.load %arg4[%c0_173, %c768] : memref<64x1280xbf16, #tpu.memory_space<vmem>>, vector<5x128xbf16>
    %cst_174 = arith.constant dense<0.000000e+00> : vector<64x128xf32>
    %426 = tpu.matmul %424, %425, %cst_174 {dimension_numbers = #tpu.dot_dimension_numbers<[1], [0], [0], [1], [0, 0, 1, 1], [], []>} : vector<64x5xbf16>, vector<5x128xbf16>, vector<64x128xf32> -> vector<64x128xf32>
    %427 = arith.truncf %412 : vector<8x8xf32> to vector<8x8xbf16>
    %c0_175 = arith.constant 0 : index
    %c896 = arith.constant 896 : index
    %428 = vector.load %arg4[%c0_175, %c896] : memref<64x1280xbf16, #tpu.memory_space<vmem>>, vector<8x128xbf16>
    %cst_176 = arith.constant dense<0.000000e+00> : vector<8x128xf32>
    %429 = tpu.matmul %427, %428, %cst_176 {dimension_numbers = #tpu.dot_dimension_numbers<[1], [0], [0], [1], [0, 0, 1, 1], [], []>} : vector<8x8xbf16>, vector<8x128xbf16>, vector<8x128xf32> -> vector<8x128xf32>
    %c0_177 = arith.constant 0 : index
    %c512_178 = arith.constant 512 : index
    %430 = vector.load %arg5[%c0_177, %c512_178] : memref<1x768xf32, #tpu.memory_space<vmem>>, vector<1x128xf32>
    %431 = vector.broadcast %430 : vector<1x128xf32> to vector<8x128xf32>
    %432 = arith.addf %429, %431 : vector<8x128xf32>
    %433 = vector.shape_cast %426 : vector<64x128xf32> to vector<8x8x128xf32>
    %434 = vector.shape_cast %432 : vector<8x128xf32> to vector<1x8x128xf32>
    %435 = vector.broadcast %434 : vector<1x8x128xf32> to vector<8x8x128xf32>
    %436 = arith.addf %433, %435 : vector<8x8x128xf32>
    %437 = vector.shape_cast %436 : vector<8x8x128xf32> to vector<64x128xf32>
    %c0_179 = arith.constant 0 : index
    %c0_180 = arith.constant 0 : index
    %438 = vector.load %arg9[%c0_179, %c0_180] : memref<64x128xf32, #tpu.memory_space<vmem>>, vector<64x128xf32>
    tpu.vector_store %arg9[%c0_179, %c0_180], %437 {strides = array<i32>} : memref<64x128xf32, #tpu.memory_space<vmem>>, vector<64x128xf32>,
    %c0_181 = arith.constant 0 : index
    %c0_182 = arith.constant 0 : index
    %439 = vector.load %arg9[%c0_181, %c0_182] : memref<64x128xf32, #tpu.memory_space<vmem>>, vector<8x128xf32>
    %440 = arith.truncf %420 : vector<8x32xf32> to vector<8x32xbf16>
    %c0_183 = arith.constant 0 : index
    %c1024 = arith.constant 1024 : index
    %441 = vector.load %arg4[%c0_183, %c1024] : memref<64x1280xbf16, #tpu.memory_space<vmem>>, vector<32x128xbf16>
    %cst_184 = arith.constant dense<0.000000e+00> : vector<8x128xf32>
    %442 = tpu.matmul %440, %441, %cst_184 {dimension_numbers = #tpu.dot_dimension_numbers<[1], [0], [0], [1], [0, 0, 1, 1], [], []>} : vector<8x32xbf16>, vector<32x128xbf16>, vector<8x128xf32> -> vector<8x128xf32>
    %443 = arith.addf %439, %442 : vector<8x128xf32>
    %444 = vector.extract_strided_slice %443 {offsets = [0, 0], sizes = [8, 96], strides = [1, 1]} : vector<8x128xf32> to vector<8x96xf32>
    %cst_185 = arith.constant 5.000000e-01 : f32
    %445 = vector.broadcast %cst_185 : f32 to vector<8x96xf32>
    %446 = arith.mulf %445, %444 : vector<8x96xf32>
    %447 = math.tanh %446 : vector<8x96xf32>
    %cst_186 = arith.constant 5.000000e-01 : f32
    %448 = vector.broadcast %cst_186 : f32 to vector<8x96xf32>
    %449 = arith.mulf %448, %447 : vector<8x96xf32>
    %cst_187 = arith.constant 5.000000e-01 : f32
    %450 = vector.broadcast %cst_187 : f32 to vector<8x96xf32>
    %451 = arith.addf %449, %450 : vector<8x96xf32>
    %452 = vector.extract_strided_slice %443 {offsets = [0, 96], sizes = [8, 32], strides = [1, 1]} : vector<8x128xf32> to vector<8x32xf32>
    %453 = math.tanh %452 : vector<8x32xf32>
    %454 = vector.extract_strided_slice %451 {offsets = [0, 0], sizes = [8, 32], strides = [1, 1]} : vector<8x96xf32> to vector<8x32xf32>
    %455 = vector.extract_strided_slice %451 {offsets = [0, 32], sizes = [8, 32], strides = [1, 1]} : vector<8x96xf32> to vector<8x32xf32>
    %456 = vector.extract_strided_slice %451 {offsets = [0, 64], sizes = [8, 32], strides = [1, 1]} : vector<8x96xf32> to vector<8x32xf32>
    %457 = arith.mulf %455, %421 : vector<8x32xf32>
    %458 = arith.mulf %454, %453 : vector<8x32xf32>
    %459 = arith.addf %457, %458 : vector<8x32xf32>
    %460 = math.tanh %459 : vector<8x32xf32>
    %461 = arith.mulf %456, %460 : vector<8x32xf32>
    %c0_188 = arith.constant 0 : index
    %c0_189 = arith.constant 0 : index
    %462 = vector.load %arg10[%c0_188, %c0_189] : memref<64x32xf32, #tpu.memory_space<vmem>>, vector<8x32xf32>
    tpu.vector_store %arg10[%c0_188, %c0_189], %461 {strides = array<i32>} : memref<64x32xf32, #tpu.memory_space<vmem>>, vector<8x32xf32>,
    %c8_190 = arith.constant 8 : index
    %c0_191 = arith.constant 0 : index
    %463 = vector.load %arg9[%c8_190, %c0_191] : memref<64x128xf32, #tpu.memory_space<vmem>>, vector<8x128xf32>
    %464 = arith.truncf %461 : vector<8x32xf32> to vector<8x32xbf16>
    %c0_192 = arith.constant 0 : index
    %c1024_193 = arith.constant 1024 : index
    %465 = vector.load %arg4[%c0_192, %c1024_193] : memref<64x1280xbf16, #tpu.memory_space<vmem>>, vector<32x128xbf16>
    %cst_194 = arith.constant dense<0.000000e+00> : vector<8x128xf32>
    %466 = tpu.matmul %464, %465, %cst_194 {dimension_numbers = #tpu.dot_dimension_numbers<[1], [0], [0], [1], [0, 0, 1, 1], [], []>} : vector<8x32xbf16>, vector<32x128xbf16>, vector<8x128xf32> -> vector<8x128xf32>
    %467 = arith.addf %463, %466 : vector<8x128xf32>
    %468 = vector.extract_strided_slice %467 {offsets = [0, 0], sizes = [8, 96], strides = [1, 1]} : vector<8x128xf32> to vector<8x96xf32>
    %cst_195 = arith.constant 5.000000e-01 : f32
    %469 = vector.broadcast %cst_195 : f32 to vector<8x96xf32>
    %470 = arith.mulf %469, %468 : vector<8x96xf32>
    %471 = math.tanh %470 : vector<8x96xf32>
    %cst_196 = arith.constant 5.000000e-01 : f32
    %472 = vector.broadcast %cst_196 : f32 to vector<8x96xf32>
    %473 = arith.mulf %472, %471 : vector<8x96xf32>
    %cst_197 = arith.constant 5.000000e-01 : f32
    %474 = vector.broadcast %cst_197 : f32 to vector<8x96xf32>
    %475 = arith.addf %473, %474 : vector<8x96xf32>
    %476 = vector.extract_strided_slice %467 {offsets = [0, 96], sizes = [8, 32], strides = [1, 1]} : vector<8x128xf32> to vector<8x32xf32>
    %477 = math.tanh %476 : vector<8x32xf32>
    %478 = vector.extract_strided_slice %475 {offsets = [0, 0], sizes = [8, 32], strides = [1, 1]} : vector<8x96xf32> to vector<8x32xf32>
    %479 = vector.extract_strided_slice %475 {offsets = [0, 32], sizes = [8, 32], strides = [1, 1]} : vector<8x96xf32> to vector<8x32xf32>
    %480 = vector.extract_strided_slice %475 {offsets = [0, 64], sizes = [8, 32], strides = [1, 1]} : vector<8x96xf32> to vector<8x32xf32>
    %481 = arith.mulf %479, %459 : vector<8x32xf32>
    %482 = arith.mulf %478, %477 : vector<8x32xf32>
    %483 = arith.addf %481, %482 : vector<8x32xf32>
    %484 = math.tanh %483 : vector<8x32xf32>
    %485 = arith.mulf %480, %484 : vector<8x32xf32>
    %c8_198 = arith.constant 8 : index
    %c0_199 = arith.constant 0 : index
    %486 = vector.load %arg10[%c8_198, %c0_199] : memref<64x32xf32, #tpu.memory_space<vmem>>, vector<8x32xf32>
    tpu.vector_store %arg10[%c8_198, %c0_199], %485 {strides = array<i32>} : memref<64x32xf32, #tpu.memory_space<vmem>>, vector<8x32xf32>,
    %c16_200 = arith.constant 16 : index
    %c0_201 = arith.constant 0 : index
    %487 = vector.load %arg9[%c16_200, %c0_201] : memref<64x128xf32, #tpu.memory_space<vmem>>, vector<8x128xf32>
    %488 = arith.truncf %485 : vector<8x32xf32> to vector<8x32xbf16>
    %c0_202 = arith.constant 0 : index
    %c1024_203 = arith.constant 1024 : index
    %489 = vector.load %arg4[%c0_202, %c1024_203] : memref<64x1280xbf16, #tpu.memory_space<vmem>>, vector<32x128xbf16>
    %cst_204 = arith.constant dense<0.000000e+00> : vector<8x128xf32>
    %490 = tpu.matmul %488, %489, %cst_204 {dimension_numbers = #tpu.dot_dimension_numbers<[1], [0], [0], [1], [0, 0, 1, 1], [], []>} : vector<8x32xbf16>, vector<32x128xbf16>, vector<8x128xf32> -> vector<8x128xf32>
    %491 = arith.addf %487, %490 : vector<8x128xf32>
    %492 = vector.extract_strided_slice %491 {offsets = [0, 0], sizes = [8, 96], strides = [1, 1]} : vector<8x128xf32> to vector<8x96xf32>
    %cst_205 = arith.constant 5.000000e-01 : f32
    %493 = vector.broadcast %cst_205 : f32 to vector<8x96xf32>
    %494 = arith.mulf %493, %492 : vector<8x96xf32>
    %495 = math.tanh %494 : vector<8x96xf32>
    %cst_206 = arith.constant 5.000000e-01 : f32
    %496 = vector.broadcast %cst_206 : f32 to vector<8x96xf32>
    %497 = arith.mulf %496, %495 : vector<8x96xf32>
    %cst_207 = arith.constant 5.000000e-01 : f32
    %498 = vector.broadcast %cst_207 : f32 to vector<8x96xf32>
    %499 = arith.addf %497, %498 : vector<8x96xf32>
    %500 = vector.extract_strided_slice %491 {offsets = [0, 96], sizes = [8, 32], strides = [1, 1]} : vector<8x128xf32> to vector<8x32xf32>
    %501 = math.tanh %500 : vector<8x32xf32>
    %502 = vector.extract_strided_slice %499 {offsets = [0, 0], sizes = [8, 32], strides = [1, 1]} : vector<8x96xf32> to vector<8x32xf32>
    %503 = vector.extract_strided_slice %499 {offsets = [0, 32], sizes = [8, 32], strides = [1, 1]} : vector<8x96xf32> to vector<8x32xf32>
    %504 = vector.extract_strided_slice %499 {offsets = [0, 64], sizes = [8, 32], strides = [1, 1]} : vector<8x96xf32> to vector<8x32xf32>
    %505 = arith.mulf %503, %483 : vector<8x32xf32>
    %506 = arith.mulf %502, %501 : vector<8x32xf32>
    %507 = arith.addf %505, %506 : vector<8x32xf32>
    %508 = math.tanh %507 : vector<8x32xf32>
    %509 = arith.mulf %504, %508 : vector<8x32xf32>
    %c16_208 = arith.constant 16 : index
    %c0_209 = arith.constant 0 : index
    %510 = vector.load %arg10[%c16_208, %c0_209] : memref<64x32xf32, #tpu.memory_space<vmem>>, vector<8x32xf32>
    tpu.vector_store %arg10[%c16_208, %c0_209], %509 {strides = array<i32>} : memref<64x32xf32, #tpu.memory_space<vmem>>, vector<8x32xf32>,
    %c24_210 = arith.constant 24 : index
    %c0_211 = arith.constant 0 : index
    %511 = vector.load %arg9[%c24_210, %c0_211] : memref<64x128xf32, #tpu.memory_space<vmem>>, vector<8x128xf32>
    %512 = arith.truncf %509 : vector<8x32xf32> to vector<8x32xbf16>
    %c0_212 = arith.constant 0 : index
    %c1024_213 = arith.constant 1024 : index
    %513 = vector.load %arg4[%c0_212, %c1024_213] : memref<64x1280xbf16, #tpu.memory_space<vmem>>, vector<32x128xbf16>
    %cst_214 = arith.constant dense<0.000000e+00> : vector<8x128xf32>
    %514 = tpu.matmul %512, %513, %cst_214 {dimension_numbers = #tpu.dot_dimension_numbers<[1], [0], [0], [1], [0, 0, 1, 1], [], []>} : vector<8x32xbf16>, vector<32x128xbf16>, vector<8x128xf32> -> vector<8x128xf32>
    %515 = arith.addf %511, %514 : vector<8x128xf32>
    %516 = vector.extract_strided_slice %515 {offsets = [0, 0], sizes = [8, 96], strides = [1, 1]} : vector<8x128xf32> to vector<8x96xf32>
    %cst_215 = arith.constant 5.000000e-01 : f32
    %517 = vector.broadcast %cst_215 : f32 to vector<8x96xf32>
    %518 = arith.mulf %517, %516 : vector<8x96xf32>
    %519 = math.tanh %518 : vector<8x96xf32>
    %cst_216 = arith.constant 5.000000e-01 : f32
    %520 = vector.broadcast %cst_216 : f32 to vector<8x96xf32>
    %521 = arith.mulf %520, %519 : vector<8x96xf32>
    %cst_217 = arith.constant 5.000000e-01 : f32
    %522 = vector.broadcast %cst_217 : f32 to vector<8x96xf32>
    %523 = arith.addf %521, %522 : vector<8x96xf32>
    %524 = vector.extract_strided_slice %515 {offsets = [0, 96], sizes = [8, 32], strides = [1, 1]} : vector<8x128xf32> to vector<8x32xf32>
    %525 = math.tanh %524 : vector<8x32xf32>
    %526 = vector.extract_strided_slice %523 {offsets = [0, 0], sizes = [8, 32], strides = [1, 1]} : vector<8x96xf32> to vector<8x32xf32>
    %527 = vector.extract_strided_slice %523 {offsets = [0, 32], sizes = [8, 32], strides = [1, 1]} : vector<8x96xf32> to vector<8x32xf32>
    %528 = vector.extract_strided_slice %523 {offsets = [0, 64], sizes = [8, 32], strides = [1, 1]} : vector<8x96xf32> to vector<8x32xf32>
    %529 = arith.mulf %527, %507 : vector<8x32xf32>
    %530 = arith.mulf %526, %525 : vector<8x32xf32>
    %531 = arith.addf %529, %530 : vector<8x32xf32>
    %532 = math.tanh %531 : vector<8x32xf32>
    %533 = arith.mulf %528, %532 : vector<8x32xf32>
    %c24_218 = arith.constant 24 : index
    %c0_219 = arith.constant 0 : index
    %534 = vector.load %arg10[%c24_218, %c0_219] : memref<64x32xf32, #tpu.memory_space<vmem>>, vector<8x32xf32>
    tpu.vector_store %arg10[%c24_218, %c0_219], %533 {strides = array<i32>} : memref<64x32xf32, #tpu.memory_space<vmem>>, vector<8x32xf32>,
    %c32_220 = arith.constant 32 : index
    %c0_221 = arith.constant 0 : index
    %535 = vector.load %arg9[%c32_220, %c0_221] : memref<64x128xf32, #tpu.memory_space<vmem>>, vector<8x128xf32>
    %536 = arith.truncf %533 : vector<8x32xf32> to vector<8x32xbf16>
    %c0_222 = arith.constant 0 : index
    %c1024_223 = arith.constant 1024 : index
    %537 = vector.load %arg4[%c0_222, %c1024_223] : memref<64x1280xbf16, #tpu.memory_space<vmem>>, vector<32x128xbf16>
    %cst_224 = arith.constant dense<0.000000e+00> : vector<8x128xf32>
    %538 = tpu.matmul %536, %537, %cst_224 {dimension_numbers = #tpu.dot_dimension_numbers<[1], [0], [0], [1], [0, 0, 1, 1], [], []>} : vector<8x32xbf16>, vector<32x128xbf16>, vector<8x128xf32> -> vector<8x128xf32>
    %539 = arith.addf %535, %538 : vector<8x128xf32>
    %540 = vector.extract_strided_slice %539 {offsets = [0, 0], sizes = [8, 96], strides = [1, 1]} : vector<8x128xf32> to vector<8x96xf32>
    %cst_225 = arith.constant 5.000000e-01 : f32
    %541 = vector.broadcast %cst_225 : f32 to vector<8x96xf32>
    %542 = arith.mulf %541, %540 : vector<8x96xf32>
    %543 = math.tanh %542 : vector<8x96xf32>
    %cst_226 = arith.constant 5.000000e-01 : f32
    %544 = vector.broadcast %cst_226 : f32 to vector<8x96xf32>
    %545 = arith.mulf %544, %543 : vector<8x96xf32>
    %cst_227 = arith.constant 5.000000e-01 : f32
    %546 = vector.broadcast %cst_227 : f32 to vector<8x96xf32>
    %547 = arith.addf %545, %546 : vector<8x96xf32>
    %548 = vector.extract_strided_slice %539 {offsets = [0, 96], sizes = [8, 32], strides = [1, 1]} : vector<8x128xf32> to vector<8x32xf32>
    %549 = math.tanh %548 : vector<8x32xf32>
    %550 = vector.extract_strided_slice %547 {offsets = [0, 0], sizes = [8, 32], strides = [1, 1]} : vector<8x96xf32> to vector<8x32xf32>
    %551 = vector.extract_strided_slice %547 {offsets = [0, 32], sizes = [8, 32], strides = [1, 1]} : vector<8x96xf32> to vector<8x32xf32>
    %552 = vector.extract_strided_slice %547 {offsets = [0, 64], sizes = [8, 32], strides = [1, 1]} : vector<8x96xf32> to vector<8x32xf32>
    %553 = arith.mulf %551, %531 : vector<8x32xf32>
    %554 = arith.mulf %550, %549 : vector<8x32xf32>
    %555 = arith.addf %553, %554 : vector<8x32xf32>
    %556 = math.tanh %555 : vector<8x32xf32>
    %557 = arith.mulf %552, %556 : vector<8x32xf32>
    %c32_228 = arith.constant 32 : index
    %c0_229 = arith.constant 0 : index
    %558 = vector.load %arg10[%c32_228, %c0_229] : memref<64x32xf32, #tpu.memory_space<vmem>>, vector<8x32xf32>
    tpu.vector_store %arg10[%c32_228, %c0_229], %557 {strides = array<i32>} : memref<64x32xf32, #tpu.memory_space<vmem>>, vector<8x32xf32>,
    %c40_230 = arith.constant 40 : index
    %c0_231 = arith.constant 0 : index
    %559 = vector.load %arg9[%c40_230, %c0_231] : memref<64x128xf32, #tpu.memory_space<vmem>>, vector<8x128xf32>
    %560 = arith.truncf %557 : vector<8x32xf32> to vector<8x32xbf16>
    %c0_232 = arith.constant 0 : index
    %c1024_233 = arith.constant 1024 : index
    %561 = vector.load %arg4[%c0_232, %c1024_233] : memref<64x1280xbf16, #tpu.memory_space<vmem>>, vector<32x128xbf16>
    %cst_234 = arith.constant dense<0.000000e+00> : vector<8x128xf32>
    %562 = tpu.matmul %560, %561, %cst_234 {dimension_numbers = #tpu.dot_dimension_numbers<[1], [0], [0], [1], [0, 0, 1, 1], [], []>} : vector<8x32xbf16>, vector<32x128xbf16>, vector<8x128xf32> -> vector<8x128xf32>
    %563 = arith.addf %559, %562 : vector<8x128xf32>
    %564 = vector.extract_strided_slice %563 {offsets = [0, 0], sizes = [8, 96], strides = [1, 1]} : vector<8x128xf32> to vector<8x96xf32>
    %cst_235 = arith.constant 5.000000e-01 : f32
    %565 = vector.broadcast %cst_235 : f32 to vector<8x96xf32>
    %566 = arith.mulf %565, %564 : vector<8x96xf32>
    %567 = math.tanh %566 : vector<8x96xf32>
    %cst_236 = arith.constant 5.000000e-01 : f32
    %568 = vector.broadcast %cst_236 : f32 to vector<8x96xf32>
    %569 = arith.mulf %568, %567 : vector<8x96xf32>
    %cst_237 = arith.constant 5.000000e-01 : f32
    %570 = vector.broadcast %cst_237 : f32 to vector<8x96xf32>
    %571 = arith.addf %569, %570 : vector<8x96xf32>
    %572 = vector.extract_strided_slice %563 {offsets = [0, 96], sizes = [8, 32], strides = [1, 1]} : vector<8x128xf32> to vector<8x32xf32>
    %573 = math.tanh %572 : vector<8x32xf32>
    %574 = vector.extract_strided_slice %571 {offsets = [0, 0], sizes = [8, 32], strides = [1, 1]} : vector<8x96xf32> to vector<8x32xf32>
    %575 = vector.extract_strided_slice %571 {offsets = [0, 32], sizes = [8, 32], strides = [1, 1]} : vector<8x96xf32> to vector<8x32xf32>
    %576 = vector.extract_strided_slice %571 {offsets = [0, 64], sizes = [8, 32], strides = [1, 1]} : vector<8x96xf32> to vector<8x32xf32>
    %577 = arith.mulf %575, %555 : vector<8x32xf32>
    %578 = arith.mulf %574, %573 : vector<8x32xf32>
    %579 = arith.addf %577, %578 : vector<8x32xf32>
    %580 = math.tanh %579 : vector<8x32xf32>
    %581 = arith.mulf %576, %580 : vector<8x32xf32>
    %c40_238 = arith.constant 40 : index
    %c0_239 = arith.constant 0 : index
    %582 = vector.load %arg10[%c40_238, %c0_239] : memref<64x32xf32, #tpu.memory_space<vmem>>, vector<8x32xf32>
    tpu.vector_store %arg10[%c40_238, %c0_239], %581 {strides = array<i32>} : memref<64x32xf32, #tpu.memory_space<vmem>>, vector<8x32xf32>,
    %c48_240 = arith.constant 48 : index
    %c0_241 = arith.constant 0 : index
    %583 = vector.load %arg9[%c48_240, %c0_241] : memref<64x128xf32, #tpu.memory_space<vmem>>, vector<8x128xf32>
    %584 = arith.truncf %581 : vector<8x32xf32> to vector<8x32xbf16>
    %c0_242 = arith.constant 0 : index
    %c1024_243 = arith.constant 1024 : index
    %585 = vector.load %arg4[%c0_242, %c1024_243] : memref<64x1280xbf16, #tpu.memory_space<vmem>>, vector<32x128xbf16>
    %cst_244 = arith.constant dense<0.000000e+00> : vector<8x128xf32>
    %586 = tpu.matmul %584, %585, %cst_244 {dimension_numbers = #tpu.dot_dimension_numbers<[1], [0], [0], [1], [0, 0, 1, 1], [], []>} : vector<8x32xbf16>, vector<32x128xbf16>, vector<8x128xf32> -> vector<8x128xf32>
    %587 = arith.addf %583, %586 : vector<8x128xf32>
    %588 = vector.extract_strided_slice %587 {offsets = [0, 0], sizes = [8, 96], strides = [1, 1]} : vector<8x128xf32> to vector<8x96xf32>
    %cst_245 = arith.constant 5.000000e-01 : f32
    %589 = vector.broadcast %cst_245 : f32 to vector<8x96xf32>
    %590 = arith.mulf %589, %588 : vector<8x96xf32>
    %591 = math.tanh %590 : vector<8x96xf32>
    %cst_246 = arith.constant 5.000000e-01 : f32
    %592 = vector.broadcast %cst_246 : f32 to vector<8x96xf32>
    %593 = arith.mulf %592, %591 : vector<8x96xf32>
    %cst_247 = arith.constant 5.000000e-01 : f32
    %594 = vector.broadcast %cst_247 : f32 to vector<8x96xf32>
    %595 = arith.addf %593, %594 : vector<8x96xf32>
    %596 = vector.extract_strided_slice %587 {offsets = [0, 96], sizes = [8, 32], strides = [1, 1]} : vector<8x128xf32> to vector<8x32xf32>
    %597 = math.tanh %596 : vector<8x32xf32>
    %598 = vector.extract_strided_slice %595 {offsets = [0, 0], sizes = [8, 32], strides = [1, 1]} : vector<8x96xf32> to vector<8x32xf32>
    %599 = vector.extract_strided_slice %595 {offsets = [0, 32], sizes = [8, 32], strides = [1, 1]} : vector<8x96xf32> to vector<8x32xf32>
    %600 = vector.extract_strided_slice %595 {offsets = [0, 64], sizes = [8, 32], strides = [1, 1]} : vector<8x96xf32> to vector<8x32xf32>
    %601 = arith.mulf %599, %579 : vector<8x32xf32>
    %602 = arith.mulf %598, %597 : vector<8x32xf32>
    %603 = arith.addf %601, %602 : vector<8x32xf32>
    %604 = math.tanh %603 : vector<8x32xf32>
    %605 = arith.mulf %600, %604 : vector<8x32xf32>
    %c48_248 = arith.constant 48 : index
    %c0_249 = arith.constant 0 : index
    %606 = vector.load %arg10[%c48_248, %c0_249] : memref<64x32xf32, #tpu.memory_space<vmem>>, vector<8x32xf32>
    tpu.vector_store %arg10[%c48_248, %c0_249], %605 {strides = array<i32>} : memref<64x32xf32, #tpu.memory_space<vmem>>, vector<8x32xf32>,
    %c56_250 = arith.constant 56 : index
    %c0_251 = arith.constant 0 : index
    %607 = vector.load %arg9[%c56_250, %c0_251] : memref<64x128xf32, #tpu.memory_space<vmem>>, vector<8x128xf32>
    %608 = arith.truncf %605 : vector<8x32xf32> to vector<8x32xbf16>
    %c0_252 = arith.constant 0 : index
    %c1024_253 = arith.constant 1024 : index
    %609 = vector.load %arg4[%c0_252, %c1024_253] : memref<64x1280xbf16, #tpu.memory_space<vmem>>, vector<32x128xbf16>
    %cst_254 = arith.constant dense<0.000000e+00> : vector<8x128xf32>
    %610 = tpu.matmul %608, %609, %cst_254 {dimension_numbers = #tpu.dot_dimension_numbers<[1], [0], [0], [1], [0, 0, 1, 1], [], []>} : vector<8x32xbf16>, vector<32x128xbf16>, vector<8x128xf32> -> vector<8x128xf32>
    %611 = arith.addf %607, %610 : vector<8x128xf32>
    %612 = vector.extract_strided_slice %611 {offsets = [0, 0], sizes = [8, 96], strides = [1, 1]} : vector<8x128xf32> to vector<8x96xf32>
    %cst_255 = arith.constant 5.000000e-01 : f32
    %613 = vector.broadcast %cst_255 : f32 to vector<8x96xf32>
    %614 = arith.mulf %613, %612 : vector<8x96xf32>
    %615 = math.tanh %614 : vector<8x96xf32>
    %cst_256 = arith.constant 5.000000e-01 : f32
    %616 = vector.broadcast %cst_256 : f32 to vector<8x96xf32>
    %617 = arith.mulf %616, %615 : vector<8x96xf32>
    %cst_257 = arith.constant 5.000000e-01 : f32
    %618 = vector.broadcast %cst_257 : f32 to vector<8x96xf32>
    %619 = arith.addf %617, %618 : vector<8x96xf32>
    %620 = vector.extract_strided_slice %611 {offsets = [0, 96], sizes = [8, 32], strides = [1, 1]} : vector<8x128xf32> to vector<8x32xf32>
    %621 = math.tanh %620 : vector<8x32xf32>
    %622 = vector.extract_strided_slice %619 {offsets = [0, 0], sizes = [8, 32], strides = [1, 1]} : vector<8x96xf32> to vector<8x32xf32>
    %623 = vector.extract_strided_slice %619 {offsets = [0, 32], sizes = [8, 32], strides = [1, 1]} : vector<8x96xf32> to vector<8x32xf32>
    %624 = vector.extract_strided_slice %619 {offsets = [0, 64], sizes = [8, 32], strides = [1, 1]} : vector<8x96xf32> to vector<8x32xf32>
    %625 = arith.mulf %623, %603 : vector<8x32xf32>
    %626 = arith.mulf %622, %621 : vector<8x32xf32>
    %627 = arith.addf %625, %626 : vector<8x32xf32>
    %628 = math.tanh %627 : vector<8x32xf32>
    %629 = arith.mulf %624, %628 : vector<8x32xf32>
    %c56_258 = arith.constant 56 : index
    %c0_259 = arith.constant 0 : index
    %630 = vector.load %arg10[%c56_258, %c0_259] : memref<64x32xf32, #tpu.memory_space<vmem>>, vector<8x32xf32>
    tpu.vector_store %arg10[%c56_258, %c0_259], %629 {strides = array<i32>} : memref<64x32xf32, #tpu.memory_space<vmem>>, vector<8x32xf32>,
    %c0_260 = arith.constant 0 : index
    %c0_261 = arith.constant 0 : index
    %631 = vector.load %arg10[%c0_260, %c0_261] : memref<64x32xf32, #tpu.memory_space<vmem>>, vector<64x32xf32>
    %632 = arith.truncf %631 : vector<64x32xf32> to vector<64x32xbf16>
    %c0_262 = arith.constant 0 : index
    %c1152 = arith.constant 1152 : index
    %633 = vector.load %arg4[%c0_262, %c1152] : memref<64x1280xbf16, #tpu.memory_space<vmem>>, vector<32x128xbf16>
    %cst_263 = arith.constant dense<0.000000e+00> : vector<64x128xf32>
    %634 = tpu.matmul %632, %633, %cst_263 {dimension_numbers = #tpu.dot_dimension_numbers<[1], [0], [0], [1], [0, 0, 1, 1], [], []>} : vector<64x32xbf16>, vector<32x128xbf16>, vector<64x128xf32> -> vector<64x128xf32>
    %c0_264 = arith.constant 0 : index
    %c640_265 = arith.constant 640 : index
    %635 = vector.load %arg5[%c0_264, %c640_265] : memref<1x768xf32, #tpu.memory_space<vmem>>, vector<1x128xf32>
    %636 = vector.broadcast %635 : vector<1x128xf32> to vector<64x128xf32>
    %637 = arith.addf %634, %636 : vector<64x128xf32>
    %638 = vector.shape_cast %637 : vector<64x128xf32> to vector<8x8x128xf32>
    %c0_266 = arith.constant 0 : index
    %c0_267 = arith.constant 0 : index
    %c0_268 = arith.constant 0 : index
    %639 = vector.load %arg6[%c0_266, %c0_267, %c0_268] : memref<8x8x128xf32, #tpu.memory_space<vmem>>, vector<8x8x128xf32>
    tpu.vector_store %arg6[%c0_266, %c0_267, %c0_268], %638 {strides = array<i32>} : memref<8x8x128xf32, #tpu.memory_space<vmem>>, vector<8x8x128xf32>,
    return
  }
  func.func @transform_0(%arg0: i32) -> (i32, i32, i32) {
    %c0_i32 = arith.constant 0 : i32
    %c0_i32_0 = arith.constant 0 : i32
    %c0_i32_1 = arith.constant 0 : i32
    return %c0_i32, %arg0, %c0_i32_0 : i32, i32, i32
  }
  func.func @transform_1(%arg0: i32) -> (i32, i32, i32) {
    %c0_i32 = arith.constant 0 : i32
    %c0_i32_0 = arith.constant 0 : i32
    %c0_i32_1 = arith.constant 0 : i32
    return %c0_i32, %arg0, %c0_i32_0 : i32, i32, i32
  }
  func.func @transform_2(%arg0: i32) -> (i32, i32) {
    %c0_i32 = arith.constant 0 : i32
    %c0_i32_0 = arith.constant 0 : i32
    return %arg0, %c0_i32 : i32, i32
  }
  func.func @transform_3(%arg0: i32) -> (i32, i32) {
    %c0_i32 = arith.constant 0 : i32
    %c0_i32_0 = arith.constant 0 : i32
    %c0_i32_1 = arith.constant 0 : i32
    return %c0_i32, %c0_i32_0 : i32, i32
  }
  func.func @transform_4(%arg0: i32) -> (i32, i32) {
    %c0_i32 = arith.constant 0 : i32
    %c0_i32_0 = arith.constant 0 : i32
    %c0_i32_1 = arith.constant 0 : i32
    return %c0_i32, %c0_i32_0 : i32, i32
  }
  func.func @transform_5(%arg0: i32) -> (i32, i32, i32) {
    %c0_i32 = arith.constant 0 : i32
    %c0_i32_0 = arith.constant 0 : i32
    %c0_i32_1 = arith.constant 0 : i32
    return %c0_i32, %arg0, %c0_i32_0 : i32, i32, i32
  }
  func.func @transform_6(%arg0: i32) -> (i32, i32) {
    %c0_i32 = arith.constant 0 : i32
    %c0_i32_0 = arith.constant 0 : i32
    return %arg0, %c0_i32 : i32, i32
  }
}

</mosaic_0001>

<bundles_post_ra>
// kernel: split.6
= control target key start
LH: loop header
LB: loop body
LE: loop exit
PB: predicated region body
PF: predicated region fallthrough
CT: control target
= control target key end

     0   :  { %v3_v0 = vlaneseq  ;;  %s95_s14 = smov 104   ;;  %s162_s0 = inlined_call_operand.vmem [shape: f32[8,8,128], index: 0, kind: input, shape index: {}]   ;;  %s163_s1 = inlined_call_operand.vmem [shape: f32[2,8,3], index: 1, kind: output, shape index: {}]  }
   0x1   :  { %v82_v2 = vld [vmem:[%s162_s0 + $0x10] sm:$0xff]  ;;  %v2_v3 = vld [vmem:[%s162_s0] sm:$0xff]  ;;  %v84_v4 = vld [vmem:[%s162_s0 + $0x18] sm:$0xff] }
   0x2   :  { %v4_v1 = vand.u32 127, %v3_v0  ;;  %v80_v5 = vld [vmem:[%s162_s0 + $0x8] sm:$0xff]  ;;  %v86_v11 = vld [vmem:[%s162_s0 + $0x20] sm:$0xff]  ;;  %v92_v14 = vld [vmem:[%s162_s0 + $0x38] sm:$0xff] }
   0x3   :  { %v88_v10 = vld [vmem:[%s162_s0 + $0x28] sm:$0xff]  ;;  %v90_v15 = vld [vmem:[%s162_s0 + $0x30] sm:$0xff] }
   0x4   :  { %vm5_vm0 = vcmp.lt.s32.totalorder %v4_v1, 24 }
   0x5   :  { %v25_v6 = vsel %vm5_vm0, 0, %v82_v2  ;;  %v6_v7 = vsel %vm5_vm0, 0, %v2_v3  ;;  %v35_v8 = vsel %vm5_vm0, 0, %v84_v4  ;;  %v15_v9 = vsel %vm5_vm0, 0, %v80_v5 }
   0x6   :  { %26 = vrot.lane.b32.xlu1 %v25_v6, %s95_s14  ;;  %7 = vrot.lane.b32.xlu0 %v6_v7, %s95_s14  ;;  %v55_v12 = vsel %vm5_vm0, 0, %v88_v10  ;;  %v45_v13 = vsel %vm5_vm0, 0, %v86_v11  ;;  %v75_v16 = vsel %vm5_vm0, 0, %v92_v14  ;;  %v65_v17 = vsel %vm5_vm0, 0, %v90_v15 }
   0xa   :  { %36 = vrot.lane.b32.xlu1 %v35_v8, %s95_s14  ;;  %16 = vrot.lane.b32.xlu0 %v15_v9, %s95_s14 }
   0xe   :  { %56 = vrot.lane.b32.xlu1 %v55_v12, %s95_s14  ;;  %46 = vrot.lane.b32.xlu0 %v45_v13, %s95_s14 }
  0x12   :  { %76 = vrot.lane.b32.xlu1 %v75_v16, %s95_s14  ;;  %66 = vrot.lane.b32.xlu0 %v65_v17, %s95_s14 }
  0x78   :  { %v27_v18 = vpop.permute.xlu1 %26  ;;  %v8_v19 = vpop.permute.xlu0 %7 }
  0x79   :  { %83 = vst [vmem:[%s163_s1 + $0x4] sm:$0x3] %v27_v18  ;;  %9 = vst [vmem:[%s163_s1] sm:$0x3] %v8_v19 }
  0x7c   :  { %v37_v20 = vpop.permute.xlu1 %36  ;;  %v17_v21 = vpop.permute.xlu0 %16 }
  0x7d   :  { %85 = vst [vmem:[%s163_s1 + $0x6] sm:$0x3] %v37_v20  ;;  %81 = vst [vmem:[%s163_s1 + $0x2] sm:$0x3] %v17_v21 }
  0x80   :  { %v57_v22 = vpop.permute.xlu1 %56  ;;  %v47_v23 = vpop.permute.xlu0 %46 }
  0x81   :  { %89 = vst [vmem:[%s163_s1 + $0xa] sm:$0x3] %v57_v22  ;;  %87 = vst [vmem:[%s163_s1 + $0x8] sm:$0x3] %v47_v23 }
  0x84   :  { %v77_v24 = vpop.permute.xlu1 %76  ;;  %v67_v25 = vpop.permute.xlu0 %66 }
  0x85   :  { %93 = vst [vmem:[%s163_s1 + $0xe] sm:$0x3] %v77_v24  ;;  %91 = vst [vmem:[%s163_s1 + $0xc] sm:$0x3] %v67_v25 }

// kernel: sketch_rnn_forward.1
= control target key start
LH: loop header
LB: loop body
LE: loop exit
PB: predicated region body
PF: predicated region fallthrough
CT: control target
= control target key end

     0   :  { %12 = vsyncpa [#allocation7], 0  ;;  %s3088_s21 = smov [#allocation6]   ;;  %s3633_s0 = inlined_call_operand.vmem [shape: f32[8,8,5], index: 0, kind: input, shape index: {}]   ;;  %s3634_s1 = inlined_call_operand.vmem [shape: f32[8,8,5], index: 1, kind: input, shape index: {}]   ;;  %s3635_s2 = inlined_call_operand.vmem [shape: f32[8,8], index: 2, kind: input, shape index: {}]   ;;  %s3636_s3 = inlined_call_operand.hbm [shape: bf16[64,1280], index: 3, kind: input, shape index: {}]   ;;  %s3637_s4 = inlined_call_operand.vmem [shape: f32[1,768], index: 4, kind: input, shape index: {}]   ;;  %s3638_s5 = inlined_call_operand.vmem [shape: f32[8,8,128], index: 5, kind: output, shape index: {0}]   ;;  %s3639_s6 = inlined_call_operand.vmem [shape: f32[8,16], index: 6, kind: output, shape index: {1}]  }
   0x1   :  { %s24_s22 = sshll.u32 %s3088_s21, 4  ;;  %s3064_s25 = scalar_lea.hbm %s3636_s3, 5120  ;;  %s25_s22 = int_to_ptr.vmem [resolvable:$true] %s24_s22 }
   0x2   :  { %p3065_p0 = scmp.ne.s32.totalorder %s3636_s3, %s3064_s25  ;;  %p3068_p1 = scmp.lt.u32.totalorder %s3064_s25, %s3636_s3 }
   0x4   :  { %p3070_p2 = pnand %p3068_p1, %p3065_p0 }
   0x6   :  { %3073 = shalt.err (!%p3070_p2)
}
   0x7   :  { %s3074_s30 = scalar_lea.vmem %s25_s22, 5120  ;;  %p3079_p4 = scmp.lt.s32.totalorder %s25_s22, %s25_s22 }
   0x8   :  { %p3075_p3 = scmp.ne.s32.totalorder %s25_s22, %s3074_s30  ;;  %p3080_p5 = scmp.lt.s32.totalorder %s3074_s30, %s3074_s30 }
   0xa   :  { %p3081_p6 = por %p3080_p5, %p3079_p4 }
   0xc   :  { %p3082_p7 = pnand %p3081_p6, %p3075_p3 }
   0xe   :  { %3085 = shalt.err (!%p3082_p7)
}
   0xf   :  { %s3089_s7 = smov 640   ;;  %s3090_s8 = smov 40  }
  0x10   :  { %30 = dma.hbm_to_vmem [thread:$0]  %s3636_s3, 5120, %s25_s22, [#allocation7], %s3089_s7, %s3089_s7, %s3090_s8  }
  0x11   :  { %3086 = dma.done.wait [#allocation7], 5120  }
  0x12   :  { %3087 = vsyncadd [#allocation7], 4294962176  ;;  %v3091_v0 = vmov 0   ;;  %vm179_vm0 = vcmask 523264   ;;  %vm80_vm1 = vcmask 1041408   ;;  %v3092_v1 = vmov 0.0  }
  0x13   :  { %122 = vmatprep.mubr.bf16.mxu0 %v3091_v0  ;;  %266 = vmatprep.mubr.bf16.mxu1 %v3091_v0  ;;  %180 = vst.msk [vmem:[#allocation5] sm:$0xff] %vm179_vm0, %v3092_v1  ;;  %vm81_vm2 = vcmask 1042432   ;;  %v3093_v2 = vmov 65535   ;;  %v3151_v4 = vld [vmem:[#allocation6 + $0xc] ss:$40 sps:$4 sm:$0xff]   ;;  %v37_v12 = vld [vmem:[%s3633_s0] sm:$0xff]  ;;  %v52_v32 = vlaneseq }
  0x14   :  { %v82_v3 = vsel %vm80_vm1, 4294967295, %v3093_v2  ;;  %v3153_v5 = vld [vmem:[#allocation6 + $0x8] ss:$40 sps:$4 sm:$0xff]   ;;  %v49_v6 = vld [vmem:[#allocation6] sm:$0x77]  ;;  %234 = vmatprep.subr.bf16.mxu1 %v3151_v4  ;;  %vm67_vm3 = vcmask 39936  }
  0x15   :  { %v3155_v7 = vsel %vm81_vm2, %v82_v3, 0  ;;  %v2580_v8 = vcombine.high %v49_v6, %v49_v6  ;;  %v2579_v9 = vcombine.low %v49_v6, %v49_v6  ;;  %v3158_v10 = vld [vmem:[#allocation6 + $0x5c] ss:$40 sps:$4 sm:$0xff]   ;;  %v3160_v11 = vld [vmem:[#allocation6 + $0x58] ss:$40 sps:$4 sm:$0xff]   ;;  %235 = vmatpush1.bf16.msra.mxu1 %v3153_v5  ;;  %v39_v21 = vld [vmem:[%s3633_s0 + $0x10] sm:$0xff] }
  0x16   :  { %v38_v13 = vld [vmem:[%s3633_s0 + $0x8] sm:$0xff]  ;;  %236 = vmatprep.subr.bf16.mxu1 %v3158_v10  ;;  %v3172_v16 = vld [vmem:[#allocation6 + $0xac] ss:$40 sps:$4 sm:$0xff]   ;;  %v3175_v18 = vld [vmem:[#allocation6 + $0xa8] ss:$40 sps:$4 sm:$0xff]   ;;  %v53_v33 = vshrl.u32 %v52_v32, 7 }
  0x17   :  { %v88_v14 = vand.u32 %v2580_v8, %v3155_v7  ;;  %v85_v15 = vand.u32 %v2579_v9, %v3155_v7  ;;  %v45_v17 = vpack.c.bf16 %v38_v13, %v37_v12  ;;  %v3178_v19 = vld [vmem:[#allocation6 + $0xfc] ss:$40 sps:$4 sm:$0xff]   ;;  %v3181_v20 = vld [vmem:[#allocation6 + $0xf8] ss:$40 sps:$4 sm:$0xff]   ;;  %v40_v22 = vld [vmem:[%s3633_s0 + $0x18] sm:$0xff]  ;;  %s3095_s28 = smov 64  }
  0x18   :  { %v46_v24 = vpack.c.bf16 %v40_v22, %v39_v21  ;;  %v41_v26 = vld [vmem:[%s3633_s0 + $0x20] sm:$0xff]  ;;  %v42_v27 = vld [vmem:[%s3633_s0 + $0x28] sm:$0xff]  ;;  %v43_v29 = vld [vmem:[%s3633_s0 + $0x30] sm:$0xff]  ;;  %v58_v34 = vsub.s32 1, %v53_v33  ;;  %v54_v36 = vsub.s32 0, %v53_v33  ;;  %s3096_s29 = smov 96  }
  0x19   :  { %90 = vmatprep.subr.bf16.mxu0 %v88_v14  ;;  %237 = vmatpush1.bf16.msra.mxu1 %v3160_v11  ;;  %v47_v28 = vpack.c.bf16 %v42_v27, %v41_v26  ;;  %v44_v30 = vld [vmem:[%s3633_s0 + $0x38] sm:$0xff]  ;;  %v50_v35 = vld [vmem:[%s3637_s4] sm:$0x3]  ;;  %s3094_s0 = smov 32   ;;  %vm327_vm4 = vcmask 261120   ;;  %vm333_vm5 = vcmask 523520  }
  0x1a   :  { %91 = vmatpush1.bf16.msra.mxu0 %v85_v15  ;;  %238 = vmatprep.subr.bf16.mxu1 %v3172_v16  ;;  %v181_v23 = vld [vmem:[#allocation5] sm:$0xff]  ;;  %v48_v31 = vpack.c.bf16 %v44_v30, %v43_v29  ;;  %v59_v37 = vrot.slane %v50_v35, %v58_v34  ;;  %v55_v39 = vrot.slane %v50_v35, %v54_v36  ;;  %vm3097_vm6 = vmmov 0   ;;  %s3098_s8 = smov 8   ;;  %s3099_s11 = smov 120  }
  0x1b   :  { %540 = vmatprep.subr.bf16.mxu0 %v3151_v4  ;;  %v182_v25 = vpack.c.bf16 %v181_v23, %v181_v23  ;;  %vm1512_vm7 = vcmask 1043456   ;;  %vm1483_vm8 = vcmask 130048   ;;  %vm1508_vm9 = vcmask 64512  }
  0x1d   :  { %2581 = vmatmul.mubr.msk.bf16.vlgmr.msra.gmra.mrb[0].mxu0 %vm67_vm3, %v45_v17  ;;  %239 = vmatpush1.bf16.msra.mxu1 %v3175_v18 }
  0x1e   :  { %132 = vmatprep.mubr.bf16.mxu0 %v3091_v0  ;;  %240 = vmatprep.subr.bf16.mxu1 %v3178_v19 }
  0x1f   :  { %541 = vmatpush1.bf16.msra.mxu0 %v3153_v5 }
  0x20   :  { %542 = vmatprep.subr.bf16.mxu0 %v3158_v10 }
  0x21   :  { %241 = vmatpush1.bf16.msra.mxu1 %v3181_v20 }
  0x22   :  { %388 = vmatprep.subr.bf16.mxu1 %v3151_v4 }
  0x23   :  { %543 = vmatpush1.bf16.msra.mxu0 %v3160_v11 }
  0x24   :  { %544 = vmatprep.subr.bf16.mxu0 %v3172_v16  ;;  %2593 = vmatmul.mubr.msk.bf16.vlgmr.msra.gmra.mrb[0].mxu1 %vm179_vm0, %v182_v25 }
  0x25   :  { %2582 = vmatmul.mubr.msk.bf16.gmra.mrb[4].mxu0 %vm67_vm3, %v46_v24  ;;  %389 = vmatpush1.bf16.msra.mxu1 %v3153_v5 }
  0x26   :  { %142 = vmatprep.mubr.bf16.mxu0 %v3091_v0  ;;  %390 = vmatprep.subr.bf16.mxu1 %v3158_v10 }
  0x27   :  { %420 = vmatprep.mubr.bf16.mxu1 %v3091_v0  ;;  %545 = vmatpush1.bf16.msra.mxu0 %v3175_v18 }
  0x28   :  { %546 = vmatprep.subr.bf16.mxu0 %v3178_v19 }
  0x29   :  { %391 = vmatpush1.bf16.msra.mxu1 %v3160_v11 }
  0x2a   :  { %392 = vmatprep.subr.bf16.mxu1 %v3172_v16 }
  0x2b   :  { %547 = vmatpush1.bf16.msra.mxu0 %v3181_v20 }
  0x2c   :  { %844 = vmatprep.subr.bf16.mxu0 %v3151_v4 }
  0x2d   :  { %2583 = vmatmul.mubr.msk.bf16.gmra.mrb[8].mxu0 %vm67_vm3, %v47_v28  ;;  %393 = vmatpush1.bf16.msra.mxu1 %v3175_v18 }
  0x2e   :  { %152 = vmatprep.mubr.bf16.mxu0 %v3091_v0  ;;  %394 = vmatprep.subr.bf16.mxu1 %v3178_v19 }
  0x31   :  { %395 = vmatpush1.bf16.msra.mxu1 %v3181_v20 }
  0x32   :  { %692 = vmatprep.subr.bf16.mxu1 %v3151_v4 }
  0x35   :  { %2584 = vmatmul.mubr.msk.bf16.gmra.mrb[12].mxu0 %vm67_vm3, %v48_v31 }
  0x36   :  { %572 = vmatprep.mubr.bf16.mxu0 %v3091_v0 }
  0xf0   :  { %v124_v38 = vpop.f32.mrb[0].mxu0 }
  0xf1   :  { %v126_v40 = vpop.f32.mrb[1].mxu0  ;;  %v125_v46 = vadd.f32 %v124_v38, %v55_v39 }
  0xf2   :  { %v3234_v41 = vadd.f32 %v126_v40, %v59_v37  ;;  %v128_v42 = vpop.f32.mrb[2].mxu0 }
  0xf3   :  { %v3236_v43 = vadd.f32 %v128_v42, %v55_v39  ;;  %v130_v44 = vpop.f32.mrb[3].mxu0 }
  0xf4   :  { %v3238_v45 = vadd.f32 %v130_v44, %v59_v37 }
  0xf7   :  { %v268_v48 = vpop.f32.mrb[0].mxu1 }
  0xf8   :  { %v134_v47 = vpop.f32.mrb[4].mxu0  ;;  %v276_v51 = vadd.f32 %v268_v48, %v125_v46  ;;  %v270_v52 = vpop.f32.mrb[1].mxu1 }
  0xf9   :  { %v3240_v49 = vadd.f32 %v134_v47, %v55_v39  ;;  %v136_v50 = vpop.f32.mrb[5].mxu0  ;;  %v272_v55 = vpop.f32.mrb[2].mxu1 }
  0xfa   :  { %v3242_v53 = vadd.f32 %v136_v50, %v59_v37  ;;  %v138_v54 = vpop.f32.mrb[6].mxu0  ;;  %2916 = vtanh.f32 %v276_v51  ;;  %v273_v58 = vpop.f32.mrb[3].mxu1  ;;  %v279_v26 = vmul.f32 0.5, %v276_v51 }
  0xfb   :  { %v3244_v56 = vadd.f32 %v138_v54, %v55_v39  ;;  %v140_v57 = vpop.f32.mrb[7].mxu0 }
  0xfc   :  { %v3246_v59 = vadd.f32 %v140_v57, %v59_v37 }
 0x100   :  { %v144_v60 = vpop.f32.mrb[8].mxu0 }
 0x101   :  { %v3248_v61 = vadd.f32 %v144_v60, %v55_v39  ;;  %v146_v62 = vpop.f32.mrb[9].mxu0 }
 0x102   :  { %v3250_v63 = vadd.f32 %v146_v62, %v59_v37  ;;  %v148_v2 = vpop.f32.mrb[10].mxu0 }
 0x103   :  { %v3252_v3 = vadd.f32 %v148_v2, %v55_v39  ;;  %v150_v6 = vpop.f32.mrb[11].mxu0 }
 0x104   :  { %v3254_v8 = vadd.f32 %v150_v6, %v59_v37  ;;  %v2917_v9 = vpop.eup %2916 }
 0x105   :  { %286 = vrot.lane.b32.xlu0 %v2917_v9, %s3094_s0 }
 0x108   :  { %v154_v12 = vpop.f32.mrb[12].mxu0 }
 0x109   :  { %v3257_v13 = vadd.f32 %v154_v12, %v55_v39  ;;  %v156_v14 = vpop.f32.mrb[13].mxu0 }
 0x10a   :  { %v3259_v15 = vadd.f32 %v156_v14, %v59_v37  ;;  %v158_v17 = vpop.f32.mrb[14].mxu0 }
 0x10b   :  { %v3261_v21 = vadd.f32 %v158_v17, %v55_v39  ;;  %v160_v22 = vpop.f32.mrb[15].mxu0 }
 0x10c   :  { %v161_v23 = vadd.f32 %v160_v22, %v59_v37 }
 0x10e   :  { %v278_v24 = vadd.f32 %v270_v52, %v161_v23 }
 0x110   :  { %2918 = vtanh.f32 %v278_v24  ;;  %v301_v29 = vmul.f32 0.5, %v278_v24 }
 0x111   :  { %2920 = vtanh.f32 %v279_v26 }
 0x112   :  { %2922 = vtanh.f32 %v301_v29 }
 0x11a   :  { %v2919_v25 = vpop.eup %2918 }
 0x11b   :  { %308 = vrot.lane.b32.xlu0 %v2919_v25, %s3094_s0  ;;  %v2921_v27 = vpop.eup %2920 }
 0x11c   :  { %v281_v28 = vmul.f32 0.5, %v2921_v27  ;;  %v2923_v33 = vpop.eup %2922 }
 0x11d   :  { %v303_v34 = vmul.f32 0.5, %v2923_v33 }
 0x11e   :  { %v282_v30 = vadd.f32 0.5, %v281_v28 }
 0x11f   :  { %v304_v35 = vadd.f32 0.5, %v303_v34 }
 0x120   :  { %v284_v38 = vmul.f32 0.0, %v282_v30 }
 0x121   :  { %v306_v44 = vmul.f32 0.0, %v304_v35 }
 0x177   :  { %v287_v31 = vpop.permute.xlu0 %286 }
 0x178   :  { %v289_v32 = vmul.f32 %v287_v31, %v282_v30 }
 0x17a   :  { %291 = vrot.lane.b32.xlu1 %v289_v32, %s3094_s0 }
 0x18d   :  { %v309_v36 = vpop.permute.xlu0 %308 }
 0x18e   :  { %v311_v37 = vmul.f32 %v309_v36, %v304_v35 }
 0x190   :  { %313 = vrot.lane.b32.xlu1 %v311_v37, %s3094_s0 }
 0x1ec   :  { %v292_v39 = vpop.permute.xlu1 %291 }
 0x1ed   :  { %v3266_v40 = vadd.f32 %v292_v39, %v284_v38 }
 0x1ef   :  { %2924 = vtanh.f32 %v3266_v40 }
 0x1f9   :  { %v2925_v42 = vpop.eup %2924 }
 0x1fa   :  { %297 = vrot.lane.b32.xlu0 %v2925_v42, %s3094_s0 }
 0x202   :  { %v314_v46 = vpop.permute.xlu1 %313 }
 0x203   :  { %v316_v47 = vadd.f32 %v314_v46, %v306_v44 }
 0x205   :  { %2926 = vtanh.f32 %v316_v47 }
 0x20f   :  { %v2927_v48 = vpop.eup %2926 }
 0x210   :  { %319 = vrot.lane.b32.xlu1 %v2927_v48, %s3094_s0 }
 0x26c   :  { %v298_v50 = vpop.permute.xlu0 %297 }
 0x26d   :  { %v300_v51 = vmul.f32 %v298_v50, %v282_v30 }
 0x26f   :  { %324 = vrot.lane.b32.xlu0 %v300_v51, %s3095_s28 }
 0x282   :  { %v320_v52 = vpop.permute.xlu1 %319 }
 0x283   :  { %v322_v54 = vmul.f32 %v320_v52, %v304_v35 }
 0x285   :  { %330 = vrot.lane.b32.xlu1 %v322_v54, %s3096_s29 }
 0x2e1   :  { %v325_v55 = vpop.permute.xlu0 %324 }
 0x2e2   :  { %328 = vst.msk [vmem:[#allocation5] sm:$0xff] %vm327_vm4, %v325_v55 }
 0x2f7   :  { %v331_v57 = vpop.permute.xlu1 %330 }
 0x2f8   :  { %334 = vst.msk [vmem:[#allocation5] sm:$0xff] %vm333_vm5, %v331_v57 }
 0x2ff   :  { %v335_v58 = vld [vmem:[#allocation5] sm:$0xff] }
 0x300   :  { %v336_v60 = vpack.c.bf16 %v335_v58, %v335_v58 }
 0x302   :  { %2602 = vmatmul.mubr.msk.bf16.vlgmr.msra.gmra.mrb[4].mxu1 %vm179_vm0, %v336_v60 }
 0x303   :  { %693 = vmatpush1.bf16.msra.mxu1 %v3153_v5  ;;  %724 = vmatprep.mubr.bf16.mxu1 %v3091_v0 }
 0x304   :  { %694 = vmatprep.subr.bf16.mxu1 %v3158_v10 }
 0x307   :  { %695 = vmatpush1.bf16.msra.mxu1 %v3160_v11 }
 0x308   :  { %696 = vmatprep.subr.bf16.mxu1 %v3172_v16 }
 0x30b   :  { %697 = vmatpush1.bf16.msra.mxu1 %v3175_v18 }
 0x30c   :  { %698 = vmatprep.subr.bf16.mxu1 %v3178_v19 }
 0x30f   :  { %699 = vmatpush1.bf16.msra.mxu1 %v3181_v20 }
 0x310   :  { %996 = vmatprep.subr.bf16.mxu1 %v3151_v4 }
 0x3d5   :  { %v422_v62 = vpop.f32.mrb[4].mxu1 }
 0x3d6   :  { %v430_v2 = vadd.f32 %v422_v62, %v3236_v43  ;;  %v424_v6 = vpop.f32.mrb[5].mxu1 }
 0x3d7   :  { %v432_v9 = vadd.f32 %v424_v6, %v3259_v15  ;;  %v426_v12 = vpop.f32.mrb[6].mxu1 }
 0x3d8   :  { %2928 = vtanh.f32 %v430_v2  ;;  %v427_v14 = vpop.f32.mrb[7].mxu1  ;;  %v433_v23 = vmul.f32 0.5, %v430_v2 }
 0x3d9   :  { %2930 = vtanh.f32 %v432_v9  ;;  %v455_v24 = vmul.f32 0.5, %v432_v9 }
 0x3da   :  { %2932 = vtanh.f32 %v433_v23 }
 0x3db   :  { %2934 = vtanh.f32 %v455_v24 }
 0x3e2   :  { %v2929_v17 = vpop.eup %2928 }
 0x3e3   :  { %v2931_v22 = vpop.eup %2930  ;;  %440 = vrot.lane.b32.xlu0 %v2929_v17, %s3094_s0 }
 0x3e4   :  { %462 = vrot.lane.b32.xlu1 %v2931_v22, %s3094_s0  ;;  %v2933_v25 = vpop.eup %2932 }
 0x3e5   :  { %v2935_v26 = vpop.eup %2934  ;;  %v435_v43 = vmul.f32 0.5, %v2933_v25 }
 0x3e6   :  { %v457_v27 = vmul.f32 0.5, %v2935_v26 }
 0x3e7   :  { %v436_v28 = vadd.f32 0.5, %v435_v43 }
 0x3e8   :  { %v458_v29 = vadd.f32 0.5, %v457_v27 }
 0x3e9   :  { %v438_v33 = vmul.f32 %v436_v28, %v3266_v40 }
 0x3ea   :  { %v460_v35 = vmul.f32 %v458_v29, %v316_v47 }
 0x455   :  { %v441_v15 = vpop.permute.xlu0 %440 }
 0x456   :  { %v443_v30 = vmul.f32 %v441_v15, %v436_v28  ;;  %v463_v31 = vpop.permute.xlu1 %462 }
 0x457   :  { %v465_v32 = vmul.f32 %v463_v31, %v458_v29 }
 0x458   :  { %445 = vrot.lane.b32.xlu0 %v443_v30, %s3094_s0 }
 0x459   :  { %467 = vrot.lane.b32.xlu1 %v465_v32, %s3094_s0 }
 0x4ca   :  { %v446_v34 = vpop.permute.xlu0 %445 }
 0x4cb   :  { %v448_v36 = vadd.f32 %v446_v34, %v438_v33  ;;  %v468_v37 = vpop.permute.xlu1 %467 }
 0x4cc   :  { %v470_v38 = vadd.f32 %v468_v37, %v460_v35 }
 0x4cd   :  { %2936 = vtanh.f32 %v448_v36 }
 0x4ce   :  { %2938 = vtanh.f32 %v470_v38 }
 0x4d7   :  { %v2937_v39 = vpop.eup %2936 }
 0x4d8   :  { %v2939_v42 = vpop.eup %2938  ;;  %451 = vrot.lane.b32.xlu0 %v2937_v39, %s3094_s0 }
 0x4d9   :  { %473 = vrot.lane.b32.xlu1 %v2939_v42, %s3094_s0 }
 0x54a   :  { %v452_v44 = vpop.permute.xlu0 %451 }
 0x54b   :  { %v454_v46 = vmul.f32 %v452_v44, %v436_v28  ;;  %v474_v48 = vpop.permute.xlu1 %473 }
 0x54c   :  { %v476_v50 = vmul.f32 %v474_v48, %v458_v29 }
 0x54d   :  { %478 = vrot.lane.b32.xlu0 %v454_v46, %s3095_s28 }
 0x54e   :  { %483 = vrot.lane.b32.xlu1 %v476_v50, %s3096_s29 }
 0x5bf   :  { %v479_v40 = vpop.permute.xlu0 %478 }
 0x5c0   :  { %481 = vst.msk [vmem:[#allocation5] sm:$0xff] %vm327_vm4, %v479_v40  ;;  %v484_v47 = vpop.permute.xlu1 %483 }
 0x5c1   :  { %486 = vst.msk [vmem:[#allocation5] sm:$0xff] %vm333_vm5, %v484_v47 }
 0x5c8   :  { %v487_v51 = vld [vmem:[#allocation5] sm:$0xff] }
 0x5c9   :  { %v488_v52 = vpack.c.bf16 %v487_v51, %v487_v51 }
 0x5cb   :  { %2611 = vmatmul.mubr.msk.bf16.vlgmr.msra.gmra.mrb[16].mxu0 %vm179_vm0, %v488_v52 }
 0x5cc   :  { %845 = vmatpush1.bf16.msra.mxu0 %v3153_v5  ;;  %876 = vmatprep.mubr.bf16.mxu0 %v3091_v0 }
 0x5cd   :  { %846 = vmatprep.subr.bf16.mxu0 %v3158_v10 }
 0x5d0   :  { %847 = vmatpush1.bf16.msra.mxu0 %v3160_v11 }
 0x5d1   :  { %848 = vmatprep.subr.bf16.mxu0 %v3172_v16 }
 0x5d4   :  { %849 = vmatpush1.bf16.msra.mxu0 %v3175_v18 }
 0x5d5   :  { %850 = vmatprep.subr.bf16.mxu0 %v3178_v19 }
 0x5d8   :  { %851 = vmatpush1.bf16.msra.mxu0 %v3181_v20 }
 0x5d9   :  { %1148 = vmatprep.subr.bf16.mxu0 %v3151_v4 }
 0x69e   :  { %v574_v54 = vpop.f32.mrb[16].mxu0 }
 0x69f   :  { %v582_v55 = vadd.f32 %v574_v54, %v3240_v49  ;;  %v576_v57 = vpop.f32.mrb[17].mxu0 }
 0x6a0   :  { %v584_v58 = vadd.f32 %v576_v57, %v3254_v8  ;;  %v578_v60 = vpop.f32.mrb[18].mxu0 }
 0x6a1   :  { %2940 = vtanh.f32 %v582_v55  ;;  %v579_v62 = vpop.f32.mrb[19].mxu0  ;;  %v585_v9 = vmul.f32 0.5, %v582_v55 }
 0x6a2   :  { %2942 = vtanh.f32 %v584_v58  ;;  %v607_v12 = vmul.f32 0.5, %v584_v58 }
 0x6a3   :  { %2944 = vtanh.f32 %v585_v9 }
 0x6a4   :  { %2946 = vtanh.f32 %v607_v12 }
 0x6ab   :  { %v2941_v2 = vpop.eup %2940 }
 0x6ac   :  { %v2943_v6 = vpop.eup %2942  ;;  %592 = vrot.lane.b32.xlu0 %v2941_v2, %s3094_s0 }
 0x6ad   :  { %614 = vrot.lane.b32.xlu1 %v2943_v6, %s3094_s0  ;;  %v2945_v4 = vpop.eup %2944 }
 0x6ae   :  { %v2947_v14 = vpop.eup %2946  ;;  %v587_v49 = vmul.f32 0.5, %v2945_v4 }
 0x6af   :  { %v609_v17 = vmul.f32 0.5, %v2947_v14 }
 0x6b0   :  { %v588_v22 = vadd.f32 0.5, %v587_v49 }
 0x6b1   :  { %v610_v23 = vadd.f32 0.5, %v609_v17 }
 0x6b2   :  { %v590_v43 = vmul.f32 %v588_v22, %v448_v36 }
 0x6b3   :  { %v612_v28 = vmul.f32 %v610_v23, %v470_v38 }
 0x71e   :  { %v593_v8 = vpop.permute.xlu0 %592 }
 0x71f   :  { %v595_v24 = vmul.f32 %v593_v8, %v588_v22  ;;  %v615_v25 = vpop.permute.xlu1 %614 }
 0x720   :  { %v617_v26 = vmul.f32 %v615_v25, %v610_v23 }
 0x721   :  { %597 = vrot.lane.b32.xlu0 %v595_v24, %s3094_s0 }
 0x722   :  { %619 = vrot.lane.b32.xlu1 %v617_v26, %s3094_s0 }
 0x793   :  { %v598_v27 = vpop.permute.xlu0 %597 }
 0x794   :  { %v600_v15 = vadd.f32 %v598_v27, %v590_v43  ;;  %v620_v29 = vpop.permute.xlu1 %619 }
 0x795   :  { %v622_v30 = vadd.f32 %v620_v29, %v612_v28 }
 0x796   :  { %2948 = vtanh.f32 %v600_v15 }
 0x797   :  { %2950 = vtanh.f32 %v622_v30 }
 0x7a0   :  { %v2949_v31 = vpop.eup %2948 }
 0x7a1   :  { %v2951_v32 = vpop.eup %2950  ;;  %603 = vrot.lane.b32.xlu0 %v2949_v31, %s3094_s0 }
 0x7a2   :  { %625 = vrot.lane.b32.xlu1 %v2951_v32, %s3094_s0 }
 0x813   :  { %v604_v33 = vpop.permute.xlu0 %603 }
 0x814   :  { %v606_v34 = vmul.f32 %v604_v33, %v588_v22  ;;  %v626_v35 = vpop.permute.xlu1 %625 }
 0x815   :  { %v628_v37 = vmul.f32 %v626_v35, %v610_v23 }
 0x816   :  { %630 = vrot.lane.b32.xlu0 %v606_v34, %s3095_s28 }
 0x817   :  { %635 = vrot.lane.b32.xlu1 %v628_v37, %s3096_s29 }
 0x888   :  { %v631_v36 = vpop.permute.xlu0 %630 }
 0x889   :  { %633 = vst.msk [vmem:[#allocation5] sm:$0xff] %vm327_vm4, %v631_v36  ;;  %v636_v38 = vpop.permute.xlu1 %635 }
 0x88a   :  { %638 = vst.msk [vmem:[#allocation5] sm:$0xff] %vm333_vm5, %v636_v38 }
 0x891   :  { %v639_v39 = vld [vmem:[#allocation5] sm:$0xff] }
 0x892   :  { %v640_v42 = vpack.c.bf16 %v639_v39, %v639_v39 }
 0x894   :  { %2620 = vmatmul.mubr.msk.bf16.vlgmr.msra.gmra.mrb[8].mxu1 %vm179_vm0, %v640_v42 }
 0x895   :  { %997 = vmatpush1.bf16.msra.mxu1 %v3153_v5  ;;  %1028 = vmatprep.mubr.bf16.mxu1 %v3091_v0 }
 0x896   :  { %998 = vmatprep.subr.bf16.mxu1 %v3158_v10 }
 0x899   :  { %999 = vmatpush1.bf16.msra.mxu1 %v3160_v11 }
 0x89a   :  { %1000 = vmatprep.subr.bf16.mxu1 %v3172_v16 }
 0x89d   :  { %1001 = vmatpush1.bf16.msra.mxu1 %v3175_v18 }
 0x89e   :  { %1002 = vmatprep.subr.bf16.mxu1 %v3178_v19 }
 0x8a1   :  { %1003 = vmatpush1.bf16.msra.mxu1 %v3181_v20 }
 0x967   :  { %v726_v44 = vpop.f32.mrb[8].mxu1 }
 0x968   :  { %v734_v46 = vadd.f32 %v726_v44, %v3244_v56  ;;  %v728_v48 = vpop.f32.mrb[9].mxu1 }
 0x969   :  { %v736_v50 = vadd.f32 %v728_v48, %v3250_v63  ;;  %v730_v40 = vpop.f32.mrb[10].mxu1 }
 0x96a   :  { %2952 = vtanh.f32 %v734_v46  ;;  %v731_v47 = vpop.f32.mrb[11].mxu1  ;;  %v737_v54 = vmul.f32 0.5, %v734_v46 }
 0x96b   :  { %2954 = vtanh.f32 %v736_v50  ;;  %v759_v55 = vmul.f32 0.5, %v736_v50 }
 0x96c   :  { %2956 = vtanh.f32 %v737_v54 }
 0x96d   :  { %2958 = vtanh.f32 %v759_v55 }
 0x974   :  { %v2953_v51 = vpop.eup %2952 }
 0x975   :  { %v2955_v52 = vpop.eup %2954  ;;  %744 = vrot.lane.b32.xlu0 %v2953_v51, %s3094_s0 }
 0x976   :  { %766 = vrot.lane.b32.xlu1 %v2955_v52, %s3094_s0  ;;  %v2957_v57 = vpop.eup %2956 }
 0x977   :  { %v2959_v58 = vpop.eup %2958  ;;  %v739_v56 = vmul.f32 0.5, %v2957_v57 }
 0x978   :  { %v761_v60 = vmul.f32 0.5, %v2959_v58 }
 0x979   :  { %v740_v62 = vadd.f32 0.5, %v739_v56 }
 0x97a   :  { %v762_v2 = vadd.f32 0.5, %v761_v60 }
 0x97b   :  { %v742_v4 = vmul.f32 %v740_v62, %v600_v15 }
 0x97c   :  { %v764_v49 = vmul.f32 %v762_v2, %v622_v30 }
 0x9e7   :  { %v745_v63 = vpop.permute.xlu0 %744 }
 0x9e8   :  { %v747_v6 = vmul.f32 %v745_v63, %v740_v62  ;;  %v767_v9 = vpop.permute.xlu1 %766 }
 0x9e9   :  { %v769_v12 = vmul.f32 %v767_v9, %v762_v2 }
 0x9ea   :  { %749 = vrot.lane.b32.xlu0 %v747_v6, %s3094_s0 }
 0x9eb   :  { %771 = vrot.lane.b32.xlu1 %v769_v12, %s3094_s0 }
 0xa5c   :  { %v750_v14 = vpop.permute.xlu0 %749 }
 0xa5d   :  { %v752_v17 = vadd.f32 %v750_v14, %v742_v4  ;;  %v772_v22 = vpop.permute.xlu1 %771 }
 0xa5e   :  { %v774_v8 = vadd.f32 %v772_v22, %v764_v49 }
 0xa5f   :  { %2960 = vtanh.f32 %v752_v17 }
 0xa60   :  { %2962 = vtanh.f32 %v774_v8 }
 0xa69   :  { %v2961_v23 = vpop.eup %2960 }
 0xa6a   :  { %v2963_v24 = vpop.eup %2962  ;;  %755 = vrot.lane.b32.xlu0 %v2961_v23, %s3094_s0 }
 0xa6b   :  { %777 = vrot.lane.b32.xlu1 %v2963_v24, %s3094_s0 }
 0xadc   :  { %v756_v25 = vpop.permute.xlu0 %755 }
 0xadd   :  { %v758_v26 = vmul.f32 %v756_v25, %v740_v62  ;;  %v778_v43 = vpop.permute.xlu1 %777 }
 0xade   :  { %v780_v27 = vmul.f32 %v778_v43, %v762_v2 }
 0xadf   :  { %782 = vrot.lane.b32.xlu0 %v758_v26, %s3095_s28 }
 0xae0   :  { %787 = vrot.lane.b32.xlu1 %v780_v27, %s3096_s29 }
 0xb51   :  { %v783_v28 = vpop.permute.xlu0 %782 }
 0xb52   :  { %785 = vst.msk [vmem:[#allocation5] sm:$0xff] %vm327_vm4, %v783_v28  ;;  %v788_v15 = vpop.permute.xlu1 %787 }
 0xb53   :  { %790 = vst.msk [vmem:[#allocation5] sm:$0xff] %vm333_vm5, %v788_v15 }
 0xb5a   :  { %v791_v29 = vld [vmem:[#allocation5] sm:$0xff] }
 0xb5b   :  { %v792_v30 = vpack.c.bf16 %v791_v29, %v791_v29 }
 0xb5d   :  { %2629 = vmatmul.mubr.msk.bf16.vlgmr.msra.gmra.mrb[20].mxu0 %vm179_vm0, %v792_v30 }
 0xb5e   :  { %1149 = vmatpush1.bf16.msra.mxu0 %v3153_v5  ;;  %1180 = vmatprep.mubr.bf16.mxu0 %v3091_v0 }
 0xb5f   :  { %1150 = vmatprep.subr.bf16.mxu0 %v3158_v10 }
 0xb62   :  { %1151 = vmatpush1.bf16.msra.mxu0 %v3160_v11 }
 0xb63   :  { %1152 = vmatprep.subr.bf16.mxu0 %v3172_v16 }
 0xb66   :  { %1153 = vmatpush1.bf16.msra.mxu0 %v3175_v18 }
 0xb67   :  { %1154 = vmatprep.subr.bf16.mxu0 %v3178_v19 }
 0xb6a   :  { %1155 = vmatpush1.bf16.msra.mxu0 %v3181_v20 }
 0xb6b   :  { %2746 = vmatprep.subr.bf16.mxu0 %v3092_v1 }
 0xc30   :  { %v878_v31 = vpop.f32.mrb[20].mxu0 }
 0xc31   :  { %v886_v32 = vadd.f32 %v878_v31, %v3248_v61  ;;  %v880_v5 = vpop.f32.mrb[21].mxu0 }
 0xc32   :  { %v888_v33 = vadd.f32 %v880_v5, %v3246_v59  ;;  %v882_v34 = vpop.f32.mrb[22].mxu0 }
 0xc33   :  { %2964 = vtanh.f32 %v886_v32  ;;  %v883_v10 = vpop.f32.mrb[23].mxu0  ;;  %v889_v18 = vmul.f32 0.5, %v886_v32 }
 0xc34   :  { %2966 = vtanh.f32 %v888_v33  ;;  %v911_v19 = vmul.f32 0.5, %v888_v33 }
 0xc35   :  { %2968 = vtanh.f32 %v889_v18 }
 0xc36   :  { %2970 = vtanh.f32 %v911_v19 }
 0xc3d   :  { %v2965_v11 = vpop.eup %2964 }
 0xc3e   :  { %v2967_v16 = vpop.eup %2966  ;;  %896 = vrot.lane.b32.xlu0 %v2965_v11, %s3094_s0 }
 0xc3f   :  { %918 = vrot.lane.b32.xlu1 %v2967_v16, %s3094_s0  ;;  %v2969_v20 = vpop.eup %2968 }
 0xc40   :  { %v2971_v35 = vpop.eup %2970  ;;  %v891_v61 = vmul.f32 0.5, %v2969_v20 }
 0xc41   :  { %v913_v37 = vmul.f32 0.5, %v2971_v35 }
 0xc42   :  { %v892_v36 = vadd.f32 0.5, %v891_v61 }
 0xc43   :  { %v914_v38 = vadd.f32 0.5, %v913_v37 }
 0xc44   :  { %v894_v46 = vmul.f32 %v892_v36, %v752_v17 }
 0xc45   :  { %v916_v50 = vmul.f32 %v914_v38, %v774_v8 }
 0xcb0   :  { %v897_v59 = vpop.permute.xlu0 %896 }
 0xcb1   :  { %v899_v39 = vmul.f32 %v897_v59, %v892_v36  ;;  %v919_v42 = vpop.permute.xlu1 %918 }
 0xcb2   :  { %v921_v44 = vmul.f32 %v919_v42, %v914_v38 }
 0xcb3   :  { %901 = vrot.lane.b32.xlu0 %v899_v39, %s3094_s0 }
 0xcb4   :  { %923 = vrot.lane.b32.xlu1 %v921_v44, %s3094_s0 }
 0xd25   :  { %v902_v48 = vpop.permute.xlu0 %901 }
 0xd26   :  { %v904_v40 = vadd.f32 %v902_v48, %v894_v46  ;;  %v924_v47 = vpop.permute.xlu1 %923 }
 0xd27   :  { %v926_v51 = vadd.f32 %v924_v47, %v916_v50 }
 0xd28   :  { %2972 = vtanh.f32 %v904_v40 }
 0xd29   :  { %2974 = vtanh.f32 %v926_v51 }
 0xd32   :  { %v2973_v52 = vpop.eup %2972 }
 0xd33   :  { %v2975_v54 = vpop.eup %2974  ;;  %907 = vrot.lane.b32.xlu0 %v2973_v52, %s3094_s0 }
 0xd34   :  { %929 = vrot.lane.b32.xlu1 %v2975_v54, %s3094_s0 }
 0xda5   :  { %v908_v55 = vpop.permute.xlu0 %907 }
 0xda6   :  { %v910_v57 = vmul.f32 %v908_v55, %v892_v36  ;;  %v930_v58 = vpop.permute.xlu1 %929 }
 0xda7   :  { %v932_v56 = vmul.f32 %v930_v58, %v914_v38 }
 0xda8   :  { %934 = vrot.lane.b32.xlu0 %v910_v57, %s3095_s28 }
 0xda9   :  { %939 = vrot.lane.b32.xlu1 %v932_v56, %s3096_s29 }
 0xe1a   :  { %v935_v60 = vpop.permute.xlu0 %934 }
 0xe1b   :  { %937 = vst.msk [vmem:[#allocation5] sm:$0xff] %vm327_vm4, %v935_v60  ;;  %v940_v62 = vpop.permute.xlu1 %939 }
 0xe1c   :  { %942 = vst.msk [vmem:[#allocation5] sm:$0xff] %vm333_vm5, %v940_v62 }
 0xe23   :  { %v943_v63 = vld [vmem:[#allocation5] sm:$0xff] }
 0xe24   :  { %v944_v2 = vpack.c.bf16 %v943_v63, %v943_v63 }
 0xe26   :  { %2638 = vmatmul.mubr.msk.bf16.vlgmr.msra.gmra.mrb[12].mxu1 %vm179_vm0, %v944_v2 }
 0xe27   :  { %1332 = vmatprep.mubr.bf16.mxu1 %v3091_v0 }
 0xef9   :  { %v1030_v6 = vpop.f32.mrb[12].mxu1 }
 0xefa   :  { %v1038_v9 = vadd.f32 %v1030_v6, %v3252_v3  ;;  %v1032_v12 = vpop.f32.mrb[13].mxu1 }
 0xefb   :  { %v1040_v4 = vadd.f32 %v1032_v12, %v3242_v53  ;;  %v1034_v14 = vpop.f32.mrb[14].mxu1  ;;  %v2882_v12 = vld [vmem:[#allocation6 + $0x8] ss:$40 sps:$4 sm:$0xff]  }
 0xefc   :  { %2976 = vtanh.f32 %v1038_v9  ;;  %v1035_v49 = vpop.f32.mrb[15].mxu1  ;;  %v1041_v8 = vmul.f32 0.5, %v1038_v9  ;;  %v2887_v14 = vld [vmem:[#allocation6 + $0x5c] ss:$40 sps:$4 sm:$0xff]  }
 0xefd   :  { %2978 = vtanh.f32 %v1040_v4  ;;  %v1063_v23 = vmul.f32 0.5, %v1040_v4  ;;  %v2884_v4 = vld [vmem:[#allocation6 + $0xc] ss:$40 sps:$4 sm:$0xff]   ;;  %v2885_v49 = vld [vmem:[#allocation6 + $0x58] ss:$40 sps:$4 sm:$0xff]  }
 0xefe   :  { %2980 = vtanh.f32 %v1041_v8  ;;  %1300 = vmatprep.subr.bf16.mxu1 %v2884_v4  ;;  %v2888_v8 = vld [vmem:[#allocation6 + $0xa8] ss:$40 sps:$4 sm:$0xff]  }
 0xeff   :  { %2982 = vtanh.f32 %v1063_v23  ;;  %1301 = vmatpush1.bf16.msra.mxu1 %v2882_v12  ;;  %v2890_v23 = vld [vmem:[#allocation6 + $0xac] ss:$40 sps:$4 sm:$0xff]  }
 0xf00   :  { %1302 = vmatprep.subr.bf16.mxu1 %v2887_v14 }
 0xf03   :  { %1303 = vmatpush1.bf16.msra.mxu1 %v2885_v49 }
 0xf04   :  { %1304 = vmatprep.subr.bf16.mxu1 %v2890_v23  ;;  %v1650_v23 = vld [vmem:[#allocation6 + $0x1c] sm:$0xf] }
 0xf06   :  { %v2977_v17 = vpop.eup %2976 }
 0xf07   :  { %v2979_v22 = vpop.eup %2978  ;;  %1048 = vrot.lane.b32.xlu0 %v2977_v17, %s3094_s0  ;;  %1305 = vmatpush1.bf16.msra.mxu1 %v2888_v8 }
 0xf08   :  { %1070 = vrot.lane.b32.xlu1 %v2979_v22, %s3094_s0  ;;  %v2981_v0 = vpop.eup %2980 }
 0xf09   :  { %v2983_v24 = vpop.eup %2982  ;;  %v1043_v3 = vmul.f32 0.5, %v2981_v0  ;;  %v2893_v0 = vld [vmem:[#allocation6 + $0xfc] ss:$40 sps:$4 sm:$0xff]  }
 0xf0a   :  { %v1065_v25 = vmul.f32 0.5, %v2983_v24  ;;  %v2891_v24 = vld [vmem:[#allocation6 + $0xf8] ss:$40 sps:$4 sm:$0xff]   ;;  %1306 = vmatprep.subr.bf16.mxu1 %v2893_v0  ;;  %v1659_v0 = vsel %vm1512_vm7, %v1650_v23, 0 }
 0xf0b   :  { %v1044_v26 = vadd.f32 0.5, %v1043_v3  ;;  %1307 = vmatpush1.bf16.msra.mxu1 %v2891_v24  ;;  %v1569_v24 = vld [vmem:[#allocation6 + $0x18] sm:$0x7] }
 0xf0c   :  { %v1066_v43 = vadd.f32 0.5, %v1065_v25  ;;  %2774 = vmatprep.subr.bf16.mxu1 %v3092_v1 }
 0xf0d   :  { %v1046_v29 = vmul.f32 %v1044_v26, %v904_v40 }
 0xf0e   :  { %v1068_v31 = vmul.f32 %v1066_v43, %v926_v51 }
 0xf79   :  { %v1049_v53 = vpop.permute.xlu0 %1048 }
 0xf7a   :  { %v1051_v27 = vmul.f32 %v1049_v53, %v1044_v26  ;;  %v1071_v28 = vpop.permute.xlu1 %1070 }
 0xf7b   :  { %v1073_v15 = vmul.f32 %v1071_v28, %v1066_v43 }
 0xf7c   :  { %1053 = vrot.lane.b32.xlu0 %v1051_v27, %s3094_s0 }
 0xf7d   :  { %1075 = vrot.lane.b32.xlu1 %v1073_v15, %s3094_s0 }
 0xfee   :  { %v1054_v30 = vpop.permute.xlu0 %1053 }
 0xfef   :  { %v1056_v32 = vadd.f32 %v1054_v30, %v1046_v29  ;;  %v1076_v5 = vpop.permute.xlu1 %1075 }
 0xff0   :  { %v1078_v33 = vadd.f32 %v1076_v5, %v1068_v31 }
 0xff1   :  { %2984 = vtanh.f32 %v1056_v32 }
 0xff2   :  { %2986 = vtanh.f32 %v1078_v33 }
 0xffb   :  { %v2985_v34 = vpop.eup %2984 }
 0xffc   :  { %v2987_v10 = vpop.eup %2986  ;;  %1059 = vrot.lane.b32.xlu0 %v2985_v34, %s3094_s0 }
 0xffd   :  { %1081 = vrot.lane.b32.xlu1 %v2987_v10, %s3094_s0 }
0x106e   :  { %v1060_v11 = vpop.permute.xlu0 %1059 }
0x106f   :  { %v1062_v16 = vmul.f32 %v1060_v11, %v1044_v26  ;;  %v1082_v18 = vpop.permute.xlu1 %1081 }
0x1070   :  { %v1084_v19 = vmul.f32 %v1082_v18, %v1066_v43 }
0x1071   :  { %1086 = vrot.lane.b32.xlu0 %v1062_v16, %s3095_s28 }
0x1072   :  { %1091 = vrot.lane.b32.xlu1 %v1084_v19, %s3096_s29 }
0x10e3   :  { %v1087_v20 = vpop.permute.xlu0 %1086 }
0x10e4   :  { %1089 = vst.msk [vmem:[#allocation5] sm:$0xff] %vm327_vm4, %v1087_v20  ;;  %v1092_v35 = vpop.permute.xlu1 %1091 }
0x10e5   :  { %1094 = vst.msk [vmem:[#allocation5] sm:$0xff] %vm333_vm5, %v1092_v35 }
0x10ec   :  { %v1095_v61 = vld [vmem:[#allocation5] sm:$0xff] }
0x10ed   :  { %v1096_v37 = vpack.c.bf16 %v1095_v61, %v1095_v61 }
0x10ef   :  { %2647 = vmatmul.mubr.msk.bf16.vlgmr.msra.gmra.mrb[24].mxu0 %vm179_vm0, %v1096_v37 }
0x10f0   :  { %2754 = vmatprep.mubr.msk.bf16.mxu0 %vm3097_vm6, %v3092_v1 }
0x11c2   :  { %v1182_v36 = vpop.f32.mrb[24].mxu0 }
0x11c3   :  { %v1190_v59 = vadd.f32 %v1182_v36, %v3257_v13  ;;  %v1184_v38 = vpop.f32.mrb[25].mxu0 }
0x11c4   :  { %v1192_v39 = vadd.f32 %v1184_v38, %v3238_v45  ;;  %v1186_v42 = vpop.f32.mrb[26].mxu0 }
0x11c5   :  { %2988 = vtanh.f32 %v1190_v59  ;;  %v1187_v44 = vpop.f32.mrb[27].mxu0  ;;  %v1193_v50 = vmul.f32 0.5, %v1190_v59 }
0x11c6   :  { %2990 = vtanh.f32 %v1192_v39  ;;  %v1215_v40 = vmul.f32 0.5, %v1192_v39 }
0x11c7   :  { %2992 = vtanh.f32 %v1193_v50  ;;  %v2894_v50 = vld [vmem:[#allocation6 + $0x10] ss:$40 sps:$4 sm:$0xff]  }
0x11c8   :  { %2994 = vtanh.f32 %v1215_v40  ;;  %2747 = vmatpush3.bf16.msra.mxu0 %v2894_v50 }
0x11c9   :  { %2748 = vmatprep.subr.bf16.mxu0 %v3092_v1 }
0x11cf   :  { %v2989_v46 = vpop.eup %2988 }
0x11d0   :  { %v2991_v48 = vpop.eup %2990  ;;  %1200 = vrot.lane.b32.xlu0 %v2989_v46, %s3094_s0 }
0x11d1   :  { %1222 = vrot.lane.b32.xlu1 %v2991_v48, %s3094_s0  ;;  %v2993_v47 = vpop.eup %2992 }
0x11d2   :  { %v2995_v51 = vpop.eup %2994  ;;  %v1195_v13 = vmul.f32 0.5, %v2993_v47 }
0x11d3   :  { %v1217_v52 = vmul.f32 0.5, %v2995_v51  ;;  %v2895_v51 = vld [vmem:[#allocation6 + $0x60] ss:$40 sps:$4 sm:$0xff]  }
0x11d4   :  { %v1196_v54 = vadd.f32 0.5, %v1195_v13  ;;  %2749 = vmatpush3.bf16.msra.mxu0 %v2895_v51  ;;  %v2896_v13 = vld [vmem:[#allocation6 + $0xb0] ss:$40 sps:$4 sm:$0xff]  }
0x11d5   :  { %v1218_v55 = vadd.f32 0.5, %v1217_v52  ;;  %2750 = vmatprep.subr.bf16.mxu0 %v3092_v1  ;;  %v2897_v52 = vld [vmem:[#allocation6 + $0x100] ss:$40 sps:$4 sm:$0xff]  }
0x11d6   :  { %v1198_v60 = vmul.f32 %v1196_v54, %v1056_v32 }
0x11d7   :  { %v1220_v63 = vmul.f32 %v1218_v55, %v1078_v33 }
0x11d8   :  { %2751 = vmatpush3.bf16.msra.mxu0 %v2896_v13 }
0x11d9   :  { %2752 = vmatprep.subr.bf16.mxu0 %v3092_v1 }
0x11dc   :  { %2753 = vmatpush3.bf16.msra.mxu0 %v2897_v52 }
0x11dd   :  { %2758 = vmatprep.subr.bf16.mxu0 %v3092_v1 }
0x1242   :  { %v1201_v45 = vpop.permute.xlu0 %1200 }
0x1243   :  { %v1203_v57 = vmul.f32 %v1201_v45, %v1196_v54  ;;  %v1223_v58 = vpop.permute.xlu1 %1222 }
0x1244   :  { %v1225_v56 = vmul.f32 %v1223_v58, %v1218_v55  ;;  %v1488_v58 = vld [vmem:[%s3635_s2] sm:$0xff] }
0x1245   :  { %1205 = vrot.lane.b32.xlu0 %v1203_v57, %s3094_s0 }
0x1246   :  { %1227 = vrot.lane.b32.xlu1 %v1225_v56, %s3094_s0 }
0x12b7   :  { %v1206_v62 = vpop.permute.xlu0 %1205 }
0x12b8   :  { %v3384_v2 = vadd.f32 %v1206_v62, %v1198_v60  ;;  %v1228_v6 = vpop.permute.xlu1 %1227 }
0x12b9   :  { %v3386_v9 = vadd.f32 %v1228_v6, %v1220_v63 }
0x12ba   :  { %2996 = vtanh.f32 %v3384_v2 }
0x12bb   :  { %2998 = vtanh.f32 %v3386_v9 }
0x12c4   :  { %v2997_v17 = vpop.eup %2996 }
0x12c5   :  { %v2999_v22 = vpop.eup %2998  ;;  %1211 = vrot.lane.b32.xlu0 %v2997_v17, %s3094_s0 }
0x12c6   :  { %1233 = vrot.lane.b32.xlu1 %v2999_v22, %s3094_s0 }
0x1337   :  { %v1212_v3 = vpop.permute.xlu0 %1211 }
0x1338   :  { %v1214_v25 = vmul.f32 %v1212_v3, %v1196_v54  ;;  %v1234_v26 = vpop.permute.xlu1 %1233  ;;  %v1583_v3 = vand.u32 %v1569_v24, %v3155_v7  ;;  %v1559_v7 = vld [vmem:[%s3634_s1 + $0x10] sm:$0xff] }
0x1339   :  { %v1236_v53 = vmul.f32 %v1234_v26, %v1218_v55 }
0x133a   :  { %1238 = vrot.lane.b32.xlu0 %v1214_v25, %s3095_s28 }
0x133b   :  { %1243 = vrot.lane.b32.xlu1 %v1236_v53, %s3096_s29 }
0x13ac   :  { %v1239_v43 = vpop.permute.xlu0 %1238 }
0x13ad   :  { %1241 = vst.msk [vmem:[#allocation5] sm:$0xff] %vm327_vm4, %v1239_v43  ;;  %v1244_v27 = vpop.permute.xlu1 %1243  ;;  %v1557_v43 = vld [vmem:[%s3634_s1] sm:$0xff] }
0x13ae   :  { %1246 = vst.msk [vmem:[#allocation5] sm:$0xff] %vm333_vm5, %v1244_v27  ;;  %v1558_v27 = vld [vmem:[%s3634_s1 + $0x8] sm:$0xff] }
0x13b5   :  { %v1247_v28 = vld [vmem:[#allocation5] sm:$0xff] }
0x13b6   :  { %v1248_v15 = vpack.c.bf16 %v1247_v28, %v1247_v28 }
0x13b8   :  { %2656 = vmatmul.mubr.msk.bf16.vlgmr.msra.gmra.mrb[16].mxu1 %vm179_vm0, %v1248_v15 }
0x13b9   :  { %2776 = vmatprep.mubr.msk.bf16.mxu1 %vm3097_vm6, %v3092_v1  ;;  %2775 = vmatpush3.bf16.msra.mxu1 %v1659_v0 }
0x13ba   :  { %2780 = vmatprep.subr.bf16.mxu1 %v3092_v1 }
0x148b   :  { %v1334_v29 = vpop.f32.mrb[16].mxu1 }
0x148c   :  { %v1342_v30 = vadd.f32 %v1334_v29, %v3261_v21  ;;  %v1336_v31 = vpop.f32.mrb[17].mxu1  ;;  %v1565_v29 = vpack.c.bf16 %v1558_v27, %v1557_v43  ;;  %v2901_v43 = vld [vmem:[#allocation6 + $0x70] ss:$40 sps:$4 sm:$0xff]  }
0x148d   :  { %v1344_v32 = vadd.f32 %v1336_v31, %v3234_v41  ;;  %v1338_v5 = vpop.f32.mrb[18].mxu1  ;;  %v1560_v31 = vld [vmem:[%s3634_s1 + $0x18] sm:$0xff] }
0x148e   :  { %3000 = vtanh.f32 %v1342_v30  ;;  %v1339_v33 = vpop.f32.mrb[19].mxu1  ;;  %v1345_v11 = vmul.f32 0.5, %v1342_v30  ;;  %v1562_v5 = vld [vmem:[%s3634_s1 + $0x28] sm:$0xff] }
0x148f   :  { %3002 = vtanh.f32 %v1344_v32  ;;  %v1367_v16 = vmul.f32 0.5, %v1344_v32  ;;  %v1561_v32 = vld [vmem:[%s3634_s1 + $0x20] sm:$0xff]  ;;  %v1566_v33 = vpack.c.bf16 %v1560_v31, %v1559_v7 }
0x1490   :  { %3004 = vtanh.f32 %v1345_v11  ;;  %v1564_v11 = vld [vmem:[%s3634_s1 + $0x38] sm:$0xff] }
0x1491   :  { %3006 = vtanh.f32 %v1367_v16 }
0x1498   :  { %v3001_v34 = vpop.eup %3000 }
0x1499   :  { %v3003_v10 = vpop.eup %3002  ;;  %1352 = vrot.lane.b32.xlu0 %v3001_v34, %s3094_s0  ;;  %v1567_v34 = vpack.c.bf16 %v1562_v5, %v1561_v32 }
0x149a   :  { %1374 = vrot.lane.b32.xlu1 %v3003_v10, %s3094_s0  ;;  %v3005_v18 = vpop.eup %3004  ;;  %v1563_v10 = vld [vmem:[%s3634_s1 + $0x30] sm:$0xff] }
0x149b   :  { %v3007_v19 = vpop.eup %3006  ;;  %v1347_v21 = vmul.f32 0.5, %v3005_v18  ;;  %v1568_v16 = vpack.c.bf16 %v1564_v11, %v1563_v10  ;;  %v2898_v18 = vld [vmem:[#allocation6 + $0x20] ss:$40 sps:$4 sm:$0xff]  }
0x149c   :  { %v1369_v20 = vmul.f32 0.5, %v3007_v19  ;;  %v2899_v19 = vld [vmem:[#allocation6 + $0x70] ss:$40 sps:$4 sm:$0xff]  }
0x149d   :  { %v1348_v35 = vadd.f32 0.5, %v1347_v21  ;;  %v2663_v21 = vld [vmem:[%s3637_s4 + $0x3] ss:$0 sm:$0xff] }
0x149e   :  { %v1370_v61 = vadd.f32 0.5, %v1369_v20 }
0x149f   :  { %v1350_v38 = vmul.f32 %v1348_v35, %v3384_v2  ;;  %v1500_v2 = vld [vmem:[#allocation6 + $0x14] sm:$0xf] }
0x14a0   :  { %v1372_v42 = vmul.f32 %v1370_v61, %v3386_v9  ;;  %v1514_v6 = vsel %vm1512_vm7, %v1500_v2, 0  ;;  %v2657_v9 = vld [vmem:[%s3637_s4 + $0x2] ss:$0 sm:$0xff] }
0x150b   :  { %v1353_v41 = vpop.permute.xlu0 %1352 }
0x150c   :  { %v1355_v37 = vmul.f32 %v1353_v41, %v1348_v35  ;;  %v1375_v36 = vpop.permute.xlu1 %1374 }
0x150d   :  { %v1377_v59 = vmul.f32 %v1375_v36, %v1370_v61 }
0x150e   :  { %1357 = vrot.lane.b32.xlu0 %v1355_v37, %s3094_s0 }
0x150f   :  { %1379 = vrot.lane.b32.xlu1 %v1377_v59, %s3094_s0 }
0x1580   :  { %v1358_v39 = vpop.permute.xlu0 %1357 }
0x1581   :  { %v1360_v44 = vadd.f32 %v1358_v39, %v1350_v38  ;;  %v1380_v46 = vpop.permute.xlu1 %1379 }
0x1582   :  { %v1382_v48 = vadd.f32 %v1380_v46, %v1372_v42  ;;  %v2669_v42 = vld [vmem:[%s3637_s4 + $0x4] ss:$0 sm:$0xff] }
0x1583   :  { %3008 = vtanh.f32 %v1360_v44 }
0x1584   :  { %3010 = vtanh.f32 %v1382_v48 }
0x158d   :  { %v3009_v40 = vpop.eup %3008 }
0x158e   :  { %v3011_v47 = vpop.eup %3010  ;;  %1363 = vrot.lane.b32.xlu0 %v3009_v40, %s3094_s0 }
0x158f   :  { %1385 = vrot.lane.b32.xlu1 %v3011_v47, %s3094_s0 }
0x1600   :  { %v1364_v54 = vpop.permute.xlu0 %1363 }
0x1601   :  { %v1366_v45 = vmul.f32 %v1364_v54, %v1348_v35  ;;  %v1386_v55 = vpop.permute.xlu1 %1385 }
0x1602   :  { %v1388_v57 = vmul.f32 %v1386_v55, %v1370_v61 }
0x1603   :  { %1390 = vrot.lane.b32.xlu0 %v1366_v45, %s3095_s28 }
0x1604   :  { %1395 = vrot.lane.b32.xlu1 %v1388_v57, %s3096_s29 }
0x1607   :  { %1490 = vrot.lane.b32.xlu0 %v1488_v58, %s3098_s8 }
0x1675   :  { %v1391_v56 = vpop.permute.xlu0 %1390 }
0x1676   :  { %1393 = vst.msk [vmem:[#allocation5] sm:$0xff] %vm327_vm4, %v1391_v56  ;;  %v1396_v60 = vpop.permute.xlu1 %1395 }
0x1677   :  { %1398 = vst.msk [vmem:[#allocation5] sm:$0xff] %vm333_vm5, %v1396_v60 }
0x1679   :  { %v1491_v25 = vpop.permute.xlu0 %1490 }
0x167e   :  { %v1399_v62 = vld [vmem:[#allocation5] sm:$0xff] }
0x167f   :  { %v1400_v63 = vpack.c.bf16 %v1399_v62, %v1399_v62 }
0x1681   :  { %2755 = vmatmul.mubr.msk.bf16.vlgmr.msra.gmra.mrb[28].mxu0 %vm179_vm0, %v1400_v63 }
0x1682   :  { %2760 = vmatprep.mubr.msk.bf16.mxu0 %vm3097_vm6, %v3092_v1  ;;  %2759 = vmatpush3.bf16.msra.mxu0 %v1514_v6 }
0x1683   :  { %2764 = vmatprep.subr.bf16.mxu0 %v1583_v3 }
0x1754   :  { %v1477_v12 = vpop.f32.mrb[28].mxu0 }
0x1755   :  { %v1478_v4 = vadd.f32 %v2657_v9, %v1477_v12  ;;  %v2756_v14 = vpop.f32.mrb[29].mxu0 }
0x1756   :  { %v1480_v49 = vpop.f32.mrb[30].mxu0 }
0x1757   :  { %1484 = vst.msk [vmem:[%s3639_s6] sm:$0xff] %vm1483_vm8, %v1478_v4  ;;  %v1485_v17 = vmul.f32 0.5, %v1478_v4  ;;  %v2757_v22 = vpop.f32.mrb[31].mxu0 }
0x1759   :  { %v1486_v8 = vmul.f32 1.442695, %v1485_v17 }
0x175b   :  { %3012 = vpow2.f32 %v1486_v8 }
0x1765   :  { %v3013_v26 = vpop.eup %3012 }
0x1766   :  { %v1493_v53 = vmul.f32 %v3013_v26, %v1491_v25 }
0x1768   :  { %1495 = vrot.lane.b32.xlu1 %v1493_v53, %s3099_s11  ;;  %v2900_v53 = vld [vmem:[#allocation6 + $0x20] ss:$40 sps:$4 sm:$0xff]  }
0x17da   :  { %v1496_v28 = vpop.permute.xlu1 %1495 }
0x17db   :  { %v1498_v15 = vadd.f32 %v1496_v28, %v1478_v4 }
0x17dd   :  { %v1499_v30 = vpack.c.bf16 %v1498_v15, %v1498_v15 }
0x17df   :  { %2761 = vmatmul.mubr.msk.bf16.vlgmr.msra.gmra.mrb[32].mxu0 %vm1508_vm9, %v1499_v30  ;;  %2777 = vmatmul.mubr.msk.bf16.vlgmr.msra.gmra.mrb[20].mxu1 %vm1508_vm9, %v1499_v30 }
0x17e0   :  { %2765 = vmatpush3.bf16.msra.mxu0 %v1583_v3  ;;  %2766 = vmatprep.mubr.msk.bf16.mxu0 %vm67_vm3, %v1565_v29 }
0x17e1   :  { %2784 = vmatprep.mubr.msk.bf16.mxu1 %vm3097_vm6, %v3092_v1  ;;  %2788 = vmatprep.subr.bf16.mxu0 %v3092_v1 }
0x17e2   :  { %2781 = vmatpush3.bf16.msra.mxu1 %v2898_v18 }
0x17e3   :  { %2782 = vmatprep.subr.bf16.mxu1 %v3092_v1 }
0x17e6   :  { %2783 = vmatpush3.bf16.msra.mxu1 %v2899_v19 }
0x17e7   :  { %2767 = vmatmul.mubr.msk.bf16.vlgmr.msra.gmra.mrb[36].mxu0 %vm67_vm3, %v1566_v33  ;;  %2796 = vmatprep.subr.bf16.mxu1 %v3092_v1 }
0x17e8   :  { %2770 = vmatprep.mubr.msk.bf16.mxu0 %vm67_vm3, %v1567_v34  ;;  %2789 = vmatpush3.bf16.msra.mxu0 %v2900_v53 }
0x17e9   :  { %2790 = vmatprep.subr.bf16.mxu0 %v3092_v1 }
0x17ec   :  { %2791 = vmatpush3.bf16.msra.mxu0 %v2901_v43 }
0x17ed   :  { %2804 = vmatprep.subr.bf16.mxu0 %v3092_v1 }
0x17ef   :  { %2771 = vmatmul.mubr.msk.bf16.gmra.mrb[40].mxu0 %vm67_vm3, %v1568_v16 }
0x17f0   :  { %2792 = vmatprep.mubr.msk.bf16.mxu0 %vm3097_vm6, %v3092_v1 }
0x18b2   :  { %v1550_v20 = vpop.f32.mrb[32].mxu0  ;;  %v1695_v35 = vpop.f32.mrb[20].mxu1 }
0x18b3   :  { %v1551_v41 = vadd.f32 %v2663_v21, %v1550_v20  ;;  %v2762_v61 = vpop.f32.mrb[33].mxu0  ;;  %v2778_v37 = vpop.f32.mrb[21].mxu1  ;;  %v1696_v44 = vadd.f32 %v2669_v42, %v1695_v35 }
0x18b4   :  { %v1553_v36 = vpop.f32.mrb[34].mxu0  ;;  %v1698_v59 = vpop.f32.mrb[22].mxu1  ;;  %v2902_v61 = vld [vmem:[#allocation6 + $0x20] ss:$40 sps:$4 sm:$0xff]   ;;  %v2903_v37 = vld [vmem:[#allocation6 + $0x70] ss:$40 sps:$4 sm:$0xff]  }
0x18b5   :  { %3014 = vtanh.f32 %v1551_v41  ;;  %v2763_v38 = vpop.f32.mrb[35].mxu0  ;;  %v2779_v39 = vpop.f32.mrb[23].mxu1 }
0x18ba   :  { %v2768_v46 = vpop.f32.mrb[36].mxu0 }
0x18bb   :  { %v3475_v48 = vadd.f32 %v2768_v46, %v1696_v44  ;;  %v1619_v50 = vpop.f32.mrb[37].mxu0 }
0x18bc   :  { %v1701_v40 = vadd.f32 %v1696_v44, %v1619_v50  ;;  %v2769_v47 = vpop.f32.mrb[38].mxu0 }
0x18bd   :  { %v3477_v51 = vadd.f32 %v2769_v47, %v1696_v44  ;;  %v1622_v13 = vpop.f32.mrb[39].mxu0 }
0x18be   :  { %v1702_v52 = vadd.f32 %v1696_v44, %v1622_v13 }
0x18bf   :  { %v3015_v54 = vpop.eup %3014 }
0x18c0   :  { %v1718_v45 = vpack.c.bf16 %v3015_v54, %v3015_v54 }
0x18c2   :  { %v2772_v55 = vpop.f32.mrb[40].mxu0  ;;  %2785 = vmatmul.mubr.msk.bf16.vlgmr.msra.gmra.mrb[24].mxu1 %vm327_vm4, %v1718_v45 }
0x18c3   :  { %v3480_v57 = vadd.f32 %v2772_v55, %v1696_v44  ;;  %v1635_v58 = vpop.f32.mrb[41].mxu0  ;;  %2800 = vmatprep.mubr.msk.bf16.mxu1 %vm3097_vm6, %v3092_v1  ;;  %2797 = vmatpush3.bf16.msra.mxu1 %v2902_v61 }
0x18c4   :  { %v3484_v56 = vadd.f32 %v1696_v44, %v1635_v58  ;;  %v2773_v60 = vpop.f32.mrb[42].mxu0  ;;  %2798 = vmatprep.subr.bf16.mxu1 %v3092_v1 }
0x18c5   :  { %v3486_v62 = vadd.f32 %v2773_v60, %v1696_v44  ;;  %v1638_v63 = vpop.f32.mrb[43].mxu0 }
0x18c6   :  { %v3488_v2 = vadd.f32 %v1696_v44, %v1638_v63 }
0x18c7   :  { %2799 = vmatpush3.bf16.msra.mxu1 %v2903_v37 }
0x18c8   :  { %2812 = vmatprep.subr.bf16.mxu1 %v3092_v1 }
0x1995   :  { %v1772_v6 = vpop.f32.mrb[24].mxu1 }
0x1996   :  { %v1778_v9 = vadd.f32 %v1772_v6, %v1701_v40  ;;  %v2786_v12 = vpop.f32.mrb[25].mxu1 }
0x1997   :  { %v1775_v4 = vpop.f32.mrb[26].mxu1  ;;  %v2905_v12 = vld [vmem:[#allocation6 + $0x70] ss:$40 sps:$4 sm:$0xff]  }
0x1998   :  { %3016 = vtanh.f32 %v1778_v9  ;;  %v2787_v14 = vpop.f32.mrb[27].mxu1  ;;  %v1779_v17 = vmul.f32 0.5, %v1778_v9 }
0x199a   :  { %3018 = vtanh.f32 %v1779_v17 }
0x19a2   :  { %v3017_v49 = vpop.eup %3016 }
0x19a3   :  { %1786 = vrot.lane.b32.xlu0 %v3017_v49, %s3094_s0 }
0x19a4   :  { %v3019_v22 = vpop.eup %3018 }
0x19a5   :  { %v1781_v8 = vmul.f32 0.5, %v3019_v22 }
0x19a7   :  { %v1782_v23 = vadd.f32 0.5, %v1781_v8 }
0x19a9   :  { %v1784_v3 = vmul.f32 %v3015_v54, %v1782_v23 }
0x1a15   :  { %v1787_v0 = vpop.permute.xlu0 %1786 }
0x1a16   :  { %v1789_v24 = vmul.f32 %v1787_v0, %v1782_v23 }
0x1a18   :  { %1791 = vrot.lane.b32.xlu1 %v1789_v24, %s3094_s0 }
0x1a8a   :  { %v1792_v25 = vpop.permute.xlu1 %1791 }
0x1a8b   :  { %v1794_v26 = vadd.f32 %v1792_v25, %v1784_v3 }
0x1a8d   :  { %3020 = vtanh.f32 %v1794_v26 }
0x1a97   :  { %v3021_v27 = vpop.eup %3020 }
0x1a98   :  { %1797 = vrot.lane.b32.xlu0 %v3021_v27, %s3094_s0 }
0x1b0a   :  { %v1798_v28 = vpop.permute.xlu0 %1797 }
0x1b0b   :  { %v3495_v15 = vmul.f32 %v1798_v28, %v1782_v23 }
0x1b0d   :  { %v1807_v29 = vpack.c.bf16 %v3495_v15, %v3495_v15 }
0x1b0f   :  { %1813 = vrot.lane.b32.xlu1 %v1807_v29, %s3095_s28 }
0x1b81   :  { %v1814_v30 = vpop.permute.xlu1 %1813 }
0x1b82   :  { %2793 = vmatmul.mubr.msk.bf16.vlgmr.msra.gmra.mrb[44].mxu0 %vm327_vm4, %v1814_v30 }
0x1b83   :  { %2808 = vmatprep.mubr.msk.bf16.mxu0 %vm3097_vm6, %v3092_v1 }
0x1c55   :  { %v1864_v7 = vpop.f32.mrb[44].mxu0 }
0x1c56   :  { %v1870_v31 = vadd.f32 %v1864_v7, %v1702_v52  ;;  %v2794_v32 = vpop.f32.mrb[45].mxu0 }
0x1c57   :  { %v1867_v5 = vpop.f32.mrb[46].mxu0  ;;  %v2907_v32 = vld [vmem:[#allocation6 + $0x70] ss:$40 sps:$4 sm:$0xff]  }
0x1c58   :  { %3022 = vtanh.f32 %v1870_v31  ;;  %v2795_v33 = vpop.f32.mrb[47].mxu0  ;;  %v1871_v10 = vmul.f32 0.5, %v1870_v31 }
0x1c5a   :  { %3024 = vtanh.f32 %v1871_v10 }
0x1c62   :  { %v3023_v34 = vpop.eup %3022 }
0x1c63   :  { %1878 = vrot.lane.b32.xlu0 %v3023_v34, %s3094_s0 }
0x1c64   :  { %v3025_v11 = vpop.eup %3024 }
0x1c65   :  { %v1873_v16 = vmul.f32 0.5, %v3025_v11 }
0x1c67   :  { %v1874_v18 = vadd.f32 0.5, %v1873_v16 }
0x1c69   :  { %v1876_v20 = vmul.f32 %v1874_v18, %v1794_v26 }
0x1cd5   :  { %v1879_v19 = vpop.permute.xlu0 %1878 }
0x1cd6   :  { %v1881_v21 = vmul.f32 %v1879_v19, %v1874_v18 }
0x1cd8   :  { %1883 = vrot.lane.b32.xlu1 %v1881_v21, %s3094_s0 }
0x1d4a   :  { %v1884_v35 = vpop.permute.xlu1 %1883 }
0x1d4b   :  { %v1886_v41 = vadd.f32 %v1884_v35, %v1876_v20 }
0x1d4d   :  { %3026 = vtanh.f32 %v1886_v41 }
0x1d57   :  { %v3027_v36 = vpop.eup %3026 }
0x1d58   :  { %1889 = vrot.lane.b32.xlu0 %v3027_v36, %s3094_s0 }
0x1dca   :  { %v1890_v59 = vpop.permute.xlu0 %1889 }
0x1dcb   :  { %v3508_v38 = vmul.f32 %v1890_v59, %v1874_v18 }
0x1dcd   :  { %v1899_v39 = vpack.c.bf16 %v3508_v38, %v3508_v38 }
0x1dcf   :  { %1905 = vrot.lane.b32.xlu1 %v1899_v39, %s3095_s28 }
0x1e41   :  { %v1906_v42 = vpop.permute.xlu1 %1905 }
0x1e42   :  { %2801 = vmatmul.mubr.msk.bf16.vlgmr.msra.gmra.mrb[28].mxu1 %vm327_vm4, %v1906_v42 }
0x1e43   :  { %2816 = vmatprep.mubr.msk.bf16.mxu1 %vm3097_vm6, %v3092_v1 }
0x1f15   :  { %v1956_v44 = vpop.f32.mrb[28].mxu1 }
0x1f16   :  { %v1962_v46 = vadd.f32 %v1956_v44, %v3475_v48  ;;  %v2802_v50 = vpop.f32.mrb[29].mxu1  ;;  %v2904_v48 = vld [vmem:[#allocation6 + $0x20] ss:$40 sps:$4 sm:$0xff]  }
0x1f17   :  { %v1959_v40 = vpop.f32.mrb[30].mxu1  ;;  %2805 = vmatpush3.bf16.msra.mxu0 %v2904_v48  ;;  %v2909_v50 = vld [vmem:[#allocation6 + $0x70] ss:$40 sps:$4 sm:$0xff]  }
0x1f18   :  { %3028 = vtanh.f32 %v1962_v46  ;;  %v2803_v47 = vpop.f32.mrb[31].mxu1  ;;  %v1963_v52 = vmul.f32 0.5, %v1962_v46  ;;  %2806 = vmatprep.subr.bf16.mxu0 %v3092_v1 }
0x1f1a   :  { %3030 = vtanh.f32 %v1963_v52 }
0x1f1b   :  { %2807 = vmatpush3.bf16.msra.mxu0 %v2905_v12 }
0x1f1c   :  { %2820 = vmatprep.subr.bf16.mxu0 %v3092_v1 }
0x1f22   :  { %v3029_v13 = vpop.eup %3028 }
0x1f23   :  { %1970 = vrot.lane.b32.xlu0 %v3029_v13, %s3094_s0 }
0x1f24   :  { %v3031_v54 = vpop.eup %3030 }
0x1f25   :  { %v1965_v45 = vmul.f32 0.5, %v3031_v54 }
0x1f27   :  { %v1966_v55 = vadd.f32 0.5, %v1965_v45 }
0x1f29   :  { %v1968_v63 = vmul.f32 %v1966_v55, %v1886_v41 }
0x1f95   :  { %v1971_v58 = vpop.permute.xlu0 %1970 }
0x1f96   :  { %v1973_v60 = vmul.f32 %v1971_v58, %v1966_v55 }
0x1f98   :  { %1975 = vrot.lane.b32.xlu1 %v1973_v60, %s3094_s0 }
0x200a   :  { %v1976_v6 = vpop.permute.xlu1 %1975 }
0x200b   :  { %v1978_v9 = vadd.f32 %v1976_v6, %v1968_v63 }
0x200d   :  { %3032 = vtanh.f32 %v1978_v9 }
0x2017   :  { %v3033_v4 = vpop.eup %3032 }
0x2018   :  { %1981 = vrot.lane.b32.xlu0 %v3033_v4, %s3094_s0 }
0x208a   :  { %v1982_v14 = vpop.permute.xlu0 %1981 }
0x208b   :  { %v3522_v49 = vmul.f32 %v1982_v14, %v1966_v55 }
0x208d   :  { %v1991_v17 = vpack.c.bf16 %v3522_v49, %v3522_v49 }
0x208f   :  { %1997 = vrot.lane.b32.xlu1 %v1991_v17, %s3095_s28 }
0x2101   :  { %v1998_v22 = vpop.permute.xlu1 %1997 }
0x2102   :  { %2809 = vmatmul.mubr.msk.bf16.vlgmr.msra.gmra.mrb[48].mxu0 %vm327_vm4, %v1998_v22 }
0x2103   :  { %2824 = vmatprep.mubr.msk.bf16.mxu0 %vm3097_vm6, %v3092_v1 }
0x21d5   :  { %v2048_v8 = vpop.f32.mrb[48].mxu0 }
0x21d6   :  { %v2054_v23 = vadd.f32 %v2048_v8, %v3477_v51  ;;  %v2810_v0 = vpop.f32.mrb[49].mxu0  ;;  %v2906_v51 = vld [vmem:[#allocation6 + $0x20] ss:$40 sps:$4 sm:$0xff]  }
0x21d7   :  { %v2051_v24 = vpop.f32.mrb[50].mxu0  ;;  %2813 = vmatpush3.bf16.msra.mxu1 %v2906_v51  ;;  %v2911_v0 = vld [vmem:[#allocation6 + $0x70] ss:$40 sps:$4 sm:$0xff]  }
0x21d8   :  { %3034 = vtanh.f32 %v2054_v23  ;;  %v2811_v3 = vpop.f32.mrb[51].mxu0  ;;  %v2055_v26 = vmul.f32 0.5, %v2054_v23  ;;  %2814 = vmatprep.subr.bf16.mxu1 %v3092_v1 }
0x21da   :  { %3036 = vtanh.f32 %v2055_v26 }
0x21db   :  { %2815 = vmatpush3.bf16.msra.mxu1 %v2907_v32 }
0x21dc   :  { %2828 = vmatprep.subr.bf16.mxu1 %v3092_v1 }
0x21e2   :  { %v3035_v25 = vpop.eup %3034 }
0x21e3   :  { %2062 = vrot.lane.b32.xlu0 %v3035_v25, %s3094_s0 }
0x21e4   :  { %v3037_v53 = vpop.eup %3036 }
0x21e5   :  { %v2057_v43 = vmul.f32 0.5, %v3037_v53 }
0x21e7   :  { %v2058_v27 = vadd.f32 0.5, %v2057_v43 }
0x21e9   :  { %v2060_v30 = vmul.f32 %v2058_v27, %v1978_v9 }
0x2255   :  { %v2063_v28 = vpop.permute.xlu0 %2062 }
0x2256   :  { %v2065_v29 = vmul.f32 %v2063_v28, %v2058_v27 }
0x2258   :  { %2067 = vrot.lane.b32.xlu1 %v2065_v29, %s3094_s0 }
0x22ca   :  { %v2068_v7 = vpop.permute.xlu1 %2067 }
0x22cb   :  { %v2070_v31 = vadd.f32 %v2068_v7, %v2060_v30 }
0x22cd   :  { %3038 = vtanh.f32 %v2070_v31 }
0x22d7   :  { %v3039_v5 = vpop.eup %3038 }
0x22d8   :  { %2073 = vrot.lane.b32.xlu0 %v3039_v5, %s3094_s0 }
0x234a   :  { %v2074_v33 = vpop.permute.xlu0 %2073 }
0x234b   :  { %v3536_v34 = vmul.f32 %v2074_v33, %v2058_v27 }
0x234d   :  { %v2083_v10 = vpack.c.bf16 %v3536_v34, %v3536_v34 }
0x234f   :  { %2089 = vrot.lane.b32.xlu1 %v2083_v10, %s3095_s28 }
0x23c1   :  { %v2090_v11 = vpop.permute.xlu1 %2089 }
0x23c2   :  { %2817 = vmatmul.mubr.msk.bf16.vlgmr.msra.gmra.mrb[32].mxu1 %vm327_vm4, %v2090_v11 }
0x23c3   :  { %2832 = vmatprep.mubr.msk.bf16.mxu1 %vm3097_vm6, %v3092_v1 }
0x2495   :  { %v2140_v16 = vpop.f32.mrb[32].mxu1 }
0x2496   :  { %v2146_v18 = vadd.f32 %v2140_v16, %v3484_v56  ;;  %v2818_v19 = vpop.f32.mrb[33].mxu1  ;;  %v2908_v56 = vld [vmem:[#allocation6 + $0x20] ss:$40 sps:$4 sm:$0xff]  }
0x2497   :  { %v2143_v21 = vpop.f32.mrb[34].mxu1  ;;  %2821 = vmatpush3.bf16.msra.mxu0 %v2908_v56  ;;  %v2913_v19 = vld [vmem:[#allocation6 + $0x70] ss:$40 sps:$4 sm:$0xff]  }
0x2498   :  { %3040 = vtanh.f32 %v2146_v18  ;;  %v2819_v20 = vpop.f32.mrb[35].mxu1  ;;  %v2147_v41 = vmul.f32 0.5, %v2146_v18  ;;  %2822 = vmatprep.subr.bf16.mxu0 %v3092_v1 }
0x249a   :  { %3042 = vtanh.f32 %v2147_v41 }
0x249b   :  { %2823 = vmatpush3.bf16.msra.mxu0 %v2909_v50 }
0x249c   :  { %2836 = vmatprep.subr.bf16.mxu0 %v3092_v1 }
0x24a2   :  { %v3041_v35 = vpop.eup %3040 }
0x24a3   :  { %2154 = vrot.lane.b32.xlu0 %v3041_v35, %s3094_s0 }
0x24a4   :  { %v3043_v61 = vpop.eup %3042 }
0x24a5   :  { %v2149_v37 = vmul.f32 0.5, %v3043_v61 }
0x24a7   :  { %v2150_v36 = vadd.f32 0.5, %v2149_v37 }
0x24a9   :  { %v2152_v42 = vmul.f32 %v2150_v36, %v2070_v31 }
0x2515   :  { %v2155_v59 = vpop.permute.xlu0 %2154 }
0x2516   :  { %v2157_v39 = vmul.f32 %v2155_v59, %v2150_v36 }
0x2518   :  { %2159 = vrot.lane.b32.xlu1 %v2157_v39, %s3094_s0 }
0x258a   :  { %v2160_v44 = vpop.permute.xlu1 %2159 }
0x258b   :  { %v2162_v46 = vadd.f32 %v2160_v44, %v2152_v42 }
0x258d   :  { %3044 = vtanh.f32 %v2162_v46 }
0x2597   :  { %v3045_v40 = vpop.eup %3044 }
0x2598   :  { %2165 = vrot.lane.b32.xlu0 %v3045_v40, %s3094_s0 }
0x260a   :  { %v2166_v47 = vpop.permute.xlu0 %2165 }
0x260b   :  { %v3550_v13 = vmul.f32 %v2166_v47, %v2150_v36 }
0x260d   :  { %v2175_v52 = vpack.c.bf16 %v3550_v13, %v3550_v13 }
0x260f   :  { %2181 = vrot.lane.b32.xlu1 %v2175_v52, %s3095_s28 }
0x2681   :  { %v2182_v54 = vpop.permute.xlu1 %2181 }
0x2682   :  { %2825 = vmatmul.mubr.msk.bf16.vlgmr.msra.gmra.mrb[52].mxu0 %vm327_vm4, %v2182_v54 }
0x2683   :  { %2840 = vmatprep.mubr.msk.bf16.mxu0 %vm3097_vm6, %v3092_v1 }
0x2755   :  { %v2232_v45 = vpop.f32.mrb[52].mxu0 }
0x2756   :  { %v2238_v55 = vadd.f32 %v2232_v45, %v3488_v2  ;;  %v2826_v58 = vpop.f32.mrb[53].mxu0  ;;  %v2910_v2 = vld [vmem:[#allocation6 + $0x20] ss:$40 sps:$4 sm:$0xff]  }
0x2757   :  { %v2235_v60 = vpop.f32.mrb[54].mxu0  ;;  %2829 = vmatpush3.bf16.msra.mxu1 %v2910_v2  ;;  %v2914_v58 = vld [vmem:[#allocation6 + $0x24] ss:$40 sps:$4 sm:$0xff]  }
0x2758   :  { %3046 = vtanh.f32 %v2238_v55  ;;  %v2827_v63 = vpop.f32.mrb[55].mxu0  ;;  %v2239_v9 = vmul.f32 0.5, %v2238_v55  ;;  %2830 = vmatprep.subr.bf16.mxu1 %v3092_v1 }
0x275a   :  { %3048 = vtanh.f32 %v2239_v9 }
0x275b   :  { %2831 = vmatpush3.bf16.msra.mxu1 %v2911_v0 }
0x275c   :  { %2844 = vmatprep.subr.bf16.mxu1 %v2914_v58 }
0x2762   :  { %v3047_v6 = vpop.eup %3046 }
0x2763   :  { %2246 = vrot.lane.b32.xlu0 %v3047_v6, %s3094_s0 }
0x2764   :  { %v3049_v48 = vpop.eup %3048 }
0x2765   :  { %v2241_v12 = vmul.f32 0.5, %v3049_v48 }
0x2767   :  { %v2242_v4 = vadd.f32 0.5, %v2241_v12 }
0x2769   :  { %v2244_v22 = vmul.f32 %v2242_v4, %v2162_v46 }
0x27d5   :  { %v2247_v14 = vpop.permute.xlu0 %2246 }
0x27d6   :  { %v2249_v17 = vmul.f32 %v2247_v14, %v2242_v4 }
0x27d8   :  { %2251 = vrot.lane.b32.xlu1 %v2249_v17, %s3094_s0 }
0x284a   :  { %v2252_v8 = vpop.permute.xlu1 %2251 }
0x284b   :  { %v2254_v23 = vadd.f32 %v2252_v8, %v2244_v22 }
0x284d   :  { %3050 = vtanh.f32 %v2254_v23 }
0x2857   :  { %v3051_v24 = vpop.eup %3050 }
0x2858   :  { %2257 = vrot.lane.b32.xlu0 %v3051_v24, %s3094_s0 }
0x28ca   :  { %v2258_v3 = vpop.permute.xlu0 %2257 }
0x28cb   :  { %v3563_v25 = vmul.f32 %v2258_v3, %v2242_v4 }
0x28cd   :  { %v2267_v26 = vpack.c.bf16 %v3563_v25, %v3563_v25 }
0x28cf   :  { %2273 = vrot.lane.b32.xlu1 %v2267_v26, %s3095_s28  ;;  %v2695_v26 = vld [vmem:[%s3637_s4 + $0x5] ss:$0 sm:$0xff] }
0x2941   :  { %v2274_v53 = vpop.permute.xlu1 %2273 }
0x2942   :  { %2833 = vmatmul.mubr.msk.bf16.vlgmr.msra.gmra.mrb[36].mxu1 %vm327_vm4, %v2274_v53 }
0x2943   :  { %2845 = vmatpush3.bf16.msra.mxu1 %v2914_v58 }
0x2a15   :  { %v2324_v43 = vpop.f32.mrb[36].mxu1 }
0x2a16   :  { %v2330_v27 = vadd.f32 %v2324_v43, %v3480_v57  ;;  %v2834_v28 = vpop.f32.mrb[37].mxu1  ;;  %v2912_v57 = vld [vmem:[#allocation6 + $0x20] ss:$40 sps:$4 sm:$0xff]  }
0x2a17   :  { %v2327_v29 = vpop.f32.mrb[38].mxu1  ;;  %2837 = vmatpush3.bf16.msra.mxu0 %v2912_v57 }
0x2a18   :  { %3052 = vtanh.f32 %v2330_v27  ;;  %v2835_v30 = vpop.f32.mrb[39].mxu1  ;;  %v2331_v31 = vmul.f32 0.5, %v2330_v27  ;;  %2838 = vmatprep.subr.bf16.mxu0 %v3092_v1 }
0x2a1a   :  { %3054 = vtanh.f32 %v2331_v31 }
0x2a1b   :  { %2839 = vmatpush3.bf16.msra.mxu0 %v2913_v19 }
0x2a22   :  { %v3053_v7 = vpop.eup %3052 }
0x2a23   :  { %2338 = vrot.lane.b32.xlu0 %v3053_v7, %s3094_s0 }
0x2a24   :  { %v3055_v51 = vpop.eup %3054 }
0x2a25   :  { %v2333_v32 = vmul.f32 0.5, %v3055_v51 }
0x2a27   :  { %v2334_v5 = vadd.f32 0.5, %v2333_v32 }
0x2a29   :  { %v2336_v11 = vmul.f32 %v2334_v5, %v2254_v23 }
0x2a95   :  { %v2339_v33 = vpop.permute.xlu0 %2338 }
0x2a96   :  { %v2341_v10 = vmul.f32 %v2339_v33, %v2334_v5 }
0x2a98   :  { %2343 = vrot.lane.b32.xlu1 %v2341_v10, %s3094_s0 }
0x2b0a   :  { %v2344_v16 = vpop.permute.xlu1 %2343 }
0x2b0b   :  { %v2346_v18 = vadd.f32 %v2344_v16, %v2336_v11 }
0x2b0d   :  { %3056 = vtanh.f32 %v2346_v18 }
0x2b17   :  { %v3057_v21 = vpop.eup %3056 }
0x2b18   :  { %2349 = vrot.lane.b32.xlu0 %v3057_v21, %s3094_s0 }
0x2b8a   :  { %v2350_v20 = vpop.permute.xlu0 %2349 }
0x2b8b   :  { %v2352_v35 = vmul.f32 %v2350_v20, %v2334_v5 }
0x2b8d   :  { %v2359_v41 = vpack.c.bf16 %v2352_v35, %v2352_v35 }
0x2b8f   :  { %2365 = vrot.lane.b32.xlu1 %v2359_v41, %s3095_s28 }
0x2c01   :  { %v2366_v61 = vpop.permute.xlu1 %2365 }
0x2c02   :  { %2841 = vmatmul.mubr.msk.bf16.vlgmr.msra.gmra.mrb[56].mxu0 %vm327_vm4, %v2366_v61 }
0x2cd5   :  { %v2416_v37 = vpop.f32.mrb[56].mxu0 }
0x2cd6   :  { %v2422_v36 = vadd.f32 %v2416_v37, %v3486_v62  ;;  %v2842_v59 = vpop.f32.mrb[57].mxu0 }
0x2cd7   :  { %v2419_v39 = vpop.f32.mrb[58].mxu0 }
0x2cd8   :  { %3058 = vtanh.f32 %v2422_v36  ;;  %v2843_v42 = vpop.f32.mrb[59].mxu0  ;;  %v2423_v44 = vmul.f32 0.5, %v2422_v36 }
0x2cda   :  { %3060 = vtanh.f32 %v2423_v44 }
0x2ce2   :  { %v3059_v1 = vpop.eup %3058 }
0x2ce3   :  { %2430 = vrot.lane.b32.xlu0 %v3059_v1, %s3094_s0 }
0x2ce4   :  { %v3061_v46 = vpop.eup %3060 }
0x2ce5   :  { %v2425_v56 = vmul.f32 0.5, %v3061_v46 }
0x2ce7   :  { %v2426_v50 = vadd.f32 0.5, %v2425_v56 }
0x2ce9   :  { %v2428_v62 = vmul.f32 %v2426_v50, %v2346_v18 }
0x2d55   :  { %v2431_v40 = vpop.permute.xlu0 %2430 }
0x2d56   :  { %v2433_v47 = vmul.f32 %v2431_v40, %v2426_v50 }
0x2d58   :  { %2435 = vrot.lane.b32.xlu1 %v2433_v47, %s3094_s0 }
0x2d5c   :  { %1802 = vrot.lane.b32.xlu1 %v3495_v15, %s3095_s28 }
0x2d60   :  { %1986 = vrot.lane.b32.xlu1 %v3522_v49, %s3095_s28 }
0x2d64   :  { %2170 = vrot.lane.b32.xlu1 %v3550_v13, %s3095_s28  ;;  %v2915_v13 = vld [vmem:[#allocation6 + $0x74] ss:$40 sps:$4 sm:$0xff]  }
0x2d65   :  { %2846 = vmatprep.subr.bf16.mxu1 %v2915_v13 }
0x2d66   :  { %2847 = vmatpush3.bf16.msra.mxu1 %v2915_v13 }
0x2d68   :  { %2354 = vrot.lane.b32.xlu1 %v2352_v35, %s3095_s28 }
0x2dca   :  { %v2436_v52 = vpop.permute.xlu1 %2435 }
0x2dcb   :  { %v2438_v54 = vadd.f32 %v2436_v52, %v2428_v62 }
0x2dcd   :  { %3062 = vtanh.f32 %v2438_v54 }
0x2dce   :  { %v1803_v45 = vpop.permute.xlu1 %1802 }
0x2dcf   :  { %1805 = vst.msk [vmem:[#allocation4] sm:$0xff] %vm327_vm4, %v1803_v45 }
0x2dd2   :  { %v1987_v55 = vpop.permute.xlu1 %1986 }
0x2dd3   :  { %1989 = vst.msk [vmem:[#allocation4 + $0x10] sm:$0xff] %vm327_vm4, %v1987_v55 }
0x2dd6   :  { %v2171_v15 = vpop.permute.xlu1 %2170  ;;  %v2450_v4 = vld [vmem:[#allocation4] sm:$0xff] }
0x2dd7   :  { %v3063_v49 = vpop.eup %3062  ;;  %2173 = vst.msk [vmem:[#allocation4 + $0x20] sm:$0xff] %vm327_vm4, %v2171_v15 }
0x2dd8   :  { %2441 = vrot.lane.b32.xlu0 %v3063_v49, %s3094_s0 }
0x2dda   :  { %v2355_v60 = vpop.permute.xlu1 %2354 }
0x2ddb   :  { %2357 = vst.msk [vmem:[#allocation4 + $0x30] sm:$0xff] %vm327_vm4, %v2355_v60 }
0x2ddc   :  { %1894 = vrot.lane.b32.xlu0 %v3508_v38, %s3095_s28 }
0x2dde   :  { %v2454_v8 = vld [vmem:[#allocation4 + $0x20] sm:$0xff] }
0x2de0   :  { %2078 = vrot.lane.b32.xlu0 %v3536_v34, %s3095_s28  ;;  %v2452_v34 = vld [vmem:[#allocation4 + $0x10] sm:$0xff] }
0x2de2   :  { %v2456_v24 = vld [vmem:[#allocation4 + $0x30] sm:$0xff] }
0x2de4   :  { %2262 = vrot.lane.b32.xlu0 %v3563_v25, %s3095_s28 }
0x2e4a   :  { %v2442_v63 = vpop.permute.xlu0 %2441 }
0x2e4b   :  { %v2444_v6 = vmul.f32 %v2442_v63, %v2426_v50 }
0x2e4d   :  { %2446 = vrot.lane.b32.xlu0 %v2444_v6, %s3095_s28 }
0x2e4e   :  { %v1895_v9 = vpop.permute.xlu0 %1894 }
0x2e4f   :  { %1897 = vst.msk [vmem:[#allocation4 + $0x8] sm:$0xff] %vm327_vm4, %v1895_v9 }
0x2e52   :  { %v2079_v48 = vpop.permute.xlu0 %2078 }
0x2e53   :  { %2081 = vst.msk [vmem:[#allocation4 + $0x18] sm:$0xff] %vm327_vm4, %v2079_v48 }
0x2e56   :  { %v2263_v12 = vpop.permute.xlu0 %2262  ;;  %v2451_v14 = vld [vmem:[#allocation4 + $0x8] sm:$0xff] }
0x2e57   :  { %2265 = vst.msk [vmem:[#allocation4 + $0x28] sm:$0xff] %vm327_vm4, %v2263_v12  ;;  %v2458_v38 = vpack.c.bf16 %v2451_v14, %v2450_v4 }
0x2e59   :  { %2848 = vmatprep.mubr.msk.bf16.mxu1 %vm327_vm4, %v2458_v38 }
0x2e5a   :  { %v2453_v17 = vld [vmem:[#allocation4 + $0x18] sm:$0xff] }
0x2e5b   :  { %v2459_v22 = vpack.c.bf16 %v2453_v17, %v2452_v34 }
0x2e5d   :  { %2849 = vmatmul.mubr.msk.bf16.vlgmr.msra.gmra.mrb[40].mxu1 %vm327_vm4, %v2459_v22 }
0x2e5e   :  { %v2455_v23 = vld [vmem:[#allocation4 + $0x28] sm:$0xff] }
0x2e5f   :  { %v2460_v2 = vpack.c.bf16 %v2455_v23, %v2454_v8 }
0x2e61   :  { %2852 = vmatprep.mubr.msk.bf16.mxu1 %vm327_vm4, %v2460_v2 }
0x2ebf   :  { %v2447_v0 = vpop.permute.xlu0 %2446 }
0x2ec0   :  { %2449 = vst.msk [vmem:[#allocation4 + $0x38] sm:$0xff] %vm327_vm4, %v2447_v0 }
0x2ec7   :  { %v2457_v3 = vld [vmem:[#allocation4 + $0x38] sm:$0xff] }
0x2ec8   :  { %v2461_v25 = vpack.c.bf16 %v2457_v3, %v2456_v24 }
0x2eca   :  { %2853 = vmatmul.mubr.msk.bf16.gmra.mrb[44].mxu1 %vm327_vm4, %v2461_v25 }
0x2f30   :  { %v2850_v53 = vpop.f32.mrb[40].mxu1 }
0x2f31   :  { %v2540_v43 = vadd.f32 %v2850_v53, %v2695_v26  ;;  %v2531_v27 = vpop.f32.mrb[41].mxu1 }
0x2f32   :  { %v2532_v28 = vadd.f32 %v2695_v26, %v2531_v27  ;;  %v2851_v29 = vpop.f32.mrb[42].mxu1 }
0x2f33   :  { %2564 = vst [vmem:[%s3638_s5 + $0x10] sm:$0xff] %v2540_v43  ;;  %v2543_v30 = vadd.f32 %v2851_v29, %v2695_v26  ;;  %v2534_v7 = vpop.f32.mrb[43].mxu1 }
0x2f34   :  { %2562 = vst [vmem:[%s3638_s5] sm:$0xff] %v2532_v28  ;;  %v2535_v31 = vadd.f32 %v2695_v26, %v2534_v7 }
0x2f35   :  { %2565 = vst [vmem:[%s3638_s5 + $0x18] sm:$0xff] %v2543_v30 }
0x2f36   :  { %2563 = vst [vmem:[%s3638_s5 + $0x8] sm:$0xff] %v2535_v31 }
0x2f9d   :  { %v2854_v51 = vpop.f32.mrb[44].mxu1 }
0x2f9e   :  { %v2556_v32 = vadd.f32 %v2854_v51, %v2695_v26  ;;  %v2547_v5 = vpop.f32.mrb[45].mxu1 }
0x2f9f   :  { %v2548_v33 = vadd.f32 %v2695_v26, %v2547_v5  ;;  %v2855_v10 = vpop.f32.mrb[46].mxu1 }
0x2fa0   :  { %2568 = vst [vmem:[%s3638_s5 + $0x30] sm:$0xff] %v2556_v32  ;;  %v2559_v11 = vadd.f32 %v2855_v10, %v2695_v26  ;;  %v2550_v16 = vpop.f32.mrb[47].mxu1 }
0x2fa1   :  { %2566 = vst [vmem:[%s3638_s5 + $0x20] sm:$0xff] %v2548_v33  ;;  %v2551_v18 = vadd.f32 %v2695_v26, %v2550_v16 }
0x2fa2   :  { %2569 = vst [vmem:[%s3638_s5 + $0x38] sm:$0xff] %v2559_v11 }
0x2fa3   :  { %2567 = vst [vmem:[%s3638_s5 + $0x28] sm:$0xff] %v2551_v18 }
0x2fa4   :  { %2578 = vsyncpa [#allocation7], 1 }

</bundles_post_ra>
